<compile_context>
chip_gen: v5e
topology: v5e:2x2
jax: 0.10.0
libtpu: 0.0.40
codegen_flags: <defaults>
</compile_context>

<pallas_src>
import functools

import jax
import jax.numpy as jnp
from jax.experimental import pallas as pl
from jax.experimental.pallas import tpu as pltpu


def _round_up(x, m):
    return (x + m - 1) // m * m


def _vmem():
    return pl.BlockSpec(memory_space=pltpu.MemorySpace.VMEM)


def _smem():
    return pl.BlockSpec(memory_space=pltpu.MemorySpace.SMEM)


# ----------------------------- Pallas kernels -------------------------------

def conv_gram_kernel(w_ref, x_ref, l_ref, mask_ref, out_ref, g_ref,
                     *, nh, k0, k1, Wp, Lin):
    """Folded complex 3-D conv  Ltmp = (w1+w3)*x + (w2-w3)*L  plus its Gram.

    Layouts:
      x_ref, l_ref : f32[T2, Lin]  rows = [Re_t0..Re_t(nh-1), Im_t0..Im_t(nh-1)],
                     lanes = flattened zero-padded (Hp, Wp) frame (pad lanes == 0).
      w_ref (SMEM) : f32[4*k0*k0*k1 + 2]
                     [x_wR, x_wI, L_wR, L_wI taps in (dh,dw,dt) order, b_re, b_im].
      mask_ref     : f32[1, Lin]   1.0 on interior (valid) lanes, 0.0 elsewhere.
      out_ref      : f32[T2, Lin]  masked Ltmp in the SAME padded-frame layout,
                     directly reusable as the next layer's L input.
      g_ref        : f32[T2, T2]   Gram of the masked output (for the SVT step).
    """
    T2 = 2 * nh
    p0 = (k0 - 1) // 2
    p1 = (k1 - 1) // 2
    ksz = k0 * k0 * k1

    row = jax.lax.broadcasted_iota(jnp.int32, (T2, Lin), 0)
    is_re = row < nh
    # sign of the B channel ([-Im; Re]) rows: -1 on the Re block, +1 on Im block
    sgn = jnp.where(is_re, jnp.float32(-1.0), jnp.float32(1.0))
    row_in_blk = jnp.where(is_re, row, row - nh)

    # Row masks for temporal taps (zero rows whose source time leaves [0, nh)
    # after the sublane shift).  Shared by both input volumes.
    tmasks = []
    for dt in range(k1):
        sh = dt - p1
        if sh == 0:
            tmasks.append(None)
        else:
            ok = (row_in_blk + sh >= 0) & (row_in_blk + sh < nh)
            tmasks.append(ok.astype(jnp.float32))

    # k0 independent accumulators (one per dw): shorter dependency chains than a
    # single serial accumulator; the dh*Wp lane rolls are hoisted out of the dw
    # loop and the per-dw partials are combined with 1..k0-1 lane rolls at the end.
    accs = [jnp.zeros((T2, Lin), jnp.float32) for _ in range(k0)]

    for vi, src in enumerate((x_ref, l_ref)):
        wbase = vi * 2 * ksz
        a0 = src[...]
        for dt in range(k1):
            sh = dt - p1
            if sh == 0:
                a = a0
            else:
                a = pltpu.roll(a0, (-sh) % T2, axis=0) * tmasks[dt]
            # derive B = [-Im; Re] in-kernel (sublane roll by nh + sign):
            # halves the conv-stage input volumes vs. passing it explicitly.
            b = sgn * pltpu.roll(a, nh, axis=0)
            for dh in range(k0):
                lane_shift = dh * Wp
                if lane_shift == 0:
                    ra, rb = a, b
                else:
                    ra = pltpu.roll(a, Lin - lane_shift, axis=1)  # ra[l]=a[l+dh*Wp]
                    rb = pltpu.roll(b, Lin - lane_shift, axis=1)
                for dw in range(k0):
                    tap = (dh * k0 + dw) * k1 + dt
                    w_r = w_ref[wbase + tap]
                    w_i = w_ref[wbase + ksz + tap]
                    accs[dw] = accs[dw] + w_r * ra + w_i * rb

    # combine per-dw partials:  raw[l] = sum_dw accs[dw][l + dw]
    raw = accs[0]
    for dw in range(1, k0):
        raw = raw + pltpu.roll(accs[dw], Lin - dw, axis=1)

    # folded biases, shift into the padded-frame layout, zero every pad/wrapped
    # lane so the output feeds the SVT and the next layer's conv directly.
    b_re = w_ref[4 * ksz + 0]
    b_im = w_ref[4 * ksz + 1]
    bias = jnp.where(is_re, b_re, b_im)
    shifted = pltpu.roll(raw, p0 * Wp + p0, axis=1)       # shifted[l] = raw[l - off]
    out = (shifted + bias) * mask_ref[...]
    out_ref[...] = out

    # Gram for the SVT eigendecomposition (MXU dot contracting the lane axis).
    g_ref[...] = jax.lax.dot_general(out, out, (((1,), (1,)), ((), ())),
                                     preferred_element_type=jnp.float32)


def svt_recon_kernel(th_ref, e_ref, v_ref, a_ref, out_ref):
    """SVT reconstruction in the transposed (lane-dense) layout.

    Given G = V diag(lam) V^T (Gram of A = Ltmp^T), computes
        svtC(M)^T = V diag(relu(s - th*s_max)/s) V^T @ A,   s = sqrt(lam),
    which equals the reference randomized-SVD SVT (the k=10 >= T2 sketch is
    generically exact).  Zero columns of A stay zero, preserving the padded layout.
    """
    lam = jnp.maximum(e_ref[...], 0.0)                       # (1, n)
    s = jnp.sqrt(lam)
    s_max = jnp.max(s, axis=1, keepdims=True)                # (1, 1)
    thr = jnp.maximum(s - th_ref[0] * s_max, 0.0)
    w = jnp.where(s > 0.0, thr / jnp.maximum(s, jnp.float32(1e-30)), jnp.float32(0.0))
    vw = v_ref[...] * w                                      # V diag(w)     (n, n)
    c = jax.lax.dot_general(vw, v_ref[...], (((1,), (1,)), ((), ())),
                            preferred_element_type=jnp.float32)  # V diag(w) V^T
    out_ref[...] = jnp.dot(c, a_ref[...], preferred_element_type=jnp.float32)


# ------------------------------ thin wrappers --------------------------------

def conv_gram(w_flat, x_slab, l_slab, mask_row, *, nh, k0, k1, Wp, Lin):
    T2 = 2 * nh
    kern = functools.partial(conv_gram_kernel, nh=nh, k0=k0, k1=k1, Wp=Wp, Lin=Lin)
    # TODO(synk): for production frame sizes, grid the lane axis with an
    # overlapping halo index_map and dimension_semantics=("parallel",) so the two
    # v7x TensorCores split the spatial axis and DMA overlaps compute.
    return pl.pallas_call(
        kern,
        out_shape=(jax.ShapeDtypeStruct((T2, Lin), jnp.float32),
                   jax.ShapeDtypeStruct((T2, T2), jnp.float32)),
        in_specs=[_smem(), _vmem(), _vmem(), _vmem()],
        out_specs=(_vmem(), _vmem()),
        # Raise the scoped-VMEM ceiling (matters on v5e's 16 MiB default once
        # frames get large; a no-op at this demo size).
        compiler_params=pltpu.CompilerParams(vmem_limit_bytes=32 * 1024 * 1024),
    )(w_flat, x_slab, l_slab, mask_row)


def svt_recon(th_arr, evals_row, evecs, a_slab):
    n, lin = a_slab.shape
    return pl.pallas_call(
        svt_recon_kernel,
        out_shape=jax.ShapeDtypeStruct((n, lin), jnp.float32),
        in_specs=[_smem(), _vmem(), _vmem(), _vmem()],
        out_specs=_vmem(),
    )(th_arr, evals_row, evecs, a_slab)


# ------------------------------- the network ---------------------------------

def init_params(layers, kernels, key):
    """Synthetic parameters matching the PyTorch Conv3d shapes for conv1..conv3
    (the only convs used by the reference forward) plus the per-layer exp_L."""
    params = []
    for i in range(layers):
        k0, k1 = kernels[i]
        bound = float(k0 * k0 * k1) ** -0.5
        key, kwr, kwi, kbr, kbi = jax.random.split(key, 5)
        params.append({
            "wR": jax.random.uniform(kwr, (3, k0, k0, k1), minval=-bound,
                                     maxval=bound, dtype=jnp.float32),
            "wI": jax.random.uniform(kwi, (3, k0, k0, k1), minval=-bound,
                                     maxval=bound, dtype=jnp.float32),
            "bR": jax.random.uniform(kbr, (3,), minval=-bound, maxval=bound,
                                     dtype=jnp.float32),
            "bI": jax.random.uniform(kbi, (3,), minval=-bound, maxval=bound,
                                     dtype=jnp.float32),
            "exp_L": jnp.float32(0.0),
        })
    return params


def unfolded_net3dc_forward(x, params, coef_L, *, kernels):
    H, W, T2 = x.shape
    nh = T2 // 2

    def geom_of(k0):
        p0 = (k0 - 1) // 2
        Hp, Wp = H + 2 * p0, W + 2 * p0
        Lin = _round_up(max(Hp * Wp, 128), 128)
        return p0, Hp, Wp, Lin

    def to_slab(v_hwt, g):
        p0, Hp, Wp, Lin = g
        v = jnp.transpose(v_hwt, (2, 0, 1)).astype(jnp.float32)
        v = jnp.pad(v, ((0, 0), (p0, p0), (p0, p0))).reshape(T2, Hp * Wp)
        return jnp.pad(v, ((0, 0), (0, Lin - Hp * Wp)))

    def from_slab(slab, g):
        p0, Hp, Wp, _ = g
        v = slab[:, :Hp * Wp].reshape(T2, Hp, Wp)[:, p0:p0 + H, p0:p0 + W]
        return jnp.transpose(v, (1, 2, 0))

    def mask_of(g):
        p0, Hp, Wp, Lin = g
        m = jnp.zeros((Hp, Wp), jnp.float32).at[p0:p0 + H, p0:p0 + W].set(1.0)
        return jnp.pad(m.reshape(1, Hp * Wp), ((0, 0), (0, Lin - Hp * Wp)))

    # Hoist per-geometry constants (x slab, interior mask) out of the layer loop.
    geoms = {}
    for i in range(len(params)):
        k0 = kernels[i][0]
        if k0 not in geoms:
            g = geom_of(k0)
            geoms[k0] = (g, to_slab(x, g), mask_of(g))

    cur_k0 = kernels[0][0]
    L_slab = jnp.zeros((T2, geoms[cur_k0][0][3]), jnp.float32)   # L starts at 0

    for i, layer in enumerate(params):
        k0, k1 = kernels[i]
        if k0 != cur_k0:
            # geometry change between layers: one cheap relayout of L
            L_slab = to_slab(from_slab(L_slab, geoms[cur_k0][0]), geoms[k0][0])
            cur_k0 = k0
        g, x_slab, mask_row = geoms[k0]
        p0, Hp, Wp, Lin = g

        # conv3 folded: conv1(x)+conv2(L)+conv3(x-L) = (w1+w3)*x + (w2-w3)*L.
        # Each Conv3dC applies its biases on both the real and imaginary passes,
        # hence b_re = sum(bR - bI), b_im = sum(bR + bI).
        wR, wI, bR, bI = layer["wR"], layer["wI"], layer["bR"], layer["bI"]
        w_flat = jnp.concatenate([
            (wR[0] + wR[2]).ravel(), (wI[0] + wI[2]).ravel(),
            (wR[1] - wR[2]).ravel(), (wI[1] - wI[2]).ravel(),
            jnp.sum(bR - bI)[None], jnp.sum(bR + bI)[None],
        ]).astype(jnp.float32)

        Ltmp_slab, G = conv_gram(w_flat, x_slab, L_slab, mask_row,
                                 nh=nh, k0=k0, k1=k1, Wp=Wp, Lin=Lin)

        # TODO(synk): the T2 x T2 symmetric eigendecomposition has no Pallas
        # primitive; jnp.linalg.eigh on the tiny Gram replaces the reference's
        # much heavier qr(H*W,10) + svd(10,T2) (exact for the k=10 >= T2 sketch).
        evals, evecs = jnp.linalg.eigh(0.5 * (G + G.T))
        th = (jax.nn.sigmoid(layer["exp_L"]) * coef_L).astype(jnp.float32)
        L_slab = svt_recon(th.reshape(1),
                           evals.reshape(1, T2).astype(jnp.float32),
                           evecs.astype(jnp.float32),
                           Ltmp_slab)

    return from_slab(L_slab, geoms[cur_k0][0])             # (H, W, T2)


if __name__ == "__main__":
    # T2 (= 2*nh) must be <= 10 for the reference k=10 randomized SVD to be valid.
    H, W, T2 = 16, 16, 8
    layers = 2
    kernels = ((3, 3), (3, 3))
    coef_L = jnp.float32(0.4)

    key = jax.random.PRNGKey(0)
    kx, kp = jax.random.split(key)
    x = jax.random.normal(kx, (H, W, T2), dtype=jnp.float32)
    params = init_params(layers, kernels, kp)

    fwd = jax.jit(functools.partial(unfolded_net3dc_forward, kernels=kernels))
    L = jax.block_until_ready(fwd(x, params, coef_L))
    assert L.shape == (H, W, T2)
    assert bool(jnp.isfinite(L).all())
    print("KERNEL_OK")
</pallas_src>

<mosaic_0001>
module attributes {stable_mosaic.version = 11 : i64} {
  func.func @conv_gram_kernel(%arg0: memref<110xf32, #tpu.memory_space<smem>>, %arg1: memref<8x384xf32, #tpu.memory_space<vmem>>, %arg2: memref<8x384xf32, #tpu.memory_space<vmem>>, %arg3: memref<1x384xf32, #tpu.memory_space<vmem>>, %arg4: memref<8x384xf32, #tpu.memory_space<vmem>>, %arg5: memref<8x8xf32, #tpu.memory_space<vmem>>) attributes {dimension_semantics = [], scalar_prefetch = 0 : i64, scratch_operands = 0 : i64, tpu.core_type = #tpu.core_type<tc>} {
    %0 = tpu.iota {dimensions = array<i32: 0>} : vector<8x384xi32>
    %c4_i32 = arith.constant 4 : i32
    %1 = vector.broadcast %c4_i32 : i32 to vector<8x384xi32>
    %2 = arith.cmpi slt, %0, %1 : vector<8x384xi32>
    %cst = arith.constant -1.000000e+00 : f32
    %cst_0 = arith.constant 1.000000e+00 : f32
    %3 = vector.broadcast %cst : f32 to vector<8x384xf32>
    %4 = vector.broadcast %cst_0 : f32 to vector<8x384xf32>
    %5 = arith.select %2, %3, %4 : vector<8x384xi1>, vector<8x384xf32>
    %c4_i32_1 = arith.constant 4 : i32
    %6 = vector.broadcast %c4_i32_1 : i32 to vector<8x384xi32>
    %7 = arith.subi %0, %6 : vector<8x384xi32>
    %8 = arith.select %2, %0, %7 : vector<8x384xi1>, vector<8x384xi32>
    %c-1_i32 = arith.constant -1 : i32
    %9 = vector.broadcast %c-1_i32 : i32 to vector<8x384xi32>
    %10 = arith.addi %8, %9 : vector<8x384xi32>
    %c0_i32 = arith.constant 0 : i32
    %11 = vector.broadcast %c0_i32 : i32 to vector<8x384xi32>
    %12 = arith.cmpi sge, %10, %11 : vector<8x384xi32>
    %c-1_i32_2 = arith.constant -1 : i32
    %13 = vector.broadcast %c-1_i32_2 : i32 to vector<8x384xi32>
    %14 = arith.addi %8, %13 : vector<8x384xi32>
    %c4_i32_3 = arith.constant 4 : i32
    %15 = vector.broadcast %c4_i32_3 : i32 to vector<8x384xi32>
    %16 = arith.cmpi slt, %14, %15 : vector<8x384xi32>
    %17 = arith.andi %12, %16 : vector<8x384xi1>
    %18 = arith.extui %17 : vector<8x384xi1> to vector<8x384xi32>
    %19 = arith.sitofp %18 : vector<8x384xi32> to vector<8x384xf32>
    %c1_i32 = arith.constant 1 : i32
    %20 = vector.broadcast %c1_i32 : i32 to vector<8x384xi32>
    %21 = arith.addi %8, %20 : vector<8x384xi32>
    %c0_i32_4 = arith.constant 0 : i32
    %22 = vector.broadcast %c0_i32_4 : i32 to vector<8x384xi32>
    %23 = arith.cmpi sge, %21, %22 : vector<8x384xi32>
    %c1_i32_5 = arith.constant 1 : i32
    %24 = vector.broadcast %c1_i32_5 : i32 to vector<8x384xi32>
    %25 = arith.addi %8, %24 : vector<8x384xi32>
    %c4_i32_6 = arith.constant 4 : i32
    %26 = vector.broadcast %c4_i32_6 : i32 to vector<8x384xi32>
    %27 = arith.cmpi slt, %25, %26 : vector<8x384xi32>
    %28 = arith.andi %23, %27 : vector<8x384xi1>
    %29 = arith.extui %28 : vector<8x384xi1> to vector<8x384xi32>
    %30 = arith.sitofp %29 : vector<8x384xi32> to vector<8x384xf32>
    %cst_7 = arith.constant 0.000000e+00 : f32
    %31 = vector.broadcast %cst_7 : f32 to vector<8x384xf32>
    %cst_8 = arith.constant 0.000000e+00 : f32
    %32 = vector.broadcast %cst_8 : f32 to vector<8x384xf32>
    %cst_9 = arith.constant 0.000000e+00 : f32
    %33 = vector.broadcast %cst_9 : f32 to vector<8x384xf32>
    %c0 = arith.constant 0 : index
    %c0_10 = arith.constant 0 : index
    %34 = vector.load %arg1[%c0, %c0_10] : memref<8x384xf32, #tpu.memory_space<vmem>>, vector<8x384xf32>
    %c1_i32_11 = arith.constant 1 : i32
    %35 = tpu.dynamic_rotate %34 by %c1_i32_11 dim 0 : vector<8x384xf32>, i32 -> vector<8x384xf32>
    %36 = arith.mulf %35, %19 : vector<8x384xf32>
    %c4_i32_12 = arith.constant 4 : i32
    %37 = tpu.dynamic_rotate %36 by %c4_i32_12 dim 0 : vector<8x384xf32>, i32 -> vector<8x384xf32>
    %38 = arith.mulf %5, %37 : vector<8x384xf32>
    %c0_13 = arith.constant 0 : index
    %39 = memref.load %arg0[%c0_13] : memref<110xf32, #tpu.memory_space<smem>>
    %c27 = arith.constant 27 : index
    %40 = memref.load %arg0[%c27] : memref<110xf32, #tpu.memory_space<smem>>
    %41 = vector.broadcast %39 : f32 to vector<8x384xf32>
    %42 = arith.mulf %41, %36 : vector<8x384xf32>
    %43 = arith.addf %31, %42 : vector<8x384xf32>
    %44 = vector.broadcast %40 : f32 to vector<8x384xf32>
    %45 = arith.mulf %44, %38 : vector<8x384xf32>
    %46 = arith.addf %43, %45 : vector<8x384xf32>
    %c3 = arith.constant 3 : index
    %47 = memref.load %arg0[%c3] : memref<110xf32, #tpu.memory_space<smem>>
    %c30 = arith.constant 30 : index
    %48 = memref.load %arg0[%c30] : memref<110xf32, #tpu.memory_space<smem>>
    %49 = vector.broadcast %47 : f32 to vector<8x384xf32>
    %50 = arith.mulf %49, %36 : vector<8x384xf32>
    %51 = arith.addf %32, %50 : vector<8x384xf32>
    %52 = vector.broadcast %48 : f32 to vector<8x384xf32>
    %53 = arith.mulf %52, %38 : vector<8x384xf32>
    %54 = arith.addf %51, %53 : vector<8x384xf32>
    %c6 = arith.constant 6 : index
    %55 = memref.load %arg0[%c6] : memref<110xf32, #tpu.memory_space<smem>>
    %c33 = arith.constant 33 : index
    %56 = memref.load %arg0[%c33] : memref<110xf32, #tpu.memory_space<smem>>
    %57 = vector.broadcast %55 : f32 to vector<8x384xf32>
    %58 = arith.mulf %57, %36 : vector<8x384xf32>
    %59 = arith.addf %33, %58 : vector<8x384xf32>
    %60 = vector.broadcast %56 : f32 to vector<8x384xf32>
    %61 = arith.mulf %60, %38 : vector<8x384xf32>
    %62 = arith.addf %59, %61 : vector<8x384xf32>
    %c366_i32 = arith.constant 366 : i32
    %63 = tpu.dynamic_rotate %36 by %c366_i32 dim 1 : vector<8x384xf32>, i32 -> vector<8x384xf32>
    %c366_i32_14 = arith.constant 366 : i32
    %64 = tpu.dynamic_rotate %38 by %c366_i32_14 dim 1 : vector<8x384xf32>, i32 -> vector<8x384xf32>
    %c9 = arith.constant 9 : index
    %65 = memref.load %arg0[%c9] : memref<110xf32, #tpu.memory_space<smem>>
    %c36 = arith.constant 36 : index
    %66 = memref.load %arg0[%c36] : memref<110xf32, #tpu.memory_space<smem>>
    %67 = vector.broadcast %65 : f32 to vector<8x384xf32>
    %68 = arith.mulf %67, %63 : vector<8x384xf32>
    %69 = arith.addf %46, %68 : vector<8x384xf32>
    %70 = vector.broadcast %66 : f32 to vector<8x384xf32>
    %71 = arith.mulf %70, %64 : vector<8x384xf32>
    %72 = arith.addf %69, %71 : vector<8x384xf32>
    %c12 = arith.constant 12 : index
    %73 = memref.load %arg0[%c12] : memref<110xf32, #tpu.memory_space<smem>>
    %c39 = arith.constant 39 : index
    %74 = memref.load %arg0[%c39] : memref<110xf32, #tpu.memory_space<smem>>
    %75 = vector.broadcast %73 : f32 to vector<8x384xf32>
    %76 = arith.mulf %75, %63 : vector<8x384xf32>
    %77 = arith.addf %54, %76 : vector<8x384xf32>
    %78 = vector.broadcast %74 : f32 to vector<8x384xf32>
    %79 = arith.mulf %78, %64 : vector<8x384xf32>
    %80 = arith.addf %77, %79 : vector<8x384xf32>
    %c15 = arith.constant 15 : index
    %81 = memref.load %arg0[%c15] : memref<110xf32, #tpu.memory_space<smem>>
    %c42 = arith.constant 42 : index
    %82 = memref.load %arg0[%c42] : memref<110xf32, #tpu.memory_space<smem>>
    %83 = vector.broadcast %81 : f32 to vector<8x384xf32>
    %84 = arith.mulf %83, %63 : vector<8x384xf32>
    %85 = arith.addf %62, %84 : vector<8x384xf32>
    %86 = vector.broadcast %82 : f32 to vector<8x384xf32>
    %87 = arith.mulf %86, %64 : vector<8x384xf32>
    %88 = arith.addf %85, %87 : vector<8x384xf32>
    %c348_i32 = arith.constant 348 : i32
    %89 = tpu.dynamic_rotate %36 by %c348_i32 dim 1 : vector<8x384xf32>, i32 -> vector<8x384xf32>
    %c348_i32_15 = arith.constant 348 : i32
    %90 = tpu.dynamic_rotate %38 by %c348_i32_15 dim 1 : vector<8x384xf32>, i32 -> vector<8x384xf32>
    %c18 = arith.constant 18 : index
    %91 = memref.load %arg0[%c18] : memref<110xf32, #tpu.memory_space<smem>>
    %c45 = arith.constant 45 : index
    %92 = memref.load %arg0[%c45] : memref<110xf32, #tpu.memory_space<smem>>
    %93 = vector.broadcast %91 : f32 to vector<8x384xf32>
    %94 = arith.mulf %93, %89 : vector<8x384xf32>
    %95 = arith.addf %72, %94 : vector<8x384xf32>
    %96 = vector.broadcast %92 : f32 to vector<8x384xf32>
    %97 = arith.mulf %96, %90 : vector<8x384xf32>
    %98 = arith.addf %95, %97 : vector<8x384xf32>
    %c21 = arith.constant 21 : index
    %99 = memref.load %arg0[%c21] : memref<110xf32, #tpu.memory_space<smem>>
    %c48 = arith.constant 48 : index
    %100 = memref.load %arg0[%c48] : memref<110xf32, #tpu.memory_space<smem>>
    %101 = vector.broadcast %99 : f32 to vector<8x384xf32>
    %102 = arith.mulf %101, %89 : vector<8x384xf32>
    %103 = arith.addf %80, %102 : vector<8x384xf32>
    %104 = vector.broadcast %100 : f32 to vector<8x384xf32>
    %105 = arith.mulf %104, %90 : vector<8x384xf32>
    %106 = arith.addf %103, %105 : vector<8x384xf32>
    %c24 = arith.constant 24 : index
    %107 = memref.load %arg0[%c24] : memref<110xf32, #tpu.memory_space<smem>>
    %c51 = arith.constant 51 : index
    %108 = memref.load %arg0[%c51] : memref<110xf32, #tpu.memory_space<smem>>
    %109 = vector.broadcast %107 : f32 to vector<8x384xf32>
    %110 = arith.mulf %109, %89 : vector<8x384xf32>
    %111 = arith.addf %88, %110 : vector<8x384xf32>
    %112 = vector.broadcast %108 : f32 to vector<8x384xf32>
    %113 = arith.mulf %112, %90 : vector<8x384xf32>
    %114 = arith.addf %111, %113 : vector<8x384xf32>
    %c4_i32_16 = arith.constant 4 : i32
    %115 = tpu.dynamic_rotate %34 by %c4_i32_16 dim 0 : vector<8x384xf32>, i32 -> vector<8x384xf32>
    %116 = arith.mulf %5, %115 : vector<8x384xf32>
    %c1 = arith.constant 1 : index
    %117 = memref.load %arg0[%c1] : memref<110xf32, #tpu.memory_space<smem>>
    %c28 = arith.constant 28 : index
    %118 = memref.load %arg0[%c28] : memref<110xf32, #tpu.memory_space<smem>>
    %119 = vector.broadcast %117 : f32 to vector<8x384xf32>
    %120 = arith.mulf %119, %34 : vector<8x384xf32>
    %121 = arith.addf %98, %120 : vector<8x384xf32>
    %122 = vector.broadcast %118 : f32 to vector<8x384xf32>
    %123 = arith.mulf %122, %116 : vector<8x384xf32>
    %124 = arith.addf %121, %123 : vector<8x384xf32>
    %c4 = arith.constant 4 : index
    %125 = memref.load %arg0[%c4] : memref<110xf32, #tpu.memory_space<smem>>
    %c31 = arith.constant 31 : index
    %126 = memref.load %arg0[%c31] : memref<110xf32, #tpu.memory_space<smem>>
    %127 = vector.broadcast %125 : f32 to vector<8x384xf32>
    %128 = arith.mulf %127, %34 : vector<8x384xf32>
    %129 = arith.addf %106, %128 : vector<8x384xf32>
    %130 = vector.broadcast %126 : f32 to vector<8x384xf32>
    %131 = arith.mulf %130, %116 : vector<8x384xf32>
    %132 = arith.addf %129, %131 : vector<8x384xf32>
    %c7 = arith.constant 7 : index
    %133 = memref.load %arg0[%c7] : memref<110xf32, #tpu.memory_space<smem>>
    %c34 = arith.constant 34 : index
    %134 = memref.load %arg0[%c34] : memref<110xf32, #tpu.memory_space<smem>>
    %135 = vector.broadcast %133 : f32 to vector<8x384xf32>
    %136 = arith.mulf %135, %34 : vector<8x384xf32>
    %137 = arith.addf %114, %136 : vector<8x384xf32>
    %138 = vector.broadcast %134 : f32 to vector<8x384xf32>
    %139 = arith.mulf %138, %116 : vector<8x384xf32>
    %140 = arith.addf %137, %139 : vector<8x384xf32>
    %c366_i32_17 = arith.constant 366 : i32
    %141 = tpu.dynamic_rotate %34 by %c366_i32_17 dim 1 : vector<8x384xf32>, i32 -> vector<8x384xf32>
    %c366_i32_18 = arith.constant 366 : i32
    %142 = tpu.dynamic_rotate %116 by %c366_i32_18 dim 1 : vector<8x384xf32>, i32 -> vector<8x384xf32>
    %c10 = arith.constant 10 : index
    %143 = memref.load %arg0[%c10] : memref<110xf32, #tpu.memory_space<smem>>
    %c37 = arith.constant 37 : index
    %144 = memref.load %arg0[%c37] : memref<110xf32, #tpu.memory_space<smem>>
    %145 = vector.broadcast %143 : f32 to vector<8x384xf32>
    %146 = arith.mulf %145, %141 : vector<8x384xf32>
    %147 = arith.addf %124, %146 : vector<8x384xf32>
    %148 = vector.broadcast %144 : f32 to vector<8x384xf32>
    %149 = arith.mulf %148, %142 : vector<8x384xf32>
    %150 = arith.addf %147, %149 : vector<8x384xf32>
    %c13 = arith.constant 13 : index
    %151 = memref.load %arg0[%c13] : memref<110xf32, #tpu.memory_space<smem>>
    %c40 = arith.constant 40 : index
    %152 = memref.load %arg0[%c40] : memref<110xf32, #tpu.memory_space<smem>>
    %153 = vector.broadcast %151 : f32 to vector<8x384xf32>
    %154 = arith.mulf %153, %141 : vector<8x384xf32>
    %155 = arith.addf %132, %154 : vector<8x384xf32>
    %156 = vector.broadcast %152 : f32 to vector<8x384xf32>
    %157 = arith.mulf %156, %142 : vector<8x384xf32>
    %158 = arith.addf %155, %157 : vector<8x384xf32>
    %c16 = arith.constant 16 : index
    %159 = memref.load %arg0[%c16] : memref<110xf32, #tpu.memory_space<smem>>
    %c43 = arith.constant 43 : index
    %160 = memref.load %arg0[%c43] : memref<110xf32, #tpu.memory_space<smem>>
    %161 = vector.broadcast %159 : f32 to vector<8x384xf32>
    %162 = arith.mulf %161, %141 : vector<8x384xf32>
    %163 = arith.addf %140, %162 : vector<8x384xf32>
    %164 = vector.broadcast %160 : f32 to vector<8x384xf32>
    %165 = arith.mulf %164, %142 : vector<8x384xf32>
    %166 = arith.addf %163, %165 : vector<8x384xf32>
    %c348_i32_19 = arith.constant 348 : i32
    %167 = tpu.dynamic_rotate %34 by %c348_i32_19 dim 1 : vector<8x384xf32>, i32 -> vector<8x384xf32>
    %c348_i32_20 = arith.constant 348 : i32
    %168 = tpu.dynamic_rotate %116 by %c348_i32_20 dim 1 : vector<8x384xf32>, i32 -> vector<8x384xf32>
    %c19 = arith.constant 19 : index
    %169 = memref.load %arg0[%c19] : memref<110xf32, #tpu.memory_space<smem>>
    %c46 = arith.constant 46 : index
    %170 = memref.load %arg0[%c46] : memref<110xf32, #tpu.memory_space<smem>>
    %171 = vector.broadcast %169 : f32 to vector<8x384xf32>
    %172 = arith.mulf %171, %167 : vector<8x384xf32>
    %173 = arith.addf %150, %172 : vector<8x384xf32>
    %174 = vector.broadcast %170 : f32 to vector<8x384xf32>
    %175 = arith.mulf %174, %168 : vector<8x384xf32>
    %176 = arith.addf %173, %175 : vector<8x384xf32>
    %c22 = arith.constant 22 : index
    %177 = memref.load %arg0[%c22] : memref<110xf32, #tpu.memory_space<smem>>
    %c49 = arith.constant 49 : index
    %178 = memref.load %arg0[%c49] : memref<110xf32, #tpu.memory_space<smem>>
    %179 = vector.broadcast %177 : f32 to vector<8x384xf32>
    %180 = arith.mulf %179, %167 : vector<8x384xf32>
    %181 = arith.addf %158, %180 : vector<8x384xf32>
    %182 = vector.broadcast %178 : f32 to vector<8x384xf32>
    %183 = arith.mulf %182, %168 : vector<8x384xf32>
    %184 = arith.addf %181, %183 : vector<8x384xf32>
    %c25 = arith.constant 25 : index
    %185 = memref.load %arg0[%c25] : memref<110xf32, #tpu.memory_space<smem>>
    %c52 = arith.constant 52 : index
    %186 = memref.load %arg0[%c52] : memref<110xf32, #tpu.memory_space<smem>>
    %187 = vector.broadcast %185 : f32 to vector<8x384xf32>
    %188 = arith.mulf %187, %167 : vector<8x384xf32>
    %189 = arith.addf %166, %188 : vector<8x384xf32>
    %190 = vector.broadcast %186 : f32 to vector<8x384xf32>
    %191 = arith.mulf %190, %168 : vector<8x384xf32>
    %192 = arith.addf %189, %191 : vector<8x384xf32>
    %c7_i32 = arith.constant 7 : i32
    %193 = tpu.dynamic_rotate %34 by %c7_i32 dim 0 : vector<8x384xf32>, i32 -> vector<8x384xf32>
    %194 = arith.mulf %193, %30 : vector<8x384xf32>
    %c4_i32_21 = arith.constant 4 : i32
    %195 = tpu.dynamic_rotate %194 by %c4_i32_21 dim 0 : vector<8x384xf32>, i32 -> vector<8x384xf32>
    %196 = arith.mulf %5, %195 : vector<8x384xf32>
    %c2 = arith.constant 2 : index
    %197 = memref.load %arg0[%c2] : memref<110xf32, #tpu.memory_space<smem>>
    %c29 = arith.constant 29 : index
    %198 = memref.load %arg0[%c29] : memref<110xf32, #tpu.memory_space<smem>>
    %199 = vector.broadcast %197 : f32 to vector<8x384xf32>
    %200 = arith.mulf %199, %194 : vector<8x384xf32>
    %201 = arith.addf %176, %200 : vector<8x384xf32>
    %202 = vector.broadcast %198 : f32 to vector<8x384xf32>
    %203 = arith.mulf %202, %196 : vector<8x384xf32>
    %204 = arith.addf %201, %203 : vector<8x384xf32>
    %c5 = arith.constant 5 : index
    %205 = memref.load %arg0[%c5] : memref<110xf32, #tpu.memory_space<smem>>
    %c32 = arith.constant 32 : index
    %206 = memref.load %arg0[%c32] : memref<110xf32, #tpu.memory_space<smem>>
    %207 = vector.broadcast %205 : f32 to vector<8x384xf32>
    %208 = arith.mulf %207, %194 : vector<8x384xf32>
    %209 = arith.addf %184, %208 : vector<8x384xf32>
    %210 = vector.broadcast %206 : f32 to vector<8x384xf32>
    %211 = arith.mulf %210, %196 : vector<8x384xf32>
    %212 = arith.addf %209, %211 : vector<8x384xf32>
    %c8 = arith.constant 8 : index
    %213 = memref.load %arg0[%c8] : memref<110xf32, #tpu.memory_space<smem>>
    %c35 = arith.constant 35 : index
    %214 = memref.load %arg0[%c35] : memref<110xf32, #tpu.memory_space<smem>>
    %215 = vector.broadcast %213 : f32 to vector<8x384xf32>
    %216 = arith.mulf %215, %194 : vector<8x384xf32>
    %217 = arith.addf %192, %216 : vector<8x384xf32>
    %218 = vector.broadcast %214 : f32 to vector<8x384xf32>
    %219 = arith.mulf %218, %196 : vector<8x384xf32>
    %220 = arith.addf %217, %219 : vector<8x384xf32>
    %c366_i32_22 = arith.constant 366 : i32
    %221 = tpu.dynamic_rotate %194 by %c366_i32_22 dim 1 : vector<8x384xf32>, i32 -> vector<8x384xf32>
    %c366_i32_23 = arith.constant 366 : i32
    %222 = tpu.dynamic_rotate %196 by %c366_i32_23 dim 1 : vector<8x384xf32>, i32 -> vector<8x384xf32>
    %c11 = arith.constant 11 : index
    %223 = memref.load %arg0[%c11] : memref<110xf32, #tpu.memory_space<smem>>
    %c38 = arith.constant 38 : index
    %224 = memref.load %arg0[%c38] : memref<110xf32, #tpu.memory_space<smem>>
    %225 = vector.broadcast %223 : f32 to vector<8x384xf32>
    %226 = arith.mulf %225, %221 : vector<8x384xf32>
    %227 = arith.addf %204, %226 : vector<8x384xf32>
    %228 = vector.broadcast %224 : f32 to vector<8x384xf32>
    %229 = arith.mulf %228, %222 : vector<8x384xf32>
    %230 = arith.addf %227, %229 : vector<8x384xf32>
    %c14 = arith.constant 14 : index
    %231 = memref.load %arg0[%c14] : memref<110xf32, #tpu.memory_space<smem>>
    %c41 = arith.constant 41 : index
    %232 = memref.load %arg0[%c41] : memref<110xf32, #tpu.memory_space<smem>>
    %233 = vector.broadcast %231 : f32 to vector<8x384xf32>
    %234 = arith.mulf %233, %221 : vector<8x384xf32>
    %235 = arith.addf %212, %234 : vector<8x384xf32>
    %236 = vector.broadcast %232 : f32 to vector<8x384xf32>
    %237 = arith.mulf %236, %222 : vector<8x384xf32>
    %238 = arith.addf %235, %237 : vector<8x384xf32>
    %c17 = arith.constant 17 : index
    %239 = memref.load %arg0[%c17] : memref<110xf32, #tpu.memory_space<smem>>
    %c44 = arith.constant 44 : index
    %240 = memref.load %arg0[%c44] : memref<110xf32, #tpu.memory_space<smem>>
    %241 = vector.broadcast %239 : f32 to vector<8x384xf32>
    %242 = arith.mulf %241, %221 : vector<8x384xf32>
    %243 = arith.addf %220, %242 : vector<8x384xf32>
    %244 = vector.broadcast %240 : f32 to vector<8x384xf32>
    %245 = arith.mulf %244, %222 : vector<8x384xf32>
    %246 = arith.addf %243, %245 : vector<8x384xf32>
    %c348_i32_24 = arith.constant 348 : i32
    %247 = tpu.dynamic_rotate %194 by %c348_i32_24 dim 1 : vector<8x384xf32>, i32 -> vector<8x384xf32>
    %c348_i32_25 = arith.constant 348 : i32
    %248 = tpu.dynamic_rotate %196 by %c348_i32_25 dim 1 : vector<8x384xf32>, i32 -> vector<8x384xf32>
    %c20 = arith.constant 20 : index
    %249 = memref.load %arg0[%c20] : memref<110xf32, #tpu.memory_space<smem>>
    %c47 = arith.constant 47 : index
    %250 = memref.load %arg0[%c47] : memref<110xf32, #tpu.memory_space<smem>>
    %251 = vector.broadcast %249 : f32 to vector<8x384xf32>
    %252 = arith.mulf %251, %247 : vector<8x384xf32>
    %253 = arith.addf %230, %252 : vector<8x384xf32>
    %254 = vector.broadcast %250 : f32 to vector<8x384xf32>
    %255 = arith.mulf %254, %248 : vector<8x384xf32>
    %256 = arith.addf %253, %255 : vector<8x384xf32>
    %c23 = arith.constant 23 : index
    %257 = memref.load %arg0[%c23] : memref<110xf32, #tpu.memory_space<smem>>
    %c50 = arith.constant 50 : index
    %258 = memref.load %arg0[%c50] : memref<110xf32, #tpu.memory_space<smem>>
    %259 = vector.broadcast %257 : f32 to vector<8x384xf32>
    %260 = arith.mulf %259, %247 : vector<8x384xf32>
    %261 = arith.addf %238, %260 : vector<8x384xf32>
    %262 = vector.broadcast %258 : f32 to vector<8x384xf32>
    %263 = arith.mulf %262, %248 : vector<8x384xf32>
    %264 = arith.addf %261, %263 : vector<8x384xf32>
    %c26 = arith.constant 26 : index
    %265 = memref.load %arg0[%c26] : memref<110xf32, #tpu.memory_space<smem>>
    %c53 = arith.constant 53 : index
    %266 = memref.load %arg0[%c53] : memref<110xf32, #tpu.memory_space<smem>>
    %267 = vector.broadcast %265 : f32 to vector<8x384xf32>
    %268 = arith.mulf %267, %247 : vector<8x384xf32>
    %269 = arith.addf %246, %268 : vector<8x384xf32>
    %270 = vector.broadcast %266 : f32 to vector<8x384xf32>
    %271 = arith.mulf %270, %248 : vector<8x384xf32>
    %272 = arith.addf %269, %271 : vector<8x384xf32>
    %c0_26 = arith.constant 0 : index
    %c0_27 = arith.constant 0 : index
    %273 = vector.load %arg2[%c0_26, %c0_27] : memref<8x384xf32, #tpu.memory_space<vmem>>, vector<8x384xf32>
    %c1_i32_28 = arith.constant 1 : i32
    %274 = tpu.dynamic_rotate %273 by %c1_i32_28 dim 0 : vector<8x384xf32>, i32 -> vector<8x384xf32>
    %275 = arith.mulf %274, %19 : vector<8x384xf32>
    %c4_i32_29 = arith.constant 4 : i32
    %276 = tpu.dynamic_rotate %275 by %c4_i32_29 dim 0 : vector<8x384xf32>, i32 -> vector<8x384xf32>
    %277 = arith.mulf %5, %276 : vector<8x384xf32>
    %c54 = arith.constant 54 : index
    %278 = memref.load %arg0[%c54] : memref<110xf32, #tpu.memory_space<smem>>
    %c81 = arith.constant 81 : index
    %279 = memref.load %arg0[%c81] : memref<110xf32, #tpu.memory_space<smem>>
    %280 = vector.broadcast %278 : f32 to vector<8x384xf32>
    %281 = arith.mulf %280, %275 : vector<8x384xf32>
    %282 = arith.addf %256, %281 : vector<8x384xf32>
    %283 = vector.broadcast %279 : f32 to vector<8x384xf32>
    %284 = arith.mulf %283, %277 : vector<8x384xf32>
    %285 = arith.addf %282, %284 : vector<8x384xf32>
    %c57 = arith.constant 57 : index
    %286 = memref.load %arg0[%c57] : memref<110xf32, #tpu.memory_space<smem>>
    %c84 = arith.constant 84 : index
    %287 = memref.load %arg0[%c84] : memref<110xf32, #tpu.memory_space<smem>>
    %288 = vector.broadcast %286 : f32 to vector<8x384xf32>
    %289 = arith.mulf %288, %275 : vector<8x384xf32>
    %290 = arith.addf %264, %289 : vector<8x384xf32>
    %291 = vector.broadcast %287 : f32 to vector<8x384xf32>
    %292 = arith.mulf %291, %277 : vector<8x384xf32>
    %293 = arith.addf %290, %292 : vector<8x384xf32>
    %c60 = arith.constant 60 : index
    %294 = memref.load %arg0[%c60] : memref<110xf32, #tpu.memory_space<smem>>
    %c87 = arith.constant 87 : index
    %295 = memref.load %arg0[%c87] : memref<110xf32, #tpu.memory_space<smem>>
    %296 = vector.broadcast %294 : f32 to vector<8x384xf32>
    %297 = arith.mulf %296, %275 : vector<8x384xf32>
    %298 = arith.addf %272, %297 : vector<8x384xf32>
    %299 = vector.broadcast %295 : f32 to vector<8x384xf32>
    %300 = arith.mulf %299, %277 : vector<8x384xf32>
    %301 = arith.addf %298, %300 : vector<8x384xf32>
    %c366_i32_30 = arith.constant 366 : i32
    %302 = tpu.dynamic_rotate %275 by %c366_i32_30 dim 1 : vector<8x384xf32>, i32 -> vector<8x384xf32>
    %c366_i32_31 = arith.constant 366 : i32
    %303 = tpu.dynamic_rotate %277 by %c366_i32_31 dim 1 : vector<8x384xf32>, i32 -> vector<8x384xf32>
    %c63 = arith.constant 63 : index
    %304 = memref.load %arg0[%c63] : memref<110xf32, #tpu.memory_space<smem>>
    %c90 = arith.constant 90 : index
    %305 = memref.load %arg0[%c90] : memref<110xf32, #tpu.memory_space<smem>>
    %306 = vector.broadcast %304 : f32 to vector<8x384xf32>
    %307 = arith.mulf %306, %302 : vector<8x384xf32>
    %308 = arith.addf %285, %307 : vector<8x384xf32>
    %309 = vector.broadcast %305 : f32 to vector<8x384xf32>
    %310 = arith.mulf %309, %303 : vector<8x384xf32>
    %311 = arith.addf %308, %310 : vector<8x384xf32>
    %c66 = arith.constant 66 : index
    %312 = memref.load %arg0[%c66] : memref<110xf32, #tpu.memory_space<smem>>
    %c93 = arith.constant 93 : index
    %313 = memref.load %arg0[%c93] : memref<110xf32, #tpu.memory_space<smem>>
    %314 = vector.broadcast %312 : f32 to vector<8x384xf32>
    %315 = arith.mulf %314, %302 : vector<8x384xf32>
    %316 = arith.addf %293, %315 : vector<8x384xf32>
    %317 = vector.broadcast %313 : f32 to vector<8x384xf32>
    %318 = arith.mulf %317, %303 : vector<8x384xf32>
    %319 = arith.addf %316, %318 : vector<8x384xf32>
    %c69 = arith.constant 69 : index
    %320 = memref.load %arg0[%c69] : memref<110xf32, #tpu.memory_space<smem>>
    %c96 = arith.constant 96 : index
    %321 = memref.load %arg0[%c96] : memref<110xf32, #tpu.memory_space<smem>>
    %322 = vector.broadcast %320 : f32 to vector<8x384xf32>
    %323 = arith.mulf %322, %302 : vector<8x384xf32>
    %324 = arith.addf %301, %323 : vector<8x384xf32>
    %325 = vector.broadcast %321 : f32 to vector<8x384xf32>
    %326 = arith.mulf %325, %303 : vector<8x384xf32>
    %327 = arith.addf %324, %326 : vector<8x384xf32>
    %c348_i32_32 = arith.constant 348 : i32
    %328 = tpu.dynamic_rotate %275 by %c348_i32_32 dim 1 : vector<8x384xf32>, i32 -> vector<8x384xf32>
    %c348_i32_33 = arith.constant 348 : i32
    %329 = tpu.dynamic_rotate %277 by %c348_i32_33 dim 1 : vector<8x384xf32>, i32 -> vector<8x384xf32>
    %c72 = arith.constant 72 : index
    %330 = memref.load %arg0[%c72] : memref<110xf32, #tpu.memory_space<smem>>
    %c99 = arith.constant 99 : index
    %331 = memref.load %arg0[%c99] : memref<110xf32, #tpu.memory_space<smem>>
    %332 = vector.broadcast %330 : f32 to vector<8x384xf32>
    %333 = arith.mulf %332, %328 : vector<8x384xf32>
    %334 = arith.addf %311, %333 : vector<8x384xf32>
    %335 = vector.broadcast %331 : f32 to vector<8x384xf32>
    %336 = arith.mulf %335, %329 : vector<8x384xf32>
    %337 = arith.addf %334, %336 : vector<8x384xf32>
    %c75 = arith.constant 75 : index
    %338 = memref.load %arg0[%c75] : memref<110xf32, #tpu.memory_space<smem>>
    %c102 = arith.constant 102 : index
    %339 = memref.load %arg0[%c102] : memref<110xf32, #tpu.memory_space<smem>>
    %340 = vector.broadcast %338 : f32 to vector<8x384xf32>
    %341 = arith.mulf %340, %328 : vector<8x384xf32>
    %342 = arith.addf %319, %341 : vector<8x384xf32>
    %343 = vector.broadcast %339 : f32 to vector<8x384xf32>
    %344 = arith.mulf %343, %329 : vector<8x384xf32>
    %345 = arith.addf %342, %344 : vector<8x384xf32>
    %c78 = arith.constant 78 : index
    %346 = memref.load %arg0[%c78] : memref<110xf32, #tpu.memory_space<smem>>
    %c105 = arith.constant 105 : index
    %347 = memref.load %arg0[%c105] : memref<110xf32, #tpu.memory_space<smem>>
    %348 = vector.broadcast %346 : f32 to vector<8x384xf32>
    %349 = arith.mulf %348, %328 : vector<8x384xf32>
    %350 = arith.addf %327, %349 : vector<8x384xf32>
    %351 = vector.broadcast %347 : f32 to vector<8x384xf32>
    %352 = arith.mulf %351, %329 : vector<8x384xf32>
    %353 = arith.addf %350, %352 : vector<8x384xf32>
    %c4_i32_34 = arith.constant 4 : i32
    %354 = tpu.dynamic_rotate %273 by %c4_i32_34 dim 0 : vector<8x384xf32>, i32 -> vector<8x384xf32>
    %355 = arith.mulf %5, %354 : vector<8x384xf32>
    %c55 = arith.constant 55 : index
    %356 = memref.load %arg0[%c55] : memref<110xf32, #tpu.memory_space<smem>>
    %c82 = arith.constant 82 : index
    %357 = memref.load %arg0[%c82] : memref<110xf32, #tpu.memory_space<smem>>
    %358 = vector.broadcast %356 : f32 to vector<8x384xf32>
    %359 = arith.mulf %358, %273 : vector<8x384xf32>
    %360 = arith.addf %337, %359 : vector<8x384xf32>
    %361 = vector.broadcast %357 : f32 to vector<8x384xf32>
    %362 = arith.mulf %361, %355 : vector<8x384xf32>
    %363 = arith.addf %360, %362 : vector<8x384xf32>
    %c58 = arith.constant 58 : index
    %364 = memref.load %arg0[%c58] : memref<110xf32, #tpu.memory_space<smem>>
    %c85 = arith.constant 85 : index
    %365 = memref.load %arg0[%c85] : memref<110xf32, #tpu.memory_space<smem>>
    %366 = vector.broadcast %364 : f32 to vector<8x384xf32>
    %367 = arith.mulf %366, %273 : vector<8x384xf32>
    %368 = arith.addf %345, %367 : vector<8x384xf32>
    %369 = vector.broadcast %365 : f32 to vector<8x384xf32>
    %370 = arith.mulf %369, %355 : vector<8x384xf32>
    %371 = arith.addf %368, %370 : vector<8x384xf32>
    %c61 = arith.constant 61 : index
    %372 = memref.load %arg0[%c61] : memref<110xf32, #tpu.memory_space<smem>>
    %c88 = arith.constant 88 : index
    %373 = memref.load %arg0[%c88] : memref<110xf32, #tpu.memory_space<smem>>
    %374 = vector.broadcast %372 : f32 to vector<8x384xf32>
    %375 = arith.mulf %374, %273 : vector<8x384xf32>
    %376 = arith.addf %353, %375 : vector<8x384xf32>
    %377 = vector.broadcast %373 : f32 to vector<8x384xf32>
    %378 = arith.mulf %377, %355 : vector<8x384xf32>
    %379 = arith.addf %376, %378 : vector<8x384xf32>
    %c366_i32_35 = arith.constant 366 : i32
    %380 = tpu.dynamic_rotate %273 by %c366_i32_35 dim 1 : vector<8x384xf32>, i32 -> vector<8x384xf32>
    %c366_i32_36 = arith.constant 366 : i32
    %381 = tpu.dynamic_rotate %355 by %c366_i32_36 dim 1 : vector<8x384xf32>, i32 -> vector<8x384xf32>
    %c64 = arith.constant 64 : index
    %382 = memref.load %arg0[%c64] : memref<110xf32, #tpu.memory_space<smem>>
    %c91 = arith.constant 91 : index
    %383 = memref.load %arg0[%c91] : memref<110xf32, #tpu.memory_space<smem>>
    %384 = vector.broadcast %382 : f32 to vector<8x384xf32>
    %385 = arith.mulf %384, %380 : vector<8x384xf32>
    %386 = arith.addf %363, %385 : vector<8x384xf32>
    %387 = vector.broadcast %383 : f32 to vector<8x384xf32>
    %388 = arith.mulf %387, %381 : vector<8x384xf32>
    %389 = arith.addf %386, %388 : vector<8x384xf32>
    %c67 = arith.constant 67 : index
    %390 = memref.load %arg0[%c67] : memref<110xf32, #tpu.memory_space<smem>>
    %c94 = arith.constant 94 : index
    %391 = memref.load %arg0[%c94] : memref<110xf32, #tpu.memory_space<smem>>
    %392 = vector.broadcast %390 : f32 to vector<8x384xf32>
    %393 = arith.mulf %392, %380 : vector<8x384xf32>
    %394 = arith.addf %371, %393 : vector<8x384xf32>
    %395 = vector.broadcast %391 : f32 to vector<8x384xf32>
    %396 = arith.mulf %395, %381 : vector<8x384xf32>
    %397 = arith.addf %394, %396 : vector<8x384xf32>
    %c70 = arith.constant 70 : index
    %398 = memref.load %arg0[%c70] : memref<110xf32, #tpu.memory_space<smem>>
    %c97 = arith.constant 97 : index
    %399 = memref.load %arg0[%c97] : memref<110xf32, #tpu.memory_space<smem>>
    %400 = vector.broadcast %398 : f32 to vector<8x384xf32>
    %401 = arith.mulf %400, %380 : vector<8x384xf32>
    %402 = arith.addf %379, %401 : vector<8x384xf32>
    %403 = vector.broadcast %399 : f32 to vector<8x384xf32>
    %404 = arith.mulf %403, %381 : vector<8x384xf32>
    %405 = arith.addf %402, %404 : vector<8x384xf32>
    %c348_i32_37 = arith.constant 348 : i32
    %406 = tpu.dynamic_rotate %273 by %c348_i32_37 dim 1 : vector<8x384xf32>, i32 -> vector<8x384xf32>
    %c348_i32_38 = arith.constant 348 : i32
    %407 = tpu.dynamic_rotate %355 by %c348_i32_38 dim 1 : vector<8x384xf32>, i32 -> vector<8x384xf32>
    %c73 = arith.constant 73 : index
    %408 = memref.load %arg0[%c73] : memref<110xf32, #tpu.memory_space<smem>>
    %c100 = arith.constant 100 : index
    %409 = memref.load %arg0[%c100] : memref<110xf32, #tpu.memory_space<smem>>
    %410 = vector.broadcast %408 : f32 to vector<8x384xf32>
    %411 = arith.mulf %410, %406 : vector<8x384xf32>
    %412 = arith.addf %389, %411 : vector<8x384xf32>
    %413 = vector.broadcast %409 : f32 to vector<8x384xf32>
    %414 = arith.mulf %413, %407 : vector<8x384xf32>
    %415 = arith.addf %412, %414 : vector<8x384xf32>
    %c76 = arith.constant 76 : index
    %416 = memref.load %arg0[%c76] : memref<110xf32, #tpu.memory_space<smem>>
    %c103 = arith.constant 103 : index
    %417 = memref.load %arg0[%c103] : memref<110xf32, #tpu.memory_space<smem>>
    %418 = vector.broadcast %416 : f32 to vector<8x384xf32>
    %419 = arith.mulf %418, %406 : vector<8x384xf32>
    %420 = arith.addf %397, %419 : vector<8x384xf32>
    %421 = vector.broadcast %417 : f32 to vector<8x384xf32>
    %422 = arith.mulf %421, %407 : vector<8x384xf32>
    %423 = arith.addf %420, %422 : vector<8x384xf32>
    %c79 = arith.constant 79 : index
    %424 = memref.load %arg0[%c79] : memref<110xf32, #tpu.memory_space<smem>>
    %c106 = arith.constant 106 : index
    %425 = memref.load %arg0[%c106] : memref<110xf32, #tpu.memory_space<smem>>
    %426 = vector.broadcast %424 : f32 to vector<8x384xf32>
    %427 = arith.mulf %426, %406 : vector<8x384xf32>
    %428 = arith.addf %405, %427 : vector<8x384xf32>
    %429 = vector.broadcast %425 : f32 to vector<8x384xf32>
    %430 = arith.mulf %429, %407 : vector<8x384xf32>
    %431 = arith.addf %428, %430 : vector<8x384xf32>
    %c7_i32_39 = arith.constant 7 : i32
    %432 = tpu.dynamic_rotate %273 by %c7_i32_39 dim 0 : vector<8x384xf32>, i32 -> vector<8x384xf32>
    %433 = arith.mulf %432, %30 : vector<8x384xf32>
    %c4_i32_40 = arith.constant 4 : i32
    %434 = tpu.dynamic_rotate %433 by %c4_i32_40 dim 0 : vector<8x384xf32>, i32 -> vector<8x384xf32>
    %435 = arith.mulf %5, %434 : vector<8x384xf32>
    %c56 = arith.constant 56 : index
    %436 = memref.load %arg0[%c56] : memref<110xf32, #tpu.memory_space<smem>>
    %c83 = arith.constant 83 : index
    %437 = memref.load %arg0[%c83] : memref<110xf32, #tpu.memory_space<smem>>
    %438 = vector.broadcast %436 : f32 to vector<8x384xf32>
    %439 = arith.mulf %438, %433 : vector<8x384xf32>
    %440 = arith.addf %415, %439 : vector<8x384xf32>
    %441 = vector.broadcast %437 : f32 to vector<8x384xf32>
    %442 = arith.mulf %441, %435 : vector<8x384xf32>
    %443 = arith.addf %440, %442 : vector<8x384xf32>
    %c59 = arith.constant 59 : index
    %444 = memref.load %arg0[%c59] : memref<110xf32, #tpu.memory_space<smem>>
    %c86 = arith.constant 86 : index
    %445 = memref.load %arg0[%c86] : memref<110xf32, #tpu.memory_space<smem>>
    %446 = vector.broadcast %444 : f32 to vector<8x384xf32>
    %447 = arith.mulf %446, %433 : vector<8x384xf32>
    %448 = arith.addf %423, %447 : vector<8x384xf32>
    %449 = vector.broadcast %445 : f32 to vector<8x384xf32>
    %450 = arith.mulf %449, %435 : vector<8x384xf32>
    %451 = arith.addf %448, %450 : vector<8x384xf32>
    %c62 = arith.constant 62 : index
    %452 = memref.load %arg0[%c62] : memref<110xf32, #tpu.memory_space<smem>>
    %c89 = arith.constant 89 : index
    %453 = memref.load %arg0[%c89] : memref<110xf32, #tpu.memory_space<smem>>
    %454 = vector.broadcast %452 : f32 to vector<8x384xf32>
    %455 = arith.mulf %454, %433 : vector<8x384xf32>
    %456 = arith.addf %431, %455 : vector<8x384xf32>
    %457 = vector.broadcast %453 : f32 to vector<8x384xf32>
    %458 = arith.mulf %457, %435 : vector<8x384xf32>
    %459 = arith.addf %456, %458 : vector<8x384xf32>
    %c366_i32_41 = arith.constant 366 : i32
    %460 = tpu.dynamic_rotate %433 by %c366_i32_41 dim 1 : vector<8x384xf32>, i32 -> vector<8x384xf32>
    %c366_i32_42 = arith.constant 366 : i32
    %461 = tpu.dynamic_rotate %435 by %c366_i32_42 dim 1 : vector<8x384xf32>, i32 -> vector<8x384xf32>
    %c65 = arith.constant 65 : index
    %462 = memref.load %arg0[%c65] : memref<110xf32, #tpu.memory_space<smem>>
    %c92 = arith.constant 92 : index
    %463 = memref.load %arg0[%c92] : memref<110xf32, #tpu.memory_space<smem>>
    %464 = vector.broadcast %462 : f32 to vector<8x384xf32>
    %465 = arith.mulf %464, %460 : vector<8x384xf32>
    %466 = arith.addf %443, %465 : vector<8x384xf32>
    %467 = vector.broadcast %463 : f32 to vector<8x384xf32>
    %468 = arith.mulf %467, %461 : vector<8x384xf32>
    %469 = arith.addf %466, %468 : vector<8x384xf32>
    %c68 = arith.constant 68 : index
    %470 = memref.load %arg0[%c68] : memref<110xf32, #tpu.memory_space<smem>>
    %c95 = arith.constant 95 : index
    %471 = memref.load %arg0[%c95] : memref<110xf32, #tpu.memory_space<smem>>
    %472 = vector.broadcast %470 : f32 to vector<8x384xf32>
    %473 = arith.mulf %472, %460 : vector<8x384xf32>
    %474 = arith.addf %451, %473 : vector<8x384xf32>
    %475 = vector.broadcast %471 : f32 to vector<8x384xf32>
    %476 = arith.mulf %475, %461 : vector<8x384xf32>
    %477 = arith.addf %474, %476 : vector<8x384xf32>
    %c71 = arith.constant 71 : index
    %478 = memref.load %arg0[%c71] : memref<110xf32, #tpu.memory_space<smem>>
    %c98 = arith.constant 98 : index
    %479 = memref.load %arg0[%c98] : memref<110xf32, #tpu.memory_space<smem>>
    %480 = vector.broadcast %478 : f32 to vector<8x384xf32>
    %481 = arith.mulf %480, %460 : vector<8x384xf32>
    %482 = arith.addf %459, %481 : vector<8x384xf32>
    %483 = vector.broadcast %479 : f32 to vector<8x384xf32>
    %484 = arith.mulf %483, %461 : vector<8x384xf32>
    %485 = arith.addf %482, %484 : vector<8x384xf32>
    %c348_i32_43 = arith.constant 348 : i32
    %486 = tpu.dynamic_rotate %433 by %c348_i32_43 dim 1 : vector<8x384xf32>, i32 -> vector<8x384xf32>
    %c348_i32_44 = arith.constant 348 : i32
    %487 = tpu.dynamic_rotate %435 by %c348_i32_44 dim 1 : vector<8x384xf32>, i32 -> vector<8x384xf32>
    %c74 = arith.constant 74 : index
    %488 = memref.load %arg0[%c74] : memref<110xf32, #tpu.memory_space<smem>>
    %c101 = arith.constant 101 : index
    %489 = memref.load %arg0[%c101] : memref<110xf32, #tpu.memory_space<smem>>
    %490 = vector.broadcast %488 : f32 to vector<8x384xf32>
    %491 = arith.mulf %490, %486 : vector<8x384xf32>
    %492 = arith.addf %469, %491 : vector<8x384xf32>
    %493 = vector.broadcast %489 : f32 to vector<8x384xf32>
    %494 = arith.mulf %493, %487 : vector<8x384xf32>
    %495 = arith.addf %492, %494 : vector<8x384xf32>
    %c77 = arith.constant 77 : index
    %496 = memref.load %arg0[%c77] : memref<110xf32, #tpu.memory_space<smem>>
    %c104 = arith.constant 104 : index
    %497 = memref.load %arg0[%c104] : memref<110xf32, #tpu.memory_space<smem>>
    %498 = vector.broadcast %496 : f32 to vector<8x384xf32>
    %499 = arith.mulf %498, %486 : vector<8x384xf32>
    %500 = arith.addf %477, %499 : vector<8x384xf32>
    %501 = vector.broadcast %497 : f32 to vector<8x384xf32>
    %502 = arith.mulf %501, %487 : vector<8x384xf32>
    %503 = arith.addf %500, %502 : vector<8x384xf32>
    %c80 = arith.constant 80 : index
    %504 = memref.load %arg0[%c80] : memref<110xf32, #tpu.memory_space<smem>>
    %c107 = arith.constant 107 : index
    %505 = memref.load %arg0[%c107] : memref<110xf32, #tpu.memory_space<smem>>
    %506 = vector.broadcast %504 : f32 to vector<8x384xf32>
    %507 = arith.mulf %506, %486 : vector<8x384xf32>
    %508 = arith.addf %485, %507 : vector<8x384xf32>
    %509 = vector.broadcast %505 : f32 to vector<8x384xf32>
    %510 = arith.mulf %509, %487 : vector<8x384xf32>
    %511 = arith.addf %508, %510 : vector<8x384xf32>
    %c383_i32 = arith.constant 383 : i32
    %512 = tpu.dynamic_rotate %503 by %c383_i32 dim 1 : vector<8x384xf32>, i32 -> vector<8x384xf32>
    %513 = arith.addf %495, %512 : vector<8x384xf32>
    %c382_i32 = arith.constant 382 : i32
    %514 = tpu.dynamic_rotate %511 by %c382_i32 dim 1 : vector<8x384xf32>, i32 -> vector<8x384xf32>
    %515 = arith.addf %513, %514 : vector<8x384xf32>
    %c108 = arith.constant 108 : index
    %516 = memref.load %arg0[%c108] : memref<110xf32, #tpu.memory_space<smem>>
    %c109 = arith.constant 109 : index
    %517 = memref.load %arg0[%c109] : memref<110xf32, #tpu.memory_space<smem>>
    %518 = vector.broadcast %516 : f32 to vector<8x384xf32>
    %519 = vector.broadcast %517 : f32 to vector<8x384xf32>
    %520 = arith.select %2, %518, %519 : vector<8x384xi1>, vector<8x384xf32>
    %c19_i32 = arith.constant 19 : i32
    %521 = tpu.dynamic_rotate %515 by %c19_i32 dim 1 : vector<8x384xf32>, i32 -> vector<8x384xf32>
    %522 = arith.addf %521, %520 : vector<8x384xf32>
    %c0_45 = arith.constant 0 : index
    %c0_46 = arith.constant 0 : index
    %523 = vector.load %arg3[%c0_45, %c0_46] : memref<1x384xf32, #tpu.memory_space<vmem>>, vector<1x384xf32>
    %524 = vector.broadcast %523 : vector<1x384xf32> to vector<8x384xf32>
    %525 = arith.mulf %522, %524 : vector<8x384xf32>
    %c0_47 = arith.constant 0 : index
    %c0_48 = arith.constant 0 : index
    %526 = vector.load %arg4[%c0_47, %c0_48] : memref<8x384xf32, #tpu.memory_space<vmem>>, vector<8x384xf32>
    tpu.vector_store %arg4[%c0_47, %c0_48], %525 {strides = array<i32>} : memref<8x384xf32, #tpu.memory_space<vmem>>, vector<8x384xf32>,
    %cst_49 = arith.constant dense<0.000000e+00> : vector<8x8xf32>
    %527 = tpu.matmul %525, %525, %cst_49 {dimension_numbers = #tpu.dot_dimension_numbers<[1], [1], [0], [0], [0, 0, 1, 0], [], []>} : vector<8x384xf32>, vector<8x384xf32>, vector<8x8xf32> -> vector<8x8xf32>
    %c0_50 = arith.constant 0 : index
    %c0_51 = arith.constant 0 : index
    %528 = vector.load %arg5[%c0_50, %c0_51] : memref<8x8xf32, #tpu.memory_space<vmem>>, vector<8x8xf32>
    tpu.vector_store %arg5[%c0_50, %c0_51], %527 {strides = array<i32>} : memref<8x8xf32, #tpu.memory_space<vmem>>, vector<8x8xf32>,
    return
  }
}

module attributes {stable_mosaic.version = 11 : i64} {
  func.func @svt_recon_kernel(%arg0: memref<1xf32, #tpu.memory_space<smem>>, %arg1: memref<1x8xf32, #tpu.memory_space<vmem>>, %arg2: memref<8x8xf32, #tpu.memory_space<vmem>>, %arg3: memref<8x384xf32, #tpu.memory_space<vmem>>, %arg4: memref<8x384xf32, #tpu.memory_space<vmem>>) attributes {dimension_semantics = [], scalar_prefetch = 0 : i64, scratch_operands = 0 : i64, tpu.core_type = #tpu.core_type<tc>} {
    %c0 = arith.constant 0 : index
    %c0_0 = arith.constant 0 : index
    %0 = vector.load %arg1[%c0, %c0_0] : memref<1x8xf32, #tpu.memory_space<vmem>>, vector<1x8xf32>
    %cst = arith.constant 0.000000e+00 : f32
    %1 = vector.broadcast %cst : f32 to vector<1x8xf32>
    %2 = arith.maximumf %0, %1 : vector<1x8xf32>
    %3 = math.sqrt %2 : vector<1x8xf32>
    %cst_1 = arith.constant dense<0xFF800000> : vector<1xf32>
    %4 = vector.multi_reduction <maximumf>, %3, %cst_1 [1] : vector<1x8xf32> to vector<1xf32>
    %5 = vector.shape_cast %4 : vector<1xf32> to vector<1x1xf32>
    %c0_2 = arith.constant 0 : index
    %6 = memref.load %arg0[%c0_2] : memref<1xf32, #tpu.memory_space<smem>>
    %7 = vector.broadcast %6 : f32 to vector<1x1xf32>
    %8 = arith.mulf %7, %5 : vector<1x1xf32>
    %9 = vector.broadcast %8 : vector<1x1xf32> to vector<1x8xf32>
    %10 = arith.subf %3, %9 : vector<1x8xf32>
    %cst_3 = arith.constant 0.000000e+00 : f32
    %11 = vector.broadcast %cst_3 : f32 to vector<1x8xf32>
    %12 = arith.maximumf %10, %11 : vector<1x8xf32>
    %cst_4 = arith.constant 0.000000e+00 : f32
    %13 = vector.broadcast %cst_4 : f32 to vector<1x8xf32>
    %14 = arith.cmpf ogt, %3, %13 : vector<1x8xf32>
    %cst_5 = arith.constant 1.000000e-30 : f32
    %15 = vector.broadcast %cst_5 : f32 to vector<1x8xf32>
    %16 = arith.maximumf %3, %15 : vector<1x8xf32>
    %17 = arith.divf %12, %16 : vector<1x8xf32>
    %cst_6 = arith.constant 0.000000e+00 : f32
    %18 = vector.broadcast %cst_6 : f32 to vector<1x8xf32>
    %19 = arith.select %14, %17, %18 : vector<1x8xi1>, vector<1x8xf32>
    %c0_7 = arith.constant 0 : index
    %c0_8 = arith.constant 0 : index
    %20 = vector.load %arg2[%c0_7, %c0_8] : memref<8x8xf32, #tpu.memory_space<vmem>>, vector<8x8xf32>
    %21 = vector.broadcast %19 : vector<1x8xf32> to vector<8x8xf32>
    %22 = arith.mulf %20, %21 : vector<8x8xf32>
    %c0_9 = arith.constant 0 : index
    %c0_10 = arith.constant 0 : index
    %23 = vector.load %arg2[%c0_9, %c0_10] : memref<8x8xf32, #tpu.memory_space<vmem>>, vector<8x8xf32>
    %cst_11 = arith.constant dense<0.000000e+00> : vector<8x8xf32>
    %24 = tpu.matmul %22, %23, %cst_11 {dimension_numbers = #tpu.dot_dimension_numbers<[1], [1], [0], [0], [0, 0, 1, 0], [], []>} : vector<8x8xf32>, vector<8x8xf32>, vector<8x8xf32> -> vector<8x8xf32>
    %c0_12 = arith.constant 0 : index
    %c0_13 = arith.constant 0 : index
    %25 = vector.load %arg3[%c0_12, %c0_13] : memref<8x384xf32, #tpu.memory_space<vmem>>, vector<8x384xf32>
    %cst_14 = arith.constant dense<0.000000e+00> : vector<8x384xf32>
    %26 = tpu.matmul %24, %25, %cst_14 {dimension_numbers = #tpu.dot_dimension_numbers<[1], [0], [0], [1], [0, 0, 1, 1], [], []>} : vector<8x8xf32>, vector<8x384xf32>, vector<8x384xf32> -> vector<8x384xf32>
    %c0_15 = arith.constant 0 : index
    %c0_16 = arith.constant 0 : index
    %27 = vector.load %arg4[%c0_15, %c0_16] : memref<8x384xf32, #tpu.memory_space<vmem>>, vector<8x384xf32>
    tpu.vector_store %arg4[%c0_15, %c0_16], %26 {strides = array<i32>} : memref<8x384xf32, #tpu.memory_space<vmem>>, vector<8x384xf32>,
    return
  }
}

</mosaic_0001>

<bundles_post_ra>
// kernel: custom-call.3
= control target key start
LH: loop header
LB: loop body
LE: loop exit
PB: predicated region body
PF: predicated region fallthrough
CT: control target
= control target key end

     0   :  { %v268_v3 = vlaneseq  ;;  %v1713_v7 = vmov 0.0   ;;  %s257_s17 = smov [#allocation22]  ;;  %s260_s18 = smov [#allocation23]  ;;  %s1999_s0 = inlined_call_operand.vmem [shape: f32[4,4], index: 0, kind: input, shape index: {}]   ;;  %s2000_s1 = inlined_call_operand.vmem [shape: f32[4,4], index: 1, kind: input, shape index: {}]   ;;  %s2001_s2 = inlined_call_operand.vmem [shape: f32[4,4], index: 2, kind: input, shape index: {}]   ;;  %s2002_s3 = inlined_call_operand.vmem [shape: f32[4,4], index: 3, kind: input, shape index: {}]   ;;  %s2003_s4 = inlined_call_operand.vmem [shape: f32[4], index: 4, kind: output, shape index: {0}]   ;;  %s2004_s5 = inlined_call_operand.vmem [shape: f32[4], index: 5, kind: output, shape index: {1}]   ;;  %s2005_s6 = inlined_call_operand.vmem [shape: f32[4,4], index: 6, kind: output, shape index: {2}]   ;;  %s2006_s7 = inlined_call_operand.vmem [shape: f32[4,4], index: 7, kind: output, shape index: {3}]   ;;  %s2007_s8 = inlined_call_operand.vmem [shape: f32[4,4], index: 8, kind: output, shape index: {4}]   ;;  %s2008_s9 = inlined_call_operand.vmem [shape: f32[4,4], index: 9, kind: output, shape index: {5}]  }
   0x1   :  { %v65_v0 = vld [vmem:[%s1999_s0] sm:$0xf]  ;;  %263 = vst [vmem:[#allocation12] sm:$0xff] %v1713_v7  ;;  %s267_s0 = smov [#allocation12]  ;;  %s1411_s19 = smov [#allocation20] }
   0x2   :  { %v121_v1 = vld [vmem:[%s2000_s1] sm:$0xf]  ;;  %66 = vst [vmem:[#allocation1] sm:$0xf] %v65_v0  ;;  %v1778_v5 = vand.u32 127, %v268_v3  ;;  %v1780_v6 = vshrl.u32 %v268_v3, 7 }
   0x3   :  { %v177_v2 = vld [vmem:[%s2001_s2] sm:$0xf]  ;;  %122 = vst [vmem:[#allocation3] sm:$0xf] %v121_v1  ;;  %s280_s1 = smov [#allocation18]  ;;  %s251_s2 = smov [#allocation20] }
   0x4   :  { %v233_v4 = vld [vmem:[%s2002_s3] sm:$0xf]  ;;  %178 = vst [vmem:[#allocation5] sm:$0xf] %v177_v2  ;;  %v270_v5 = vmov %v1778_v5  ;;  %v273_v6 = vmov %v1780_v6  ;;  %s254_s3 = smov [#allocation21]  ;;  %vm1415_vm2 = vcmp.lt.s32.totalorder %v1778_v5, 4 }
   0x5   :  { %234 = vst [vmem:[#allocation7] sm:$0xf] %v233_v4  ;;  %vm277_vm0 = vcmp.eq.s32.totalorder %v273_v6, %v270_v5  ;;  %v283_v5 = vmov %v1778_v5  ;;  %v286_v6 = vmov %v1780_v6  ;;  %s1428_s20 = smov [#allocation21]  ;;  %s1445_s21 = smov [#allocation22] }
   0x6   :  { %264 = vst [vmem:[#allocation14] sm:$0xff] %v1713_v7  ;;  %vm290_vm1 = vcmp.eq.s32.totalorder %v286_v6, %v283_v5  ;;  %v1407_v5 = vmov %v1778_v5  ;;  %v1410_v6 = vmov %v1780_v6  ;;  %s1462_s22 = smov [#allocation23] }
   0x7   :  { %265 = vst [vmem:[#allocation16] sm:$0xff] %v1713_v7  ;;  %v1424_v5 = vmov %v1778_v5  ;;  %v1427_v6 = vmov %v1780_v6  ;;  %vm1420_vm3 = vcmp.eq.s32.totalorder %v1410_v6, %v1407_v5 }
   0x8   :  { %266 = vst [vmem:[#allocation18] sm:$0xff] %v1713_v7  ;;  %v274_v12 = vld [vmem:[%s267_s0] sm:$0xf]  ;;  %v1441_v5 = vmov %v1778_v5  ;;  %v1444_v6 = vmov %v1780_v6 }
   0x9   :  { %v237_v8 = vld [vmem:[#allocation1] sm:$0xf]  ;;  %v278_v13 = vsel %vm277_vm0, 1.0, %v274_v12  ;;  %v1458_v5 = vmov %v1778_v5  ;;  %v1461_v6 = vmov %v1780_v6 }
   0xa   :  { %238 = vst [vmem:[#allocation0] sm:$0xf] %v237_v8  ;;  %v241_v9 = vld [vmem:[#allocation3] sm:$0xf]  ;;  %vm1471_vm4 = vcmp.eq.s32.totalorder %v1461_v6, %v1458_v5 }
   0xb   :  { %242 = vst [vmem:[#allocation2] sm:$0xf] %v241_v9  ;;  %v245_v10 = vld [vmem:[#allocation5] sm:$0xf] }
   0xc   :  { %246 = vst [vmem:[#allocation4] sm:$0xf] %v245_v10  ;;  %v249_v11 = vld [vmem:[#allocation7] sm:$0xf] }
   0xd   :  { %250 = vst [vmem:[#allocation6] sm:$0xf] %v249_v11 }
   0xe   :  { %279 = vst [vmem:[%s267_s0] sm:$0xf] %v278_v13 }
   0xf   :  { %v287_v14 = vld [vmem:[%s280_s1] sm:$0xf] }
  0x10   :  { %v291_v18 = vsel %vm290_vm1, 1.0, %v287_v14 }
  0x11   :  { %v252_v15 = vld [vmem:[#allocation0] sm:$0xff]  ;;  %292 = vst [vmem:[%s280_s1] sm:$0xf] %v291_v18 }
  0x12   :  { %253 = vst [vmem:[%s251_s2] sm:$0xff] %v252_v15  ;;  %v255_v16 = vld [vmem:[#allocation2] sm:$0xff] }
  0x13   :  { %256 = vst [vmem:[%s254_s3] sm:$0xff] %v255_v16  ;;  %v258_v17 = vld [vmem:[#allocation4] sm:$0xff] }
  0x14   :  { %259 = vst [vmem:[%s257_s17] sm:$0xff] %v258_v17  ;;  %v261_v19 = vld [vmem:[#allocation6] sm:$0xff] }
  0x15   :  { %262 = vst [vmem:[%s260_s18] sm:$0xff] %v261_v19 }
  0x19   :  { %v1417_v20 = vld [vmem:[%s1411_s19] sm:$0xf] }
  0x1a   :  { %v1434_v21 = vld [vmem:[%s1428_s20] sm:$0xf]  ;;  %v1418_v22 = vsel %vm1415_vm2, %v1417_v20, 0.0 }
  0x1b   :  { %v1435_v23 = vsel %vm1415_vm2, %v1434_v21, 0.0  ;;  %v1451_v24 = vld [vmem:[%s1445_s21] sm:$0xf]  ;;  %v1419_v26 = vmul.f32 %v1418_v22, %v1418_v22 }
  0x1c   :  { %v1468_v25 = vld [vmem:[%s1462_s22] sm:$0xf]  ;;  %v1436_v27 = vmul.f32 %v1435_v23, %v1435_v23  ;;  %v1452_v28 = vsel %vm1415_vm2, %v1451_v24, 0.0 }
  0x1d   :  { %v1469_v29 = vsel %vm1415_vm2, %v1468_v25, 0.0  ;;  %v1453_v30 = vmul.f32 %v1452_v28, %v1452_v28  ;;  %v1421_v33 = vsel %vm1420_vm3, 0.0, %v1419_v26 }
  0x1e   :  { %v1438_v31 = vadd.f32 %v1436_v27, %v1419_v26  ;;  %v1470_v32 = vmul.f32 %v1469_v29, %v1469_v29  ;;  %v1437_v35 = vadd.f32 %v1436_v27, %v1421_v33 }
  0x20   :  { %v1455_v34 = vadd.f32 %v1453_v30, %v1438_v31  ;;  %v1454_v37 = vadd.f32 %v1453_v30, %v1437_v35  ;;  %v1472_v38 = vsel %vm1471_vm4, 0.0, %v1470_v32 }
  0x22   :  { %v1474_v36 = vadd.f32 %v1470_v32, %v1455_v34  ;;  %v1473_v39 = vadd.f32 %v1472_v38, %v1454_v37 }
  0x24   :  { %1475 = vadd.xlane.f32.xlu0 %v1474_v36 }
  0x2c   :  { %1483 = vadd.xlane.f32.xlu0 %v1473_v39 }
  0x97   :  { %v1476_v40 = vpop.xlane.xlu0 %1475 }
  0x98   :  { %v1477_v41 = vrot.slane %v1476_v40, 4 }
  0x9a   :  { %v1478_v42 = vadd.f32 %v1477_v41, %v1476_v40 }
  0x9c   :  { %v1479_v43 = vrot.slane %v1478_v42, 2 }
  0x9e   :  { %v1480_v47 = vadd.f32 %v1479_v43, %v1478_v42 }
  0x9f   :  { %v1484_v44 = vpop.xlane.xlu0 %1483 }
  0xa0   :  { %v1485_v45 = vrot.slane %v1484_v44, 4  ;;  %v1481_v50 = vrot.slane %v1480_v47, 1 }
  0xa2   :  { %v1486_v46 = vadd.f32 %v1485_v45, %v1484_v44  ;;  %v1482_v53 = vadd.f32 %v1481_v50, %v1480_v47 }
  0xa4   :  { %v1487_v48 = vrot.slane %v1486_v46, 2 }
  0xa6   :  { %v1488_v49 = vadd.f32 %v1487_v48, %v1486_v46 }
  0xa8   :  { %v1489_v51 = vrot.slane %v1488_v49, 1 }
  0xaa   :  { %v1490_v52 = vadd.f32 %v1489_v51, %v1488_v49 }
  0xac   :  { %1662 = vpush %v1490_v52 }
  0xad   :  { %1664 = vpush %v1482_v53 }
  0xdd   :  { %s1663_s23 = spop %1662 }
  0xde   :  { %s1665_s24 = spop %1664 }
  0xdf   :  { %s1493_s25 = smul.f32 1e-10, %s1665_s24 }
  0xe1   :  { %p1494_p0 = scmp.le.f32.partialorder %s1663_s23, %s1493_s25 }
  0xe2   :  { %s1803_s26 = smov (!%p1494_p0), 0  }
  0xe3   :  { %1497 = sbr.rel (%p1494_p0) target bundleno = 885 (0x375), region = 440 }
  0xe8 LB: > { %s1808_s27 = smov 0   ;;  %s1707_s26 = sphi %s1803_s26, %s2009_s26  }
  0xe9 LB: >> { %s397_s28 = smov [#allocation20]  ;;  %v401_v5 = vmov %v1778_v5  ;;  %v404_v6 = vmov %v1780_v6  ;;  %s417_s29 = smov [#allocation21]  ;;  %s1711_s27 = sphi %s1808_s27, %s396_s27  }
  0xea   : >> { %v421_v5 = vmov %v1778_v5  ;;  %v424_v6 = vmov %v1780_v6  ;;  %v405_v54 = vld [vmem:[%s397_s28] sm:$0xf]  ;;  %vm408_vm5 = vcmp.eq.s32.totalorder %v404_v6, %v401_v5  ;;  %s437_s30 = smov [#allocation23]  ;;  %s398_s10 = smov [#allocation24] }
  0xeb   : >> { %vm428_vm6 = vcmp.eq.s32.totalorder %v424_v6, %v421_v5  ;;  %v441_v5 = vmov %v1778_v5  ;;  %v444_v6 = vmov %v1780_v6  ;;  %v409_v55 = vsel %vm408_vm5, %v405_v54, 0.0  ;;  %v425_v56 = vld [vmem:[%s417_s29] sm:$0xf]  ;;  %s418_s11 = smov [#allocation25]  ;;  %s438_s12 = smov [#allocation26] }
  0xec   : >> { %vm448_vm7 = vcmp.eq.s32.totalorder %v444_v6, %v441_v5  ;;  %v410_v57 = vrot.slane %v409_v55, 4  ;;  %v429_v58 = vsel %vm428_vm6, %v425_v56, 0.0  ;;  %v445_v59 = vld [vmem:[%s437_s30] sm:$0xf]  ;;  %s461_s13 = smov [#allocation25]  ;;  %s459_s14 = smov [#allocation24]  ;;  %v550_v5 = vmov %v1778_v5 }
  0xed   : >> { %v430_v60 = vrot.slane %v429_v58, 4  ;;  %v449_v61 = vsel %vm448_vm7, %v445_v59, 0.0  ;;  %s463_s15 = smov [#allocation26]  ;;  %s538_s16 = smov [#allocation27]  ;;  %v553_v6 = vmov %v1780_v6 }
  0xee   : >> { %v411_v62 = vadd.f32 %v410_v57, %v409_v55  ;;  %v450_v63 = vrot.slane %v449_v61, 4  ;;  %s540_s0 = smov [#allocation28]  ;;  %s457_s1 = smov [#allocation29] }
  0xef   : >> { %v431_v0 = vadd.f32 %v430_v60, %v429_v58  ;;  %s458_s2 = smov [#allocation30]  ;;  %s542_s1 = smov %s457_s1 }
  0xf0   : >> { %v412_v1 = vrot.slane %v411_v62, 2  ;;  %v451_v2 = vadd.f32 %v450_v63, %v449_v61  ;;  %s544_s2 = smov %s458_s2  ;;  %s546_s3 = smov [#allocation29] }
  0xf1   : >> { %v432_v3 = vrot.slane %v431_v0, 2  ;;  %s561_s17 = smov [#allocation30]  ;;  %s559_s18 = smov [#allocation31] }
  0xf2   : >> { %v413_v4 = vadd.f32 %v412_v1, %v411_v62  ;;  %v452_v7 = vrot.slane %v451_v2, 2  ;;  %s574_s19 = smov [#allocation32]  ;;  %s576_s20 = smov [#allocation31] }
  0xf3   : >> { %v433_v8 = vadd.f32 %v432_v3, %v431_v0  ;;  %s1828_s21 = smov [#allocation20]  ;;  %s1830_s22 = smov [#allocation21] }
  0xf4   : >> { %v414_v9 = vrot.slane %v413_v4, 1  ;;  %v453_v10 = vadd.f32 %v452_v7, %v451_v2  ;;  %s1832_s23 = smov [#allocation22]  ;;  %s800_s24 = smov [#allocation31] }
  0xf5   : >> { %v434_v11 = vrot.slane %v433_v8, 1  ;;  %s1834_s25 = smov [#allocation12]  ;;  %s1836_s28 = smov [#allocation14] }
  0xf6   : >> { %v415_v12 = vadd.f32 %v414_v9, %v413_v4  ;;  %v454_v13 = vrot.slane %v453_v10, 1  ;;  %s1838_s29 = smov [#allocation23]  ;;  %s1841_s30 = smov [#allocation16] }
  0xf7   : >> { %v435_v14 = vadd.f32 %v434_v11, %v433_v8  ;;  %s396_s27 = sadd.s32 1, %s1711_s27  }
  0xf8   : >> { %416 = vst [vmem:[%s398_s10] sm:$0x1] %v415_v12  ;;  %v455_v15 = vadd.f32 %v454_v13, %v453_v10  ;;  %s578_s10 = smov [#allocation32]  ;;  %p393_p1 = scmp.ge.s32.totalorder %s396_s27, 7  }
  0xf9   : >> { %436 = vst [vmem:[%s418_s11] sm:$0x1] %v435_v14  ;;  %s802_s11 = smov [#allocation32] }
  0xfa   : >> { %456 = vst [vmem:[%s438_s12] sm:$0x1] %v455_v15  ;;  %s1844_s12 = smov [#allocation18] }
  0xff   : >> { %v460_v23 = vld [vmem:[%s459_s14] sm:$0xff]  ;;  %s604_s14 = smov [#allocation29] }
 0x100   : >> { %v1819_v16 = vld [vmem:[%s461_s13] sm:$0xff]  ;;  %v514_v47 = vand.u32 2147483647, %v460_v23  ;;  %s1855_s13 = smov [#allocation12] }
 0x101   : >> { %v466_v17 = vmul.f32 2.0, %v1819_v16  ;;  %v464_v24 = vld [vmem:[%s463_s15] sm:$0xff]  ;;  %v515_v55 = vand.u32 2147483647, %v1819_v16  ;;  %s606_s15 = smov [#allocation30] }
 0x102   : >> { %v465_v27 = vsub.f32 %v464_v24, %v460_v23  ;;  %v516_v48 = vand.u32 2147483647, %v464_v24 }
 0x103   : >> { %1689 = vrcp.f32 %v466_v17  ;;  %v478_v20 = vand.u32 2147483648, %v466_v17  ;;  %vm472_vm8 = vweird.f32 %v466_v17  ;;  %v476_v22 = vand.u32 2147483647, %v466_v17 }
 0x104   : >> { %v517_v50 = vmin.f32 %v514_v47, %v516_v48 }
 0x105   : >> { %v479_v26 = vor.u32 1.1754944e-38, %v478_v20  ;;  %vm477_vm11 = vcmp.eq.f32.partialorder %v476_v22, 8.507059e+37  ;;  %v585_v20 = vld [vmem:[%s1830_s22] sm:$0xf] }
 0x106   : >> { %v518_v56 = vmul.f32 1.1920929e-08, %v517_v50 }
 0x108   : >> { %vm519_vm4 = vcmp.le.f32.partialorder %v515_v55, %v518_v56 }
 0x109   : >> { %v1690_v18 = vpop.eup %1689 }
 0x10a   : >> { %v468_v19 = vmul.f32 %v1690_v18, %v466_v17  ;;  %vm473_vm9 = vweird.f32 %v1690_v18 }
 0x10b   : >> { %vm474_vm10 = vmor %vm472_vm8, %vm473_vm9  ;;  %vm555_vm8 = vcmp.eq.s32.totalorder %v553_v6, %v550_v5  ;;  %v565_v5 = vmov %v1778_v5  ;;  %v568_v6 = vmov %v1780_v6 }
 0x10c   : >> { %v469_v21 = vsub.f32 1.0, %v468_v19  ;;  %vm570_vm9 = vcmp.eq.s32.totalorder %v568_v6, %v565_v5  ;;  %v636_v5 = vmov %v1778_v5 }
 0x10d   : >> { %v677_v5 = vmov %v1778_v5 }
 0x10e   : >> { %v470_v25 = vmul.f32 %v1690_v18, %v469_v21  ;;  %v586_v21 = vld [vmem:[%s1832_s23] sm:$0xf]  ;;  %v663_v5 = vmov %v1778_v5 }
 0x110   : >> { %v471_v28 = vadd.f32 %v1690_v18, %v470_v25 }
 0x112   : >> { %v475_v29 = vsel %vm474_vm10, %v1690_v18, %v471_v28  ;;  %v810_v28 = vld [vmem:[%s1841_s30] sm:$0xf]  ;;  %vm760_vm10 = vcmp.eq.s32.totalorder %v1780_v6, 0 }
 0x113   : >> { %v480_v30 = vsel %vm477_vm11, %v479_v26, %v475_v29  ;;  %v584_v26 = vld [vmem:[%s1828_s21] sm:$0xf]  ;;  %vm772_vm11 = vcmp.eq.s32.totalorder %v1780_v6, 3  ;;  %v639_v6 = vmov %v1780_v6 }
 0x114   : >> { %v481_v31 = vmul.f32 %v480_v30, %v465_v27  ;;  %v587_v27 = vld [vmem:[%s1838_s29] sm:$0xf]  ;;  %v680_v6 = vmov %v1780_v6 }
 0x115   : >> { %v666_v6 = vmov %v1780_v6 }
 0x116   : >> { %v483_v32 = vmul.f32 %v481_v31, %v481_v31  ;;  %vm482_vm14 = vcmp.ge.f32.partialorder %v481_v31, 0.0 }
 0x118   : >> { %v484_v33 = vadd.f32 1.0, %v483_v32 }
 0x11a   : >> { %1691 = vrsqrt.f32 %v484_v33  ;;  %vm492_vm12 = vcmp.eq.f32.partialorder %v484_v33, inf  ;;  %v495_v40 = vand.u32 2147483648, %v484_v33  ;;  %vm494_vm13 = vcmp.eq.f32.partialorder %v484_v33, 0.0 }
 0x120   : >> { %v1692_v34 = vpop.eup %1691 }
 0x121   : >> { %v486_v35 = vmul.f32 %v1692_v34, %v484_v33 }
 0x123   : >> { %v487_v36 = vmul.f32 %v1692_v34, %v486_v35 }
 0x125   : >> { %v488_v37 = vmul.f32 0.5, %v487_v36 }
 0x127   : >> { %v489_v38 = vsub.f32 1.5, %v488_v37 }
 0x129   : >> { %v490_v39 = vmul.f32 %v1692_v34, %v489_v38 }
 0x12b   : >> { %v491_v41 = vmul.f32 %v490_v39, %v484_v33 }
 0x12d   : >> { %v493_v42 = vsel %vm492_vm12, %v484_v33, %v491_v41  ;;  %v811_v33 = vld [vmem:[%s1844_s12] sm:$0xf]  ;;  %vm644_vm12 = vcmp.eq.s32.totalorder %v639_v6, %v636_v5  ;;  %v650_v5 = vmov %v1778_v5  ;;  %v653_v6 = vmov %v1780_v6 }
 0x12e   : >> { %v496_v43 = vsel %vm494_vm13, %v495_v40, %v493_v42  ;;  %vm685_vm13 = vcmp.eq.s32.totalorder %v680_v6, %v677_v5 }
 0x12f   : >> { %v497_v44 = vxor.u32 2147483648, %v496_v43 }
 0x131   : >> { %v498_v45 = vsel %vm482_vm14, %v496_v43, %v497_v44  ;;  %vm670_vm14 = vcmp.eq.s32.totalorder %v666_v6, %v663_v5 }
 0x132   : >> { %v499_v46 = vadd.f32 %v498_v45, %v481_v31 }
 0x134   : >> { %1693 = vrcp.f32 %v499_v46  ;;  %v511_v52 = vand.u32 2147483648, %v499_v46  ;;  %vm505_vm15 = vweird.f32 %v499_v46  ;;  %v509_v54 = vand.u32 2147483647, %v499_v46 }
 0x136   : >> { %v512_v58 = vor.u32 1.1754944e-38, %v511_v52  ;;  %vm510_vm3 = vcmp.eq.f32.partialorder %v509_v54, 8.507059e+37 }
 0x13a   : >> { %v1694_v49 = vpop.eup %1693 }
 0x13b   : >> { %v501_v51 = vmul.f32 %v1694_v49, %v499_v46  ;;  %vm506_vm0 = vweird.f32 %v1694_v49 }
 0x13c   : >> { %vm507_vm1 = vmor %vm505_vm15, %vm506_vm0  ;;  %vm657_vm15 = vcmp.eq.s32.totalorder %v653_v6, %v650_v5  ;;  %vm716_vm0 = vcmp.eq.s32.totalorder %v1778_v5, 3  ;;  %v300_v6 = vmov (%p393_p1), %v1780_v6 }
 0x13d   : >> { %v502_v53 = vsub.f32 1.0, %v501_v51 }
 0x13f   : >> { %v503_v57 = vmul.f32 %v1694_v49, %v502_v53 }
 0x141   : >> { %v504_v59 = vadd.f32 %v1694_v49, %v503_v57 }
 0x143   : >> { %v508_v60 = vsel %vm507_vm1, %v1694_v49, %v504_v59  ;;  %vm699_vm1 = vcmp.eq.s32.totalorder %v1778_v5, 0 }
 0x144   : >> { %v513_v61 = vsel %vm510_vm3, %v512_v58, %v508_v60  ;;  %vm703_vm3 = vcmp.eq.s32.totalorder %v1778_v5, 1  ;;  %v297_v5 = vmov (%p393_p1), %v1778_v5 }
 0x145   : >> { %v520_v62 = vsel %vm519_vm4, 0.0, %v513_v61  ;;  %vm312_vm4 = vcmp.eq.s32.totalorder (%p393_p1), %v300_v6, %v297_v5  ;;  %v316_v5 = vmov (%p393_p1), %v1778_v5  ;;  %v319_v6 = vmov (%p393_p1), %v1780_v6 }
 0x146   : >> { %v521_v63 = vmul.f32 %v520_v62, %v520_v62  ;;  %v534_v0 = vmul.f32 %v520_v62, %v1819_v16  ;;  %v333_v5 = vmov (%p393_p1), %v1778_v5  ;;  %v336_v6 = vmov (%p393_p1), %v1780_v6 }
 0x147   : > { %v350_v5 = vmov (%p393_p1), %v1778_v5  ;;  %v353_v6 = vmov (%p393_p1), %v1780_v6 }
 0x148   : >> { %v522_v1 = vadd.f32 1.0, %v521_v63  ;;  %v535_v2 = vsub.f32 %v460_v23, %v534_v0  ;;  %v537_v3 = vadd.f32 %v534_v0, %v464_v24  ;;  %v808_v23 = vld [vmem:[%s1834_s25] sm:$0xf] }
 0x149   : >> { %v809_v24 = vld [vmem:[%s1836_s28] sm:$0xf] }
 0x14a   : >> { %1695 = vrsqrt.f32 %v522_v1  ;;  %539 = vst [vmem:[%s538_s16] sm:$0xff] %v535_v2  ;;  %vm529_vm5 = vweird.f32 %v522_v1  ;;  %s1860_s16 = smov [#allocation22] }
 0x14b   : >> { %541 = vst [vmem:[%s540_s0] sm:$0xff] %v537_v3  ;;  %s1862_s0 = smov [#allocation21] }
 0x150   : >> { %v1696_v4 = vpop.eup %1695 }
 0x151   : >> { %v524_v7 = vmul.f32 %v1696_v4, %v522_v1  ;;  %vm530_vm6 = vweird.f32 %v1696_v4 }
 0x152   : >> { %vm531_vm7 = vmor %vm529_vm5, %vm530_vm6  ;;  %vm365_vm5 = vcmp.eq.s32.totalorder (%p393_p1), %v353_v6, %v350_v5 }
 0x153   : >> { %v525_v8 = vmul.f32 %v1696_v4, %v524_v7 }
 0x155   : >> { %v526_v9 = vmul.f32 0.5, %v525_v8 }
 0x157   : >> { %v527_v10 = vsub.f32 1.5, %v526_v9 }
 0x159   : >> { %v528_v11 = vmul.f32 %v1696_v4, %v527_v10 }
 0x15b   : >> { %v532_v12 = vsel %vm531_vm7, %v1696_v4, %v528_v11 }
 0x15c   : >> { %543 = vst [vmem:[%s542_s1] sm:$0xff] %v532_v12  ;;  %v533_v13 = vmul.f32 %v532_v12, %v520_v62  ;;  %s829_s1 = smov [#allocation16] }
 0x15e   : >> { %545 = vst [vmem:[%s544_s2] sm:$0xff] %v533_v13  ;;  %s1864_s2 = smov [#allocation14] }
 0x163   : >> { %v547_v14 = vld [vmem:[%s546_s3] ss:$0 sm:$0xff]  ;;  %s1869_s3 = smov [#allocation18] }
 0x164   : >> { %v556_v15 = vsel %vm555_vm8, %v547_v14, 0.0  ;;  %v605_v56 = vld [vmem:[%s604_s14] ss:$0 sm:$0xff]  ;;  %s752_s14 = smov [#allocation20] }
 0x165   : >> { %557 = vadd.xlane.f32.xlu0 %v556_v15  ;;  %v562_v16 = vld [vmem:[%s561_s17] ss:$0 sm:$0xff]  ;;  %s1872_s17 = smov [#allocation20] }
 0x166   : >> { %v571_v17 = vsel %vm570_vm9, %v562_v16, 0.0  ;;  %v607_v57 = vld [vmem:[%s606_s15] ss:$0 sm:$0xff]  ;;  %s777_s15 = smov [#allocation23] }
 0x16d   : >> { %572 = vadd.xlane.f32.xlu0 %v571_v17 }
 0x1d8   : >> { %v558_v18 = vpop.xlane.xlu0 %557 }
 0x1d9   : >> { %560 = vst [vmem:[%s559_s18] sm:$0xff] %v558_v18  ;;  %s611_s18 = smov [#allocation23] }
 0x1e0   : >> { %v573_v19 = vpop.xlane.xlu0 %572  ;;  %v577_v22 = vld [vmem:[%s576_s20] sm:$0xff]  ;;  %s674_s20 = smov [#allocation28] }
 0x1e1   : >> { %575 = vst [vmem:[%s574_s19] sm:$0xff] %v573_v19  ;;  %v801_v25 = vld [vmem:[%s800_s24] sm:$0xff]  ;;  %v591_v29 = vmul.f32 %v585_v20, %v577_v22  ;;  %v595_v30 = vmul.f32 %v586_v21, %v577_v22  ;;  %v588_v50 = vmul.f32 %v584_v26, %v577_v22  ;;  %v598_v52 = vmul.f32 %v587_v27, %v577_v22  ;;  %s633_s19 = smov [#allocation27]  ;;  %s647_s24 = smov [#allocation21] }
 0x1e2   : >> { %v812_v34 = vmul.f32 %v808_v23, %v801_v25  ;;  %v815_v35 = vmul.f32 %v809_v24, %v801_v25  ;;  %v819_v42 = vmul.f32 %v810_v28, %v801_v25  ;;  %v822_v46 = vmul.f32 %v811_v33, %v801_v25 }
 0x1e8   : >> { %v579_v31 = vld [vmem:[%s578_s10] sm:$0xff]  ;;  %s689_s10 = smov [#allocation21] }
 0x1e9   : >> { %v803_v32 = vld [vmem:[%s802_s11] sm:$0xff]  ;;  %v592_v36 = vmul.f32 %v587_v27, %v579_v31  ;;  %v594_v37 = vmul.f32 %v584_v26, %v579_v31  ;;  %v589_v43 = vmul.f32 %v586_v21, %v579_v31  ;;  %v597_v47 = vmul.f32 %v585_v20, %v579_v31  ;;  %s1715_s11 = smov 127  }
 0x1ea   : >> { %v813_v38 = vmul.f32 %v810_v28, %v803_v32  ;;  %v816_v39 = vmul.f32 %v811_v33, %v803_v32  ;;  %v818_v40 = vmul.f32 %v808_v23, %v803_v32  ;;  %v821_v41 = vmul.f32 %v809_v24, %v803_v32  ;;  %v640_v26 = vld [vmem:[%s633_s19] ss:$0 sm:$0xff] }
 0x1eb   : >> { %v593_v44 = vsub.f32 %v591_v29, %v592_v36  ;;  %v596_v45 = vadd.f32 %v595_v30, %v594_v37  ;;  %v590_v54 = vsub.f32 %v588_v50, %v589_v43  ;;  %v599_v55 = vadd.f32 %v598_v52, %v597_v47  ;;  %v681_v27 = vld [vmem:[%s674_s20] ss:$0 sm:$0xff] }
 0x1ec   : >> { %v814_v48 = vsub.f32 %v812_v34, %v813_v38  ;;  %v817_v49 = vsub.f32 %v815_v35, %v816_v39  ;;  %v820_v51 = vadd.f32 %v819_v42, %v818_v40  ;;  %v823_v53 = vadd.f32 %v822_v46, %v821_v41 }
 0x1ed   : >> { %601 = vst [vmem:[%s1830_s22] sm:$0xf] %v593_v44  ;;  %s673_s22 = smov [#allocation23] }
 0x1ee   : >> { %602 = vst [vmem:[%s1832_s23] sm:$0xf] %v596_v45  ;;  %s660_s23 = smov [#allocation22] }
 0x1ef   : >> { %824 = vst [vmem:[%s1834_s25] sm:$0xf] %v814_v48  ;;  %s1909_s25 = smov [#allocation20] }
 0x1f0   : >> { %825 = vst [vmem:[%s1836_s28] sm:$0xf] %v817_v49  ;;  %s1911_s28 = smov [#allocation23] }
 0x1f1   : >> { %826 = vst [vmem:[%s1841_s30] sm:$0xf] %v820_v51  ;;  %s1714_s30 = smov 1  }
 0x1f2   : >> { %827 = vst [vmem:[%s1844_s12] sm:$0xf] %v823_v53  ;;  %s1923_s12 = smov [#allocation21] }
 0x1f3   : >> { %600 = vst [vmem:[%s1828_s21] sm:$0xf] %v590_v54  ;;  %s632_s21 = smov [#allocation20] }
 0x1f4   : >> { %603 = vst [vmem:[%s1838_s29] sm:$0xf] %v599_v55  ;;  %v613_v59 = vld [vmem:[%s1862_s0] sm:$0xf]  ;;  %s1913_s29 = smov [#allocation22] }
 0x1f5   : >> { %v614_v58 = vld [vmem:[%s1860_s16] sm:$0xf]  ;;  %v617_v10 = vmul.f32 %v613_v59, %v607_v57  ;;  %v620_v16 = vmul.f32 %v613_v59, %v605_v56 }
 0x1f6   : >> { %v830_v60 = vld [vmem:[%s1855_s13] ss:$0 sm:$0xff]  ;;  %v1637_v62 = vld [vmem:[%s1855_s13 + $0x3] ss:$0 sm:$0xff]  ;;  %v625_v13 = vmul.f32 %v614_v58, %v607_v57  ;;  %v622_v14 = vmul.f32 %v614_v58, %v605_v56 }
 0x1f7   : >> { %v1636_v61 = vld [vmem:[%s1855_s13 - $0x1] sm:$0xe]  ;;  %v1641_v2 = vld [vmem:[%s1864_s2 + $0x3] ss:$0 sm:$0xff] }
 0x1f8   : >> { %v837_v63 = vsel %vm760_vm10, %v830_v60, %v1636_v61  ;;  %v854_v0 = vld [vmem:[%s1864_s2] ss:$0 sm:$0xff]  ;;  %v1639_v4 = vld [vmem:[%s829_s1 + $0x1] sm:$0x7] }
 0x1f9   : >> { %v1640_v1 = vld [vmem:[%s1864_s2 - $0x1] sm:$0xe]  ;;  %840 = vst [vmem:[%s1855_s13] sm:$0xf] %v837_v63  ;;  %v849_v8 = vsel %vm772_vm11, %v1637_v62, %v1639_v4 }
 0x1fa   : >> { %v841_v3 = vld [vmem:[%s829_s1] ss:$0 sm:$0xff]  ;;  %v861_v7 = vsel %vm760_vm10, %v854_v0, %v1640_v1  ;;  %v1643_v9 = vld [vmem:[%s1869_s3 + $0x1] sm:$0x7] }
 0x1fb   : >> { %1638 = vst [vmem:[%s1855_s13 + $0x1] sm:$0x1] %v841_v3  ;;  %v865_v11 = vld [vmem:[%s1869_s3] ss:$0 sm:$0xff]  ;;  %v873_v12 = vsel %vm772_vm11, %v1641_v2, %v1643_v9  ;;  %s753_s13 = smov [#allocation22] }
 0x1fc   : >> { %851 = vst [vmem:[%s829_s1] sm:$0xf] %v849_v8  ;;  %v612_v15 = vld [vmem:[%s1872_s17] sm:$0xf]  ;;  %s320_s1 = smov (%p393_p1), [#allocation21] }
 0x1fd   : >> { %864 = vst [vmem:[%s1864_s2] sm:$0xf] %v861_v7  ;;  %v615_v17 = vld [vmem:[%s611_s18] sm:$0xf]  ;;  %v616_v18 = vmul.f32 %v612_v15, %v605_v56  ;;  %v619_v19 = vmul.f32 %v612_v15, %v607_v57 }
 0x1fe   : >> { %1642 = vst [vmem:[%s1864_s2 + $0x1] sm:$0x1] %v865_v11  ;;  %v626_v20 = vmul.f32 %v615_v17, %v605_v56  ;;  %v623_v21 = vmul.f32 %v615_v17, %v607_v57  ;;  %s337_s2 = smov (%p393_p1), [#allocation22] }
 0x1ff   : >> { %875 = vst [vmem:[%s1869_s3] sm:$0xf] %v873_v12  ;;  %v618_v22 = vsub.f32 %v616_v18, %v617_v10  ;;  %v621_v25 = vadd.f32 %v620_v16, %v619_v19  ;;  %s354_s3 = smov (%p393_p1), [#allocation23] }
 0x200   : >> { %v627_v23 = vadd.f32 %v626_v20, %v625_v13  ;;  %v624_v24 = vsub.f32 %v622_v14, %v623_v21 }
 0x201   : >> { %628 = vst [vmem:[%s1872_s17] sm:$0xf] %v618_v22 }
 0x202   : >> { %631 = vst [vmem:[%s611_s18] sm:$0xf] %v627_v23 }
 0x203   : >> { %630 = vst [vmem:[%s1860_s16] sm:$0xf] %v624_v24  ;;  %s876_s16 = sadd.s32 (%p393_p1), 1, %s1707_s26  }
 0x204   : >> { %629 = vst [vmem:[%s1862_s0] sm:$0xf] %v621_v25  ;;  %s301_s0 = smov (%p393_p1), [#allocation20]  ;;  %p389_p2 = scmp.ge.s32.totalorder (%p393_p1), %s876_s16, 15 }
 0x205   : > { %s2009_s26 = smov (%p393_p1), %s876_s16 }
 0x208   : >> { %v641_v28 = vld [vmem:[%s632_s21] sm:$0xf] }
 0x209   : >> { %v682_v29 = vld [vmem:[%s673_s22] sm:$0xf]  ;;  %v645_v30 = vsel %vm644_vm12, %v640_v26, %v641_v28 }
 0x20a   : >> { %v686_v31 = vsel %vm685_vm13, %v681_v27, %v682_v29  ;;  %v667_v32 = vld [vmem:[%s660_s23] sm:$0xf]  ;;  %646 = vst [vmem:[%s632_s21] sm:$0xf] %v645_v30 }
 0x20b   : >> { %687 = vst [vmem:[%s673_s22] sm:$0xf] %v686_v31  ;;  %v671_v33 = vsel %vm670_vm14, 0.0, %v667_v32  ;;  %v654_v34 = vld [vmem:[%s647_s24] sm:$0xf] }
 0x20c   : >> { %672 = vst [vmem:[%s660_s23] sm:$0xf] %v671_v33  ;;  %v658_v35 = vsel %vm657_vm15, 0.0, %v654_v34 }
 0x20d   : >> { %659 = vst [vmem:[%s647_s24] sm:$0xf] %v658_v35 }
 0x211   : >> { %v694_v36 = vld [vmem:[%s1909_s25] sm:$0xf] }
 0x212   : >> { %v722_v37 = vld [vmem:[%s1911_s28] sm:$0xf]  ;;  %695 = vrot.lane.b32.xlu1 %v694_v36, %s1714_s30 }
 0x213   : >> { %723 = vrot.lane.b32.xlu0 %v722_v37, %s1714_s30  ;;  %v726_v38 = vld [vmem:[%s1913_s29] sm:$0xf] }
 0x214   : >> { %727 = vrot.lane.b32.xlu2 %v726_v38, %s1714_s30  ;;  %v690_v39 = vld [vmem:[%s689_s10] sm:$0xf] }
 0x215   : >> { %v711_v40 = vld [vmem:[%s689_s10] sm:$0xf] }
 0x216   : >> { %v743_v41 = vld [vmem:[%s1911_s28] sm:$0xf] }
 0x217   : >> { %v693_v44 = vld [vmem:[%s1909_s25] sm:$0xf] }
 0x218   : >> { %v725_v55 = vld [vmem:[%s1913_s29] sm:$0xf] }
 0x21a   : >> { %691 = vrot.lane.b32.xlu1 %v690_v39, %s1714_s30 }
 0x21c   : >> { %712 = vrot.lane.b32.xlu2 %v711_v40, %s1715_s11 }
 0x222   : >> { %744 = vrot.lane.b32.xlu1 %v743_v41, %s1715_s11 }
 0x26e   : >> { %v728_v42 = vpop.permute.xlu2 %727 }
 0x26f   : >> { %v732_v51 = vsel %vm699_vm1, %v726_v38, %v728_v42 }
 0x276   : >> { %v713_v43 = vpop.permute.xlu2 %712 }
 0x277   : >> { %v717_v45 = vsel %vm716_vm0, %v693_v44, %v713_v43 }
 0x278   : >> { %719 = vst [vmem:[%s689_s10] sm:$0xf] %v717_v45 }
 0x27f   : >> { %v778_v46 = vld [vmem:[%s1923_s12] ss:$0 sm:$0xff]  ;;  %v1633_v48 = vld [vmem:[%s1923_s12 + $0x3] ss:$0 sm:$0xff] }
 0x280   : >> { %v1632_v47 = vld [vmem:[%s1923_s12 - $0x1] sm:$0xe] }
 0x281   : >> { %v785_v49 = vsel %vm760_vm10, %v778_v46, %v1632_v47 }
 0x282   : >> { %788 = vst [vmem:[%s1923_s12] sm:$0xf] %v785_v49 }
 0x284   : >> { %v696_v50 = vpop.permute.xlu1 %695 }
 0x285   : >> { %v724_v52 = vpop.permute.xlu0 %723  ;;  %v700_v56 = vsel %vm699_vm1, %v694_v36, %v696_v50 }
 0x286   : >> { %v736_v53 = vsel %vm703_vm3, %v724_v52, %v732_v51 }
 0x287   : >> { %v742_v54 = vsel %vm1415_vm2, %v736_v53, 0.0 }
 0x288   : >> { %750 = vst [vmem:[%s1913_s29] sm:$0xf] %v742_v54 }
 0x28c   : >> { %v692_v57 = vpop.permute.xlu1 %691 }
 0x28d   : >> { %v704_v58 = vsel %vm703_vm3, %v692_v57, %v700_v56 }
 0x28e   : >> { %v710_v59 = vsel %vm1415_vm2, %v704_v58, 0.0 }
 0x28f   : >> { %718 = vst [vmem:[%s1909_s25] sm:$0xf] %v710_v59  ;;  %v1631_v61 = vld [vmem:[%s753_s13 + $0x1] sm:$0x7]  ;;  %v765_v4 = vld [vmem:[%s753_s13] ss:$0 sm:$0xff] }
 0x294   : >> { %v745_v60 = vpop.permute.xlu1 %744 }
 0x295   : >> { %v749_v62 = vsel %vm716_vm0, %v725_v55, %v745_v60 }
 0x296   : >> { %v754_v63 = vld [vmem:[%s752_s14] ss:$0 sm:$0xff]  ;;  %v1629_v1 = vld [vmem:[%s752_s14 + $0x3] ss:$0 sm:$0xff]  ;;  %751 = vst [vmem:[%s1911_s28] sm:$0xf] %v749_v62 }
 0x297   : >> { %v1628_v0 = vld [vmem:[%s752_s14 - $0x1] sm:$0xe]  ;;  %v773_v3 = vsel %vm772_vm11, %v1629_v1, %v1631_v61 }
 0x298   : >> { %v761_v2 = vsel %vm760_vm10, %v754_v63, %v1628_v0  ;;  %775 = vst [vmem:[%s753_s13] sm:$0xf] %v773_v3 }
 0x299   : >> { %764 = vst [vmem:[%s752_s14] sm:$0xf] %v761_v2 }
 0x29a   : >> { %1630 = vst [vmem:[%s752_s14 + $0x1] sm:$0x1] %v765_v4 }
 0x29d   : >> { %v789_v7 = vld [vmem:[%s777_s15] ss:$0 sm:$0xff]  ;;  %v1635_v8 = vld [vmem:[%s777_s15 + $0x1] sm:$0x7] }
 0x29e   : >> { %1634 = vst [vmem:[%s1923_s12 + $0x1] sm:$0x1] %v789_v7  ;;  %v797_v9 = vsel %vm772_vm11, %v1633_v48, %v1635_v8  ;;  %395 = sbr.rel (!%p393_p1) target bundleno = 233 (0xe9), region = 435 }
 0x29f   : >> { %799 = vst [vmem:[%s777_s15] sm:$0xf] %v797_v9  ;;  %v343_v14 = vld [vmem:[%s337_s2] sm:$0xf] (%p393_p1) }
 0x2a0   : > { %v344_v18 = vsel (%p393_p1), %vm1415_vm2, %v343_v14, 0.0 }
 0x2a1   : > { %v307_v10 = vld [vmem:[%s301_s0] sm:$0xf] (%p393_p1)  ;;  %v345_v20 = vmul.f32 (%p393_p1), %v344_v18, %v344_v18 }
 0x2a2   : > { %v308_v12 = vsel (%p393_p1), %vm1415_vm2, %v307_v10, 0.0 }
 0x2a3   : > { %v309_v16 = vmul.f32 %v308_v12, %v308_v12 }
 0x2a5   : > { %v326_v11 = vld [vmem:[%s320_s1] sm:$0xf]  ;;  %v313_v23 = vsel %vm312_vm4, 0.0, %v309_v16 }
 0x2a6   : > { %v327_v13 = vsel %vm1415_vm2, %v326_v11, 0.0  ;;  %v360_v15 = vld [vmem:[%s354_s3] sm:$0xf] }
 0x2a7   : > { %v328_v17 = vmul.f32 %v327_v13, %v327_v13  ;;  %v361_v19 = vsel %vm1415_vm2, %v360_v15, 0.0 }
 0x2a8   : > { %v362_v22 = vmul.f32 %v361_v19, %v361_v19 }
 0x2a9   : > { %v330_v21 = vadd.f32 %v328_v17, %v309_v16  ;;  %v329_v25 = vadd.f32 %v328_v17, %v313_v23 }
 0x2aa   : > { %v366_v28 = vsel %vm365_vm5, 0.0, %v362_v22 }
 0x2ab   : > { %v347_v24 = vadd.f32 %v345_v20, %v330_v21  ;;  %v346_v27 = vadd.f32 %v345_v20, %v329_v25 }
 0x2ad   : > { %v368_v26 = vadd.f32 %v362_v22, %v347_v24  ;;  %v367_v29 = vadd.f32 %v366_v28, %v346_v27 }
 0x2af   : > { %369 = vadd.xlane.f32.xlu0 %v368_v26 }
 0x2b7   : > { %377 = vadd.xlane.f32.xlu0 %v367_v29 }
 0x322   : > { %v370_v30 = vpop.xlane.xlu0 %369 }
 0x323   : > { %v371_v31 = vrot.slane %v370_v30, 4 }
 0x325   : > { %v372_v32 = vadd.f32 %v371_v31, %v370_v30 }
 0x327   : > { %v373_v33 = vrot.slane %v372_v32, 2 }
 0x329   : > { %v374_v37 = vadd.f32 %v373_v33, %v372_v32 }
 0x32a   : > { %v378_v34 = vpop.xlane.xlu0 %377 }
 0x32b   : > { %v379_v35 = vrot.slane %v378_v34, 4  ;;  %v375_v40 = vrot.slane %v374_v37, 1 }
 0x32d   : > { %v380_v36 = vadd.f32 %v379_v35, %v378_v34  ;;  %v376_v43 = vadd.f32 %v375_v40, %v374_v37 }
 0x32f   : > { %v381_v38 = vrot.slane %v380_v36, 2 }
 0x331   : > { %v382_v39 = vadd.f32 %v381_v38, %v380_v36 }
 0x333   : > { %v383_v41 = vrot.slane %v382_v39, 1 }
 0x335   : > { %v384_v42 = vadd.f32 %v383_v41, %v382_v39 }
 0x337   : > { %1666 = vpush %v384_v42 }
 0x338   : > { %1668 = vpush %v376_v43 }
 0x368   : > { %s1667_s27 = spop %1666 }
 0x369   : > { %s1669_s17 = spop %1668 }
 0x36a   : > { %s387_s18 = smul.f32 1e-10, %s1669_s17 }
 0x36c   : > { %p388_p3 = scmp.le.f32.partialorder %s1667_s27, %s387_s18 }
 0x36e   : > { %p390_p4 = por %p389_p2, %p388_p3 }
 0x370   :  { %878 = sbr.rel (!%p390_p4) target bundleno = 232 (0xe8), region = 446 }
 0x375 PF:  { %s879_s19 = smov [#allocation20]  ;;  %v883_v5 = vmov %v1778_v5  ;;  %v886_v6 = vmov %v1780_v6  ;;  %v933_v44 = vld [vmem:[#allocation12] sm:$0xf]  ;;  %v939_v45 = vld [vmem:[#allocation14] sm:$0xf]  ;;  %s899_s20 = smov [#allocation23] }
 0x376   :  { %v903_v5 = vmov %v1778_v5  ;;  %v906_v6 = vmov %v1780_v6  ;;  %v887_v46 = vld [vmem:[%s879_s19] sm:$0xf]  ;;  %vm890_vm6 = vcmp.eq.s32.totalorder %v886_v6, %v883_v5  ;;  %936 = vst [vmem:[#allocation13] sm:$0xf] %v933_v44  ;;  %v945_v51 = vld [vmem:[#allocation16] sm:$0xf] }
 0x377   :  { %vm910_vm7 = vcmp.eq.s32.totalorder %v906_v6, %v903_v5  ;;  %v891_v47 = vsel %vm890_vm6, %v887_v46, 0.0  ;;  %v907_v48 = vld [vmem:[%s899_s20] sm:$0xf]  ;;  %942 = vst [vmem:[#allocation15] sm:$0xf] %v939_v45  ;;  %s880_s24 = smov [#allocation8] }
 0x378   :  { %v892_v49 = vrot.slane %v891_v47, 4  ;;  %v911_v50 = vsel %vm910_vm7, %v907_v48, 0.0  ;;  %v951_v52 = vld [vmem:[#allocation18] sm:$0xf]  ;;  %948 = vst [vmem:[#allocation17] sm:$0xf] %v945_v51 }
 0x379   :  { %v912_v53 = vrot.slane %v911_v50, 4  ;;  %954 = vst [vmem:[#allocation19] sm:$0xf] %v951_v52  ;;  %s900_s29 = smov [#allocation10] }
 0x37a   :  { %v893_v54 = vadd.f32 %v892_v49, %v891_v47 }
 0x37b   :  { %v913_v55 = vadd.f32 %v912_v53, %v911_v50 }
 0x37c   :  { %v894_v56 = vrot.slane %v893_v54, 2 }
 0x37d   :  { %v914_v57 = vrot.slane %v913_v55, 2  ;;  %v1125_v58 = vld [vmem:[#allocation13] sm:$0xf] }
 0x37e   :  { %v895_v59 = vadd.f32 %v894_v56, %v893_v54  ;;  %1126 = vst [vmem:[%s2005_s6] sm:$0xf] %v1125_v58  ;;  %v1181_v5 = vld [vmem:[#allocation15] sm:$0xf] }
 0x37f   :  { %v915_v6 = vadd.f32 %v914_v57, %v913_v55  ;;  %1182 = vst [vmem:[%s2006_s7] sm:$0xf] %v1181_v5  ;;  %v1237_v61 = vld [vmem:[#allocation17] sm:$0xf] }
 0x380   :  { %v896_v60 = vrot.slane %v895_v59, 1  ;;  %1238 = vst [vmem:[%s2007_s8] sm:$0xf] %v1237_v61  ;;  %v1293_v63 = vld [vmem:[#allocation19] sm:$0xf] }
 0x381   :  { %v916_v62 = vrot.slane %v915_v6, 1  ;;  %1294 = vst [vmem:[%s2008_s9] sm:$0xf] %v1293_v63 }
 0x382   :  { %v897_v0 = vadd.f32 %v896_v60, %v895_v59 }
 0x383   :  { %v917_v1 = vadd.f32 %v916_v62, %v915_v6 }
 0x384   :  { %898 = vst [vmem:[%s880_s24] sm:$0x1] %v897_v0 }
 0x385   :  { %918 = vst [vmem:[%s900_s29] sm:$0x1] %v917_v1 }
 0x38b   :  { %v921_v2 = vld [vmem:[#allocation8] sm:$0x1] }
 0x38c   :  { %924 = vst [vmem:[#allocation9] sm:$0x1] %v921_v2  ;;  %v927_v3 = vld [vmem:[#allocation10] sm:$0x1] }
 0x38d   :  { %930 = vst [vmem:[#allocation11] sm:$0x1] %v927_v3 }
 0x393   :  { %v1011_v4 = vld [vmem:[#allocation9] sm:$0x1] }
 0x394   :  { %1012 = vst [vmem:[%s2003_s4] sm:$0x1] %v1011_v4  ;;  %v1069_v7 = vld [vmem:[#allocation11] sm:$0x1] }
 0x395   :  { %1070 = vst [vmem:[%s2004_s5] sm:$0x1] %v1069_v7 }

// kernel: unfolded_net3dc_forward.5
= control target key start
LH: loop header
LB: loop body
LE: loop exit
PB: predicated region body
PF: predicated region fallthrough
CT: control target
= control target key end

     0   :  { %vm32_vm2 = vcmask 57344   ;;  %vm64_vm3 = vcmask 64512   ;;  %s230_s1 = inlined_call_operand.vmem [shape: f32[1,8], index: 1, kind: input, shape index: {}]   ;;  %s231_s2 = inlined_call_operand.vmem [shape: f32[8,8], index: 2, kind: input, shape index: {}]   ;;  %s232_s0 = inlined_call_operand.<no memory space> [shape: f32[1], index: 0, kind: input, shape index: {}]   ;;  %s233_s3 = inlined_call_operand.vmem [shape: f32[8,384], index: 3, kind: input, shape index: {}]   ;;  %s234_s4 = inlined_call_operand.vmem [shape: f32[8,384], index: 4, kind: output, shape index: {}]  }
   0x1   :  { %v18_v0 = vld [vmem:[%s230_s1] sm:$0x1]  ;;  %v37_v22 = vstv %s232_s0  ;;  %v92_v35 = vld [vmem:[%s233_s3 + $0x8] sm:$0xff]  ;;  %v93_v36 = vld [vmem:[%s233_s3 + $0x10] sm:$0xff] }
   0x2   :  { %v19_v1 = vmax.f32 %v18_v0, 0.0  ;;  %v59_v14 = vld [vmem:[%s231_s2] sm:$0xff]  ;;  %132 = vmatpush.msra.mxu2 %v92_v35  ;;  %152 = vmatpush.msra.mxu3 %v93_v36 }
   0x3   :  { %164 = vmatpush.xpose.msk.msra.mxu0 %vm64_vm3, %v59_v14  ;;  %v91_v34 = vld [vmem:[%s233_s3] sm:$0xff] }
   0x4   :  { %169 = vrsqrt.f32 %v19_v1  ;;  %vm27_vm0 = vcmp.eq.f32.partialorder %v19_v1, inf  ;;  %v30_v8 = vand.u32 2147483648, %v19_v1  ;;  %vm29_vm1 = vcmp.eq.f32.partialorder %v19_v1, 0.0  ;;  %112 = vmatpush.msra.mxu1 %v91_v34 }
   0xa   :  { %v170_v2 = vpop.eup %169 }
   0xb   :  { %v21_v3 = vmul.f32 %v170_v2, %v19_v1 }
   0xd   :  { %v22_v4 = vmul.f32 %v170_v2, %v21_v3 }
   0xf   :  { %v23_v5 = vmul.f32 0.5, %v22_v4 }
  0x11   :  { %v24_v6 = vsub.f32 1.5, %v23_v5 }
  0x13   :  { %v25_v7 = vmul.f32 %v170_v2, %v24_v6 }
  0x15   :  { %v26_v9 = vmul.f32 %v25_v7, %v19_v1 }
  0x17   :  { %v28_v10 = vsel %vm27_vm0, %v19_v1, %v26_v9 }
  0x18   :  { %v31_v11 = vsel %vm29_vm1, %v30_v8, %v28_v10 }
  0x19   :  { %v33_v12 = vsel %vm32_vm2, %v31_v11, -inf  ;;  %v42_v13 = vmax.f32 %v31_v11, 1e-30  ;;  %vm41_vm8 = vcmp.gt.f32.partialorder %v31_v11, 0.0 }
  0x1a   :  { %34 = vmax.xlane.f32.xlu0 %v33_v12 }
  0x1b   :  { %171 = vrcp.f32 %v42_v13  ;;  %vm48_vm4 = vweird.f32 %v42_v13  ;;  %v54_v19 = vand.u32 2147483648, %v42_v13  ;;  %v52_v21 = vand.u32 2147483647, %v42_v13 }
  0x1d   :  { %v55_v24 = vor.u32 1.1754944e-38, %v54_v19  ;;  %vm53_vm7 = vcmp.eq.f32.partialorder %v52_v21, 8.507059e+37 }
  0x21   :  { %v172_v15 = vpop.eup %171 }
  0x22   :  { %v44_v16 = vmul.f32 %v172_v15, %v42_v13  ;;  %vm49_vm5 = vweird.f32 %v172_v15 }
  0x23   :  { %vm50_vm6 = vmor %vm48_vm4, %vm49_vm5 }
  0x24   :  { %v45_v17 = vsub.f32 1.0, %v44_v16 }
  0x26   :  { %v46_v18 = vmul.f32 %v172_v15, %v45_v17 }
  0x28   :  { %v47_v20 = vadd.f32 %v172_v15, %v46_v18 }
  0x2a   :  { %v51_v26 = vsel %vm50_vm6, %v172_v15, %v47_v20 }
  0x2b   :  { %v56_v28 = vsel %vm53_vm7, %v55_v24, %v51_v26 }
  0x8d   :  { %v35_v23 = vpop.xlane.xlu0 %34 }
  0x8e   :  { %v38_v25 = vmul.f32 %v37_v22, %v35_v23 }
  0x90   :  { %v39_v27 = vsub.f32 %v31_v11, %v38_v25 }
  0x92   :  { %v40_v29 = vmax.f32 %v39_v27, 0.0 }
  0x94   :  { %v57_v30 = vmul.f32 %v56_v28, %v40_v29 }
  0x96   :  { %v58_v31 = vsel %vm41_vm8, %v57_v30, 0.0 }
  0x97   :  { %v61_v32 = vperm.slane %v58_v31, 0 }
  0x99   :  { %v63_v33 = vmul.f32 %v61_v32, %v59_v14 }
  0x9b   :  { %165 = vmatmul.msk.f32.vlgmr.msra.gmra.mxu0 %vm64_vm3, %v63_v33 }
 0x118   :  { %v88_v37 = vpop.f32.mrf.mxu0 }
 0x119   :  { %166 = vmatmul.msk.f32.vlgmr.msra.gmra.mxu1 %vm64_vm3, %v88_v37  ;;  %167 = vmatmul.msk.f32.vlgmr.msra.gmra.mxu2 %vm64_vm3, %v88_v37 }
 0x11a   :  { %168 = vmatmul.msk.f32.vlgmr.msra.gmra.mxu3 %vm64_vm3, %v88_v37 }
 0x196   :  { %v114_v38 = vpop.f32.mrf.mxu1 }
 0x197   :  { %157 = vst [vmem:[%s234_s4] sm:$0xff] %v114_v38 }
 0x19c   :  { %v134_v39 = vpop.f32.mrf.mxu2 }
 0x19d   :  { %158 = vst [vmem:[%s234_s4 + $0x8] sm:$0xff] %v134_v39  ;;  %v154_v40 = vpop.f32.mrf.mxu3 }
 0x19e   :  { %159 = vst [vmem:[%s234_s4 + $0x10] sm:$0xff] %v154_v40 }

// kernel: unfolded_net3dc_forward.4
= control target key start
LH: loop header
LB: loop body
LE: loop exit
PB: predicated region body
PF: predicated region fallthrough
CT: control target
= control target key end

     0   :  { %11 = vsyncpa [#allocation3], 0  ;;  %s1466_s21 = smov [#allocation2]   ;;  %s2717_s0 = inlined_call_operand.vmem [shape: f32[110], index: 0, kind: input, shape index: {}]   ;;  %s2718_s1 = inlined_call_operand.vmem [shape: f32[8,384], index: 1, kind: input, shape index: {}]   ;;  %s2719_s2 = inlined_call_operand.vmem [shape: f32[8,384], index: 2, kind: input, shape index: {}]   ;;  %s2720_s3 = inlined_call_operand.vmem [shape: f32[1,384], index: 3, kind: input, shape index: {}]   ;;  %s2721_s4 = inlined_call_operand.vmem [shape: f32[8,384], index: 4, kind: output, shape index: {0}]   ;;  %s2722_s5 = inlined_call_operand.vmem [shape: f32[8,8], index: 5, kind: output, shape index: {1}]  }
   0x1   :  { %s17_s20 = sshll.u32 %s2717_s0, 4  ;;  %s18_s20 = int_to_ptr.vmem [resolvable:$true] %s17_s20 }
   0x2   :  { %20 = dma.vmem_to_smem %s18_s20, 16, %s1466_s21, [#allocation3]  }
   0x3   :  { %1464 = dma.done.wait [#allocation3], 16  }
   0x4   :  { %1465 = vsyncadd [#allocation3], 4294967280 }
   0x5   :  { %31 = sfence }
   0x6   :  { %v32_v0 = vlaneseq  ;;  %v1515_v3 = vld [vmem:[%s2718_s1 + $0x10] sm:$0xff]  ;;  %v1520_v4 = vld [vmem:[%s2718_s1] sm:$0xff]  ;;  %v1525_v5 = vld [vmem:[%s2718_s1 + $0x8] sm:$0xff]  ;;  %v1467_v11 = vmov 0.0   ;;  %s1468_s1 = smov 110   ;;  %s1469_s27 = smov 92  }
   0x7   :  { %v55_v8 = vrot.slane %v1515_v3, 7  ;;  %v53_v9 = vrot.slane %v1520_v4, 7  ;;  %v54_v10 = vrot.slane %v1525_v5, 7  ;;  %v1470_v17 = vmov 1.0   ;;  %v1667_v44 = vld [vmem:[%s2719_s2] sm:$0xff]  ;;  %v1672_v45 = vld [vmem:[%s2719_s2 + $0x8] sm:$0xff] }
   0x8   :  { %v1508_v1 = vshrl.u32 %v32_v0, 7  ;;  %v249_v26 = vrot.slane %v1520_v4, 4  ;;  %v250_v27 = vrot.slane %v1525_v5, 4  ;;  %v251_v28 = vrot.slane %v1515_v3, 4  ;;  %s65_s7 = sld [smem:[#allocation2]]  ;;  %v1677_v46 = vld [vmem:[%s2719_s2 + $0x10] sm:$0xff] }
   0x9   :  { %v435_v32 = vrot.slane %v1520_v4, 1  ;;  %v436_v33 = vrot.slane %v1525_v5, 1  ;;  %v437_v34 = vrot.slane %v1515_v3, 1  ;;  %s1332_s10 = sld [smem:[#allocation2 + $0x1b]]  ;;  %v630_v47 = vrot.slane %v1667_v44, 7 }
   0xa   :  { %2755 = vst [vmem:[#allocation5_spill] sm:$0xff] %v1508_v1  ;;  %vm34_vm0 = vcmp.lt.s32.totalorder %v1508_v1, 4  ;;  %v1329_v2 = vadd.s32 4294967292, %v1508_v1  ;;  %v631_v48 = vrot.slane %v1672_v45, 7  ;;  %s1333_s11 = sld [smem:[#allocation2 + $0x3]]  ;;  %v632_v49 = vrot.slane %v1677_v46, 7 }
   0xb   :  { %v1553_v18 = vsel %vm34_vm0, -1.0, %v1470_v17  ;;  %s1334_s12 = sld [smem:[#allocation2 + $0x1e]]  ;;  %v1729_v62 = vand.u32 127, %v32_v0  ;;  %vm1318_vm8 = vcmask 64512  }
   0xc   :  { %v37_v6 = vsel %vm34_vm0, %v1508_v1, %v1329_v2  ;;  %v1596_v29 = vmul.f32 %v249_v26, %v1553_v18  ;;  %v1599_v30 = vmul.f32 %v250_v27, %v1553_v18  ;;  %v1602_v31 = vmul.f32 %v251_v28, %v1553_v18  ;;  %s1335_s13 = sld [smem:[#allocation2 + $0x6]] }
   0xd   :  { %v38_v7 = vadd.s32 4294967295, %v37_v6  ;;  %v44_v24 = vadd.s32 1, %v37_v6  ;;  %s1690_s14 = sld [smem:[#allocation2 + $0x21]]  ;;  %vm121_vm3 = vcmp.lt.s32.totalorder %v1729_v62, 110  ;;  %vm188_vm4 = vcmp.lt.s32.totalorder %v1729_v62, 92 }
   0xe   :  { %s1698_s15 = sld [smem:[#allocation2 + $0x9]]  ;;  %v67_v57 = vstv %s65_s7  ;;  %vm1206_vm5 = vcmp.lt.s32.totalorder %v1729_v62, 127  ;;  %vm1219_vm6 = vcmp.lt.s32.totalorder %v1729_v62, 126  ;;  %vm1237_vm7 = vcmp.lt.s32.totalorder %v1729_v62, 19 }
   0xf   :  { %vm39_vm1 = vcmp.ge.s32.totalorder %v38_v7, 0  ;;  %vm46_vm2 = vcmp.lt.s32.totalorder %v44_v24, 4  ;;  %s1700_s16 = sld [smem:[#allocation2 + $0xc]]  ;;  %v74_v58 = vstv %s1332_s10 }
  0x10   :  { %v1533_v12 = vsel %vm39_vm1, 1.0, %v1467_v11  ;;  %v1584_v25 = vsel %vm46_vm2, 1.0, %v1467_v11  ;;  %s1705_s17 = sld [smem:[#allocation2 + $0xf]]  ;;  %v83_v59 = vstv %s1333_s11 }
  0x11   :  { %v1536_v13 = vmul.f32 %v1533_v12, %v55_v8  ;;  %v1539_v14 = vmul.f32 %v1533_v12, %v53_v9  ;;  %v1542_v15 = vmul.f32 %v1533_v12, %v54_v10  ;;  %v1626_v35 = vmul.f32 %v1584_v25, %v435_v32  ;;  %s1707_s18 = sld [smem:[#allocation2 + $0x12]] }
  0x12   :  { %v1629_v36 = vmul.f32 %v1584_v25, %v436_v33  ;;  %v1632_v37 = vmul.f32 %v1584_v25, %v437_v34  ;;  %v1693_v51 = vmul.f32 %v1533_v12, %v630_v47  ;;  %v1696_v52 = vmul.f32 %v1533_v12, %v631_v48  ;;  %s1715_s19 = sld [smem:[#allocation2 + $0x15]] }
  0x13   :  { %117 = vrot.lane.b32.xlu1 %v1536_v13, %s1468_s1  ;;  %113 = vrot.lane.b32.xlu0 %v1539_v14, %s1468_s1  ;;  %v60_v16 = vrot.slane %v1542_v15, 4  ;;  %v59_v20 = vrot.slane %v1539_v14, 4  ;;  %v61_v21 = vrot.slane %v1536_v13, 4  ;;  %2756 = vst [vmem:[#allocation6_spill] sm:$0xff] %v1626_v35  ;;  %v441_v38 = vrot.slane %v1626_v35, 4  ;;  %s1719_s20 = sld [smem:[#allocation2 + $0x18]] }
  0x14   :  { %186 = vrot.lane.b32.xlu2 %v1536_v13, %s1469_s27  ;;  %2757 = vst [vmem:[#allocation7_spill] sm:$0xff] %v1629_v36  ;;  %v442_v39 = vrot.slane %v1629_v36, 4  ;;  %v443_v40 = vrot.slane %v1632_v37, 4  ;;  %v1703_v53 = vmul.f32 %v1533_v12, %v632_v49  ;;  %v636_v54 = vrot.slane %v1693_v51, 4  ;;  %s1722_s21 = sld [smem:[#allocation2 + $0x24]] }
  0x15   :  { %v1556_v19 = vmul.f32 %v60_v16, %v1553_v18  ;;  %v1567_v22 = vmul.f32 %v59_v20, %v1553_v18  ;;  %v1570_v23 = vmul.f32 %v61_v21, %v1553_v18  ;;  %2758 = vst [vmem:[#allocation8_spill] sm:$0xff] %v1632_v37  ;;  %v1644_v41 = vmul.f32 %v441_v38, %v1553_v18  ;;  %s1726_s22 = sld [smem:[#allocation2 + $0x27]] }
  0x16   :  { %v1647_v42 = vmul.f32 %v442_v39, %v1553_v18  ;;  %v1650_v43 = vmul.f32 %v443_v40, %v1553_v18  ;;  %2762 = vst [vmem:[#allocation12_spill] sm:$0xff] %v1693_v51  ;;  %v637_v55 = vrot.slane %v1696_v52, 4  ;;  %v638_v56 = vrot.slane %v1703_v53, 4  ;;  %s1737_s23 = sld [smem:[#allocation2 + $0x2a]] }
  0x17   :  { %2759 = vst [vmem:[#allocation9_spill] sm:$0xff] %v1644_v41  ;;  %v90_v60 = vstv %s1334_s12  ;;  %v1732_v63 = vmul.f32 %v636_v54, %v1553_v18  ;;  %v70_v6 = vmul.f32 %v67_v57, %v1536_v13  ;;  %v99_v7 = vstv %s1335_s13  ;;  %s1744_s0 = sld [smem:[#allocation2 + $0x2d]] }
  0x18   :  { %2760 = vst [vmem:[#allocation10_spill] sm:$0xff] %v1647_v42  ;;  %v1735_v2 = vmul.f32 %v637_v55, %v1553_v18  ;;  %v77_v8 = vmul.f32 %v74_v58, %v1570_v23  ;;  %v1742_v9 = vmul.f32 %v638_v56, %v1553_v18  ;;  %v86_v0 = vmul.f32 %v83_v59, %v1536_v13  ;;  %s1749_s24 = sld [smem:[#allocation2 + $0x30]] }
  0x19   :  { %2761 = vst [vmem:[#allocation11_spill] sm:$0xff] %v1650_v43  ;;  %v106_v10 = vstv %s1690_s14  ;;  %v93_v11 = vmul.f32 %v90_v60, %v1570_v23  ;;  %s1751_s25 = sld [smem:[#allocation2 + $0x1]]  ;;  %v102_v12 = vmul.f32 %v99_v7, %v1536_v13  ;;  %v1760_v16 = vstv %s1698_s15 }
  0x1a   :  { %2763 = vst [vmem:[#allocation13_spill] sm:$0xff] %v1696_v52  ;;  %s1762_s26 = sld [smem:[#allocation2 + $0x4]]  ;;  %v1765_v17 = vstv %s1700_s16  ;;  %v1768_v20 = vstv %s1705_s17  ;;  %v1770_v21 = vadd.f32 %v77_v8, %v70_v6  ;;  %v109_v24 = vmul.f32 %v106_v10, %v1570_v23 }
  0x1b   :  { %184 = vrot.lane.b32.xlu1 %v1542_v15, %s1469_s27  ;;  %115 = vrot.lane.b32.xlu0 %v1542_v15, %s1468_s1  ;;  %2764 = vst [vmem:[#allocation14_spill] sm:$0xff] %v1703_v53  ;;  %s1775_s28 = sld [smem:[#allocation2 + $0x7]]  ;;  %v1777_v26 = vadd.f32 %v93_v11, %v86_v0  ;;  %v69_v13 = vmul.f32 %v67_v57, %v1542_v15  ;;  %v1804_v54 = vstv %s1707_s18  ;;  %v1843_v11 = vstv %s1726_s22 }
  0x1c   :  { %127 = vrot.lane.b32.xlu2 %v1556_v19, %s1468_s1  ;;  %2765 = vst [vmem:[#allocation15_spill] sm:$0xff] %v1732_v63  ;;  %v85_v27 = vmul.f32 %v83_v59, %v1542_v15  ;;  %v68_v28 = vmul.f32 %v67_v57, %v1539_v14  ;;  %s1782_s29 = sld [smem:[#allocation2 + $0x33]]  ;;  %v75_v32 = vmul.f32 %v74_v58, %v1567_v22  ;;  %v822_v57 = vrot.slane %v1667_v44, 4 }
  0x1d   :  { %2766 = vst [vmem:[#allocation16_spill] sm:$0xff] %v1735_v2  ;;  %v84_v33 = vmul.f32 %v83_v59, %v1539_v14  ;;  %v91_v34 = vmul.f32 %v90_v60, %v1567_v22  ;;  %s1790_s30 = sld [smem:[#allocation2 + $0x1c]]  ;;  %v92_v39 = vmul.f32 %v90_v60, %v1556_v19  ;;  %v100_v40 = vmul.f32 %v99_v7, %v1539_v14 }
  0x1e   :  { %2767 = vst [vmem:[#allocation17_spill] sm:$0xff] %v1742_v9  ;;  %v107_v47 = vmul.f32 %v106_v10, %v1567_v22  ;;  %s1799_s6 = sld [smem:[#allocation2 + $0x1f]]  ;;  %v1801_v49 = vadd.f32 %v109_v24, %v102_v12  ;;  %v101_v55 = vmul.f32 %v99_v7, %v1542_v15  ;;  %v108_v56 = vmul.f32 %v106_v10, %v1556_v19 }
  0x1f   :  { %s1808_s7 = sld [smem:[#allocation2 + $0x22]]  ;;  %v1818_v59 = vadd.f32 %v75_v32, %v68_v28  ;;  %v1822_v60 = vadd.f32 %v91_v34, %v84_v33  ;;  %v1832_v6 = vadd.f32 %v92_v39, %v85_v27  ;;  %v257_v8 = vstv %s1751_s25 }
  0x20   :  { %v1834_v7 = vadd.f32 %v107_v47, %v100_v40  ;;  %v273_v0 = vstv %s1762_s26  ;;  %s1838_s8 = sld [smem:[#allocation2 + $0xa]]  ;;  %v1840_v10 = vadd.f32 %v108_v56, %v101_v55  ;;  %v1846_v12 = vstv %s1737_s23 }
  0x21   :  { %v289_v24 = vstv %s1775_s28  ;;  %s1851_s9 = sld [smem:[#allocation2 + $0xd]]  ;;  %v1854_v28 = vmul.f32 %v822_v57, %v1553_v18  ;;  %v1863_v33 = vstv %s1749_s24  ;;  %v1875_v47 = vmul.f32 %v257_v8, %v1515_v3 }
  0x22   :  { %s1865_s10 = sld [smem:[#allocation2 + $0x10]]  ;;  %v1872_v40 = vstv %s1782_s29  ;;  %v1878_v55 = vmul.f32 %v273_v0, %v1515_v3  ;;  %v1884_v57 = vmul.f32 %v289_v24, %v1515_v3 }
  0x23   :  { %182 = vrot.lane.b32.xlu0 %v1539_v14, %s1469_s27  ;;  %125 = vrot.lane.b32.xlu1 %v1567_v22, %s1468_s1  ;;  %v1811_v14 = vstv %s1715_s19  ;;  %s1888_s11 = sld [smem:[#allocation2 + $0x25]] }
  0x24   :  { %129 = vrot.lane.b32.xlu2 %v1570_v23, %s1468_s1  ;;  %v280_v1 = vstv %s1799_s6  ;;  %s1902_s12 = sld [smem:[#allocation2 + $0x28]] }
  0x25   :  { %s1932_s13 = sld [smem:[#allocation2 + $0x2b]] }
  0x26   :  { %s1948_s14 = sld [smem:[#allocation2 + $0x13]] }
  0x27   :  { %s1962_s15 = sld [smem:[#allocation2 + $0x16]] }
  0x28   :  { %s2091_s16 = sld [smem:[#allocation2 + $0x19]] }
  0x29   :  { %s2115_s17 = sld [smem:[#allocation2 + $0x2e]] }
  0x2a   :  { %s2120_s18 = sld [smem:[#allocation2 + $0x31]] }
  0x2b   :  { %192 = vrot.lane.b32.xlu0 %v1567_v22, %s1469_s27  ;;  %194 = vrot.lane.b32.xlu1 %v1556_v19, %s1469_s27  ;;  %v1814_v22 = vstv %s1719_s20  ;;  %s2127_s19 = sld [smem:[#allocation2 + $0x34]] }
  0x2c   :  { %196 = vrot.lane.b32.xlu2 %v1570_v23, %s1469_s27  ;;  %v76_v23 = vmul.f32 %v74_v58, %v1556_v19  ;;  %v823_v58 = vrot.slane %v1672_v45, 4  ;;  %v1825_v19 = vstv %s1722_s21  ;;  %s2139_s20 = sld [smem:[#allocation2 + $0x2]] }
  0x2d   :  { %s2146_s21 = sld [smem:[#allocation2 + $0x5]] }
  0x2e   :  { %v1820_v15 = vadd.f32 %v76_v23, %v69_v13  ;;  %v1857_v32 = vmul.f32 %v823_v58, %v1553_v18  ;;  %v1860_v23 = vstv %s1744_s0  ;;  %v264_v58 = vstv %s1790_s30  ;;  %s2149_s22 = sld [smem:[#allocation2 + $0x8]] }
  0x2f   :  { %s2173_s23 = sld [smem:[#allocation2 + $0x1d]] }
  0x30   :  { %s2184_s0 = sld [smem:[#allocation2 + $0x20]] }
  0x31   :  { %s2193_s24 = sld [smem:[#allocation2 + $0x23]] }
  0x32   :  { %s2203_s25 = sld [smem:[#allocation2 + $0xb]] }
  0x33   :  { %303 = vrot.lane.b32.xlu0 %v1520_v4, %s1468_s1  ;;  %305 = vrot.lane.b32.xlu1 %v1525_v5, %s1468_s1  ;;  %s2241_s26 = sld [smem:[#allocation2 + $0xe]] }
  0x34   :  { %307 = vrot.lane.b32.xlu2 %v1515_v3, %s1468_s1  ;;  %s2252_s28 = sld [smem:[#allocation2 + $0x11]] }
  0x35   :  { %s2267_s29 = sld [smem:[#allocation2 + $0x26]] }
  0x36   :  { %s2275_s30 = sld [smem:[#allocation2 + $0x29]] }
  0x37   :  { %s2279_s6 = sld [smem:[#allocation2 + $0x2c]] }
  0x3b   :  { %312 = vrot.lane.b32.xlu0 %v1596_v29, %s1468_s1  ;;  %314 = vrot.lane.b32.xlu1 %v1599_v30, %s1468_s1 }
  0x3c   :  { %316 = vrot.lane.b32.xlu2 %v1602_v31, %s1468_s1 }
  0x43   :  { %369 = vrot.lane.b32.xlu0 %v1520_v4, %s1469_s27  ;;  %371 = vrot.lane.b32.xlu1 %v1525_v5, %s1469_s27 }
  0x44   :  { %373 = vrot.lane.b32.xlu2 %v1515_v3, %s1469_s27  ;;  %v1900_v3 = vmul.f32 %v257_v8, %v1525_v5 }
  0x4b   :  { %378 = vrot.lane.b32.xlu0 %v1596_v29, %s1469_s27  ;;  %380 = vrot.lane.b32.xlu1 %v1599_v30, %s1469_s27 }
  0x4c   :  { %382 = vrot.lane.b32.xlu2 %v1602_v31, %s1469_s27 }
  0x53   :  { %495 = vrot.lane.b32.xlu0 %v1626_v35, %s1468_s1  ;;  %497 = vrot.lane.b32.xlu1 %v1629_v36, %s1468_s1 }
  0x54   :  { %499 = vrot.lane.b32.xlu2 %v1632_v37, %s1468_s1 }
  0x5b   :  { %504 = vrot.lane.b32.xlu0 %v1644_v41, %s1468_s1  ;;  %506 = vrot.lane.b32.xlu1 %v1647_v42, %s1468_s1 }
  0x5c   :  { %508 = vrot.lane.b32.xlu2 %v1650_v43, %s1468_s1 }
  0x63   :  { %561 = vrot.lane.b32.xlu0 %v1626_v35, %s1469_s27  ;;  %563 = vrot.lane.b32.xlu1 %v1629_v36, %s1469_s27  ;;  %v1897_v36 = vmul.f32 %v257_v8, %v1520_v4  ;;  %v1905_v35 = vmul.f32 %v273_v0, %v1520_v4  ;;  %v1921_v8 = vmul.f32 %v264_v58, %v1602_v31 }
  0x64   :  { %565 = vrot.lane.b32.xlu2 %v1632_v37, %s1469_s27  ;;  %v1911_v37 = vmul.f32 %v289_v24, %v1520_v4  ;;  %v1930_v4 = vstv %s1838_s8  ;;  %s2303_s8 = sld [smem:[#allocation2 + $0x17]] }
  0x65   :  { %2768 = vst [vmem:[#allocation18_spill] sm:$0xff] %v1905_v35  ;;  %v1924_v35 = vmul.f32 %v280_v1, %v1602_v31 }
  0x66   :  { %2770 = vst [vmem:[#allocation20_spill] sm:$0xff] %v1930_v4 }
  0x6b   :  { %570 = vrot.lane.b32.xlu0 %v1644_v41, %s1469_s27  ;;  %572 = vrot.lane.b32.xlu1 %v1647_v42, %s1469_s27  ;;  %v296_v42 = vstv %s1808_s7  ;;  %s2297_s7 = sld [smem:[#allocation2 + $0x14]] }
  0x6c   :  { %574 = vrot.lane.b32.xlu2 %v1650_v43, %s1469_s27 }
  0x6e   :  { %v1688_v50 = vpop.permute.xlu2 %186 }
  0x73   :  { %690 = vrot.lane.b32.xlu0 %v1693_v51, %s1468_s1  ;;  %692 = vrot.lane.b32.xlu1 %v1696_v52, %s1468_s1 }
  0x74   :  { %694 = vrot.lane.b32.xlu2 %v1703_v53, %s1468_s1 }
  0x76   :  { %v1724_v61 = vpop.permute.xlu2 %127 }
  0x7b   :  { %699 = vrot.lane.b32.xlu0 %v1732_v63, %s1468_s1  ;;  %701 = vrot.lane.b32.xlu1 %v1735_v2, %s1468_s1 }
  0x7c   :  { %703 = vrot.lane.b32.xlu2 %v1742_v9, %s1468_s1 }
  0x7e   :  { %v1788_v38 = vpop.permute.xlu2 %129 }
  0x7f   :  { %v131_v48 = vsel %vm121_vm3, %v1724_v61, %v1788_v38 }
  0x80   :  { %v1881_v56 = vmul.f32 %v1825_v19, %v131_v48  ;;  %v161_v41 = vmul.f32 %v1843_v11, %v131_v48  ;;  %v177_v43 = vmul.f32 %v1846_v12, %v131_v48  ;;  %v1914_v48 = vmul.f32 %v289_v24, %v1525_v5 }
  0x83   :  { %756 = vrot.lane.b32.xlu0 %v1693_v51, %s1469_s27  ;;  %758 = vrot.lane.b32.xlu1 %v1696_v52, %s1469_s27 }
  0x84   :  { %760 = vrot.lane.b32.xlu2 %v1703_v53, %s1469_s27 }
  0x85   :  { %v118_v13 = vpop.permute.xlu1 %117  ;;  %v114_v27 = vpop.permute.xlu0 %113 }
  0x86   :  { %v124_v34 = vsel %vm121_vm3, %v118_v13, %v114_v27  ;;  %v1869_v39 = vpop.permute.xlu2 %196 }
  0x87   :  { %v139_v52 = vmul.f32 %v1760_v16, %v124_v34  ;;  %v155_v51 = vmul.f32 %v1765_v17, %v124_v34  ;;  %v171_v53 = vmul.f32 %v1768_v20, %v124_v34  ;;  %v1908_v34 = vmul.f32 %v273_v0, %v1525_v5 }
  0x88   :  { %v1927_v0 = vmul.f32 %v296_v42, %v1602_v31 }
  0x89   :  { %v1935_v5 = vadd.f32 %v139_v52, %v1770_v21  ;;  %v1938_v24 = vadd.f32 %v155_v51, %v1777_v26  ;;  %v1954_v52 = vmul.f32 %v264_v58, %v1596_v29  ;;  %v1957_v51 = vmul.f32 %v264_v58, %v1599_v30 }
  0x8a   :  { %2769 = vst [vmem:[#allocation19_spill] sm:$0xff] %v1927_v0  ;;  %v1951_v0 = vstv %s1865_s10  ;;  %v1974_v58 = vmul.f32 %v280_v1, %v1599_v30  ;;  %s2322_s10 = sld [smem:[#allocation2 + $0x2f]] }
  0x8b   :  { %765 = vrot.lane.b32.xlu0 %v1732_v63, %s1469_s27  ;;  %767 = vrot.lane.b32.xlu1 %v1735_v2, %s1469_s27  ;;  %v1941_v2 = vadd.f32 %v171_v53, %v1801_v49  ;;  %v1946_v63 = vstv %s1851_s9  ;;  %2772 = vst [vmem:[#allocation22_spill] sm:$0xff] %v1951_v0  ;;  %v1960_v53 = vmul.f32 %v280_v1, %v1596_v29  ;;  %s2305_s9 = sld [smem:[#allocation2 + $0x1a]] }
  0x8c   :  { %769 = vrot.lane.b32.xlu2 %v1742_v9, %s1469_s27  ;;  %2771 = vst [vmem:[#allocation21_spill] sm:$0xff] %v1946_v63  ;;  %v1981_v0 = vmul.f32 %v296_v42, %v1599_v30  ;;  %v1984_v63 = vstv %s1888_s11  ;;  %s2324_s11 = sld [smem:[#allocation2 + $0x32]] }
  0x8d   :  { %v185_v31 = vpop.permute.xlu1 %184  ;;  %v116_v4 = vpop.permute.xlu0 %115  ;;  %2773 = vst [vmem:[#allocation23_spill] sm:$0xff] %v1954_v52  ;;  %v1978_v52 = vmul.f32 %v296_v42, %v1596_v29 }
  0x8e   :  { %2774 = vst [vmem:[#allocation24_spill] sm:$0xff] %v1957_v51  ;;  %v189_v21 = vsel %vm188_vm4, %v185_v31, %v1688_v50  ;;  %v122_v26 = vsel %vm121_vm3, %v116_v4, %v118_v13  ;;  %v123_v49 = vsel %vm121_vm3, %v114_v27, %v116_v4  ;;  %v1971_v9 = vpop.permute.xlu2 %307 }
  0x8f   :  { %2775 = vst [vmem:[#allocation25_spill] sm:$0xff] %v1960_v53  ;;  %v137_v53 = vmul.f32 %v1760_v16, %v123_v49  ;;  %v138_v13 = vmul.f32 %v1760_v16, %v122_v26  ;;  %v153_v51 = vmul.f32 %v1765_v17, %v123_v49  ;;  %v154_v27 = vmul.f32 %v1765_v17, %v122_v26 }
  0x90   :  { %2776 = vst [vmem:[#allocation26_spill] sm:$0xff] %v1974_v58  ;;  %v169_v1 = vmul.f32 %v1768_v20, %v123_v49  ;;  %v205_v4 = vmul.f32 %v1804_v54, %v189_v21  ;;  %v221_v58 = vmul.f32 %v1811_v14, %v189_v21  ;;  %v170_v29 = vmul.f32 %v1768_v20, %v122_v26 }
  0x91   :  { %2777 = vst [vmem:[#allocation27_spill] sm:$0xff] %v1978_v52  ;;  %v1994_v52 = vstv %s1902_s12  ;;  %v237_v30 = vmul.f32 %v1814_v22, %v189_v21  ;;  %v140_v42 = vadd.f32 %v137_v53, %v1818_v59  ;;  %v141_v16 = vadd.f32 %v138_v13, %v1820_v15  ;;  %s2331_s12 = sld [smem:[#allocation2 + $0x35]] }
  0x92   :  { %2778 = vst [vmem:[#allocation28_spill] sm:$0xff] %v1981_v0  ;;  %v156_v17 = vadd.f32 %v153_v51, %v1822_v60  ;;  %v172_v49 = vadd.f32 %v169_v1, %v1834_v7  ;;  %v173_v0 = vadd.f32 %v170_v29, %v1840_v10  ;;  %v2008_v20 = vstv %s1932_s13  ;;  %s2340_s13 = sld [smem:[#allocation2 + $0x36]] }
  0x93   :  { %2779 = vst [vmem:[#allocation29_spill] sm:$0xff] %v1984_v63  ;;  %v157_v63 = vadd.f32 %v154_v27, %v1832_v6  ;;  %876 = vrot.lane.b32.xlu0 %v1667_v44, %s1468_s1  ;;  %878 = vrot.lane.b32.xlu1 %v1672_v45, %s1468_s1  ;;  %v148_v59 = vadd.f32 %v1881_v56, %v141_v16  ;;  %v824_v60 = vrot.slane %v1677_v46, 4  ;;  %v1008_v6 = vrot.slane %v1667_v44, 1 }
  0x94   :  { %2780 = vst [vmem:[#allocation30_spill] sm:$0xff] %v2008_v20  ;;  %880 = vrot.lane.b32.xlu2 %v1677_v46, %s1468_s1  ;;  %v180_v7 = vadd.f32 %v177_v43, %v173_v0  ;;  %v2017_v21 = vstv %s1948_s14  ;;  %v2020_v26 = vstv %s1962_s15  ;;  %s1387_s14 = sld [smem:[#allocation2 + $0x39]] }
  0x95   :  { %v164_v15 = vadd.f32 %v161_v41, %v157_v63  ;;  %v183_v10 = vpop.permute.xlu0 %182  ;;  %v126_v51 = vpop.permute.xlu1 %125  ;;  %2781 = vst [vmem:[#allocation31_spill] sm:$0xff] %v2017_v21  ;;  %s1389_s15 = sld [smem:[#allocation2 + $0x3c]] }
  0x96   :  { %2782 = vst [vmem:[#allocation32_spill] sm:$0xff] %v2020_v26  ;;  %v190_v56 = vsel %vm188_vm4, %v183_v10, %v185_v31  ;;  %v191_v41 = vsel %vm188_vm4, %v1688_v50, %v183_v10  ;;  %v132_v63 = vsel %vm121_vm3, %v126_v51, %v1724_v61  ;;  %v133_v43 = vsel %vm121_vm3, %v1788_v38, %v126_v51  ;;  %v2033_v0 = vpop.permute.xlu2 %316 }
  0x97   :  { %v204_v13 = vmul.f32 %v1804_v54, %v190_v56  ;;  %v206_v27 = vmul.f32 %v1804_v54, %v191_v41  ;;  %v220_v31 = vmul.f32 %v1811_v14, %v190_v56  ;;  %v222_v1 = vmul.f32 %v1811_v14, %v191_v41 }
  0x98   :  { %v236_v50 = vmul.f32 %v1814_v22, %v190_v56  ;;  %v238_v29 = vmul.f32 %v1814_v22, %v191_v41  ;;  %v144_v61 = vmul.f32 %v1825_v19, %v132_v63  ;;  %v146_v16 = vmul.f32 %v1825_v19, %v133_v43 }
  0x99   :  { %v160_v38 = vmul.f32 %v1843_v11, %v132_v63  ;;  %v162_v10 = vmul.f32 %v1843_v11, %v133_v43  ;;  %v176_v51 = vmul.f32 %v1846_v12, %v132_v63  ;;  %v178_v54 = vmul.f32 %v1846_v12, %v133_v43 }
  0x9a   :  { %v147_v53 = vadd.f32 %v144_v61, %v140_v42  ;;  %v149_v26 = vadd.f32 %v146_v16, %v1935_v5  ;;  %v208_v14 = vadd.f32 %v205_v4, %v148_v59  ;;  %v224_v21 = vadd.f32 %v221_v58, %v164_v15 }
  0x9b   :  { %v163_v56 = vadd.f32 %v160_v38, %v156_v17  ;;  %v165_v22 = vadd.f32 %v162_v10, %v1938_v24  ;;  %v179_v41 = vadd.f32 %v176_v51, %v172_v49  ;;  %v181_v20 = vadd.f32 %v178_v54, %v1941_v2  ;;  %885 = vrot.lane.b32.xlu0 %v1854_v28, %s1468_s1 }
  0x9c   :  { %887 = vrot.lane.b32.xlu1 %v1857_v32, %s1468_s1  ;;  %v209_v19 = vadd.f32 %v206_v27, %v149_v26  ;;  %v240_v11 = vadd.f32 %v237_v30, %v180_v7  ;;  %v207_v12 = vadd.f32 %v204_v13, %v147_v53  ;;  %v2055_v42 = vmul.f32 %v824_v60, %v1553_v18 }
  0x9d   :  { %v193_v5 = vpop.permute.xlu0 %192  ;;  %v225_v58 = vadd.f32 %v222_v1, %v165_v22  ;;  %v241_v4 = vadd.f32 %v238_v29, %v181_v20  ;;  %v195_v17 = vpop.permute.xlu1 %194  ;;  %v223_v24 = vadd.f32 %v220_v31, %v163_v56  ;;  %v239_v49 = vadd.f32 %v236_v50, %v179_v41 }
  0x9e   :  { %v200_v2 = vsel %vm188_vm4, %v1869_v39, %v193_v5  ;;  %v198_v59 = vsel %vm188_vm4, %v195_v17, %v1869_v39  ;;  %v199_v30 = vsel %vm188_vm4, %v193_v5, %v195_v17  ;;  %889 = vrot.lane.b32.xlu2 %v2055_v42, %s1468_s1  ;;  %v2068_v15 = vmul.f32 %v1584_v25, %v1008_v6  ;;  %v2070_v20 = vpop.permute.xlu2 %373  ;;  %v2787_v5 = vld [vmem:[#allocation21_spill] sm:$0xff] }
  0x9f   :  { %v213_v60 = vmul.f32 %v1860_v23, %v200_v2  ;;  %v229_v7 = vmul.f32 %v1863_v33, %v200_v2  ;;  %v245_v53 = vmul.f32 %v1872_v40, %v200_v2  ;;  %v211_v26 = vmul.f32 %v1860_v23, %v199_v30 }
  0xa0   :  { %v212_v39 = vmul.f32 %v1860_v23, %v198_v59  ;;  %v227_v63 = vmul.f32 %v1863_v33, %v199_v30  ;;  %v228_v43 = vmul.f32 %v1863_v33, %v198_v59  ;;  %v243_v13 = vmul.f32 %v1872_v40, %v199_v30 }
  0xa1   :  { %v216_v6 = vadd.f32 %v213_v60, %v209_v19  ;;  %v232_v27 = vadd.f32 %v229_v7, %v225_v58  ;;  %v248_v31 = vadd.f32 %v245_v53, %v241_v4  ;;  %v214_v1 = vadd.f32 %v211_v26, %v207_v12  ;;  %v2788_v58 = vld [vmem:[#allocation22_spill] sm:$0xff]  ;;  %v2793_v60 = vld [vmem:[#allocation27_spill] sm:$0xff] }
  0xa2   :  { %v215_v50 = vadd.f32 %v212_v39, %v208_v14  ;;  %v230_v29 = vadd.f32 %v227_v63, %v223_v24  ;;  %v231_v61 = vadd.f32 %v228_v43, %v224_v21  ;;  %v244_v16 = vmul.f32 %v1872_v40, %v198_v59  ;;  %v2783_v14 = vld [vmem:[#allocation18_spill] sm:$0xff]  ;;  %v2792_v59 = vld [vmem:[#allocation25_spill] sm:$0xff] }
  0xa3   :  { %v263_v38 = vadd.f32 %v1875_v47, %v216_v6  ;;  %v279_v10 = vadd.f32 %v1878_v55, %v232_v27  ;;  %v295_v23 = vadd.f32 %v1884_v57, %v248_v31  ;;  %v246_v51 = vadd.f32 %v243_v13, %v239_v49  ;;  %942 = vrot.lane.b32.xlu0 %v1667_v44, %s1469_s27  ;;  %v2789_v4 = vld [vmem:[#allocation26_spill] sm:$0xff]  ;;  %v2791_v49 = vld [vmem:[#allocation23_spill] sm:$0xff] }
  0xa4   :  { %v247_v33 = vadd.f32 %v244_v16, %v240_v11  ;;  %v261_v54 = vadd.f32 %v1897_v36, %v214_v1  ;;  %v262_v56 = vadd.f32 %v1900_v3, %v215_v50  ;;  %v277_v22 = vadd.f32 %v2783_v14, %v230_v29  ;;  %944 = vrot.lane.b32.xlu1 %v1672_v45, %s1469_s27  ;;  %v2784_v3 = vld [vmem:[#allocation19_spill] sm:$0xff]  ;;  %v2785_v11 = vld [vmem:[#allocation24_spill] sm:$0xff] }
  0xa5   :  { %v278_v40 = vadd.f32 %v1908_v34, %v231_v61  ;;  %v293_v47 = vadd.f32 %v1911_v37, %v246_v51  ;;  %v304_v55 = vpop.permute.xlu0 %303  ;;  %v270_v57 = vadd.f32 %v1921_v8, %v263_v38  ;;  %v286_v44 = vadd.f32 %v1924_v35, %v279_v10  ;;  %v306_v21 = vpop.permute.xlu1 %305  ;;  %v2786_v37 = vld [vmem:[#allocation20_spill] sm:$0xff] }
  0xa6   :  { %v294_v36 = vadd.f32 %v1914_v48, %v247_v33  ;;  %v302_v41 = vadd.f32 %v2784_v3, %v295_v23  ;;  %v311_v19 = vsel %vm121_vm3, %v1971_v9, %v304_v55  ;;  %v269_v12 = vadd.f32 %v2785_v11, %v262_v56  ;;  %946 = vrot.lane.b32.xlu2 %v1677_v46, %s1469_s27  ;;  %v2790_v48 = vld [vmem:[#allocation28_spill] sm:$0xff]  ;;  %v2113_v53 = vpop.permute.xlu2 %382 }
  0xa7   :  { %v326_v34 = vmul.f32 %v2786_v37, %v311_v19  ;;  %v342_v8 = vmul.f32 %v2787_v5, %v311_v19  ;;  %v358_v35 = vmul.f32 %v2788_v58, %v311_v19  ;;  %v285_v17 = vadd.f32 %v2789_v4, %v278_v40 }
  0xa8   :  { %v301_v24 = vadd.f32 %v2790_v48, %v294_v36  ;;  %v268_v2 = vadd.f32 %v2791_v49, %v261_v54  ;;  %v284_v30 = vadd.f32 %v2792_v59, %v277_v22  ;;  %v300_v7 = vadd.f32 %v2793_v60, %v293_v47  ;;  %v2796_v36 = vld [vmem:[#allocation30_spill] sm:$0xff] }
  0xa9   :  { %v329_v26 = vadd.f32 %v326_v34, %v270_v57  ;;  %v345_v39 = vadd.f32 %v342_v8, %v286_v44  ;;  %v361_v63 = vadd.f32 %v358_v35, %v302_v41  ;;  %v309_v43 = vsel %vm121_vm3, %v306_v21, %v1971_v9  ;;  %v2795_v57 = vld [vmem:[#allocation29_spill] sm:$0xff] }
  0xaa   :  { %v310_v13 = vsel %vm121_vm3, %v304_v55, %v306_v21  ;;  %v325_v6 = vmul.f32 %v2786_v37, %v309_v43  ;;  %v341_v27 = vmul.f32 %v2787_v5, %v309_v43  ;;  %v357_v31 = vmul.f32 %v2788_v58, %v309_v43 }
  0xab   :  { %v324_v1 = vmul.f32 %v2786_v37, %v310_v13  ;;  %v340_v50 = vmul.f32 %v2787_v5, %v310_v13  ;;  %v356_v9 = vmul.f32 %v2788_v58, %v310_v13  ;;  %951 = vrot.lane.b32.xlu0 %v1854_v28, %s1469_s27  ;;  %v2794_v29 = vrot.slane %v1672_v45, 1 }
  0xac   :  { %v328_v16 = vadd.f32 %v325_v6, %v269_v12  ;;  %v344_v38 = vadd.f32 %v341_v27, %v285_v17  ;;  %v360_v10 = vadd.f32 %v357_v31, %v301_v24  ;;  %953 = vrot.lane.b32.xlu1 %v1857_v32, %s1469_s27  ;;  %v2144_v23 = vstv %s2091_s16  ;;  %v2798_v27 = vld [vmem:[#allocation6_spill] sm:$0xff]  ;;  %s2363_s16 = sld [smem:[#allocation2 + $0x54]] }
  0xad   :  { %v2137_v61 = vmul.f32 %v1584_v25, %v2794_v29  ;;  %v327_v51 = vadd.f32 %v324_v1, %v268_v2  ;;  %v343_v33 = vadd.f32 %v340_v50, %v284_v30  ;;  %v359_v54 = vadd.f32 %v356_v9, %v300_v7  ;;  %v313_v56 = vpop.permute.xlu0 %312  ;;  %v315_v45 = vpop.permute.xlu1 %314 }
  0xae   :  { %v1014_v14 = vrot.slane %v2068_v15, 4  ;;  %v320_v22 = vsel %vm121_vm3, %v2033_v0, %v313_v56  ;;  %v318_v40 = vsel %vm121_vm3, %v315_v45, %v2033_v0  ;;  %v319_v47 = vsel %vm121_vm3, %v313_v56, %v315_v45  ;;  %955 = vrot.lane.b32.xlu2 %v2055_v42, %s1469_s27  ;;  %v2171_v48 = vpop.permute.xlu2 %499 }
  0xaf   :  { %v1015_v55 = vrot.slane %v2137_v61, 4  ;;  %v333_v44 = vmul.f32 %v2795_v57, %v320_v22  ;;  %v349_v21 = vmul.f32 %v1994_v52, %v320_v22  ;;  %v365_v3 = vmul.f32 %v2796_v36, %v320_v22 }
  0xb0   :  { %v331_v41 = vmul.f32 %v2795_v57, %v319_v47  ;;  %v332_v19 = vmul.f32 %v2795_v57, %v318_v40  ;;  %v347_v0 = vmul.f32 %v1994_v52, %v319_v47  ;;  %v348_v11 = vmul.f32 %v1994_v52, %v318_v40 }
  0xb1   :  { %v363_v12 = vmul.f32 %v2796_v36, %v319_v47  ;;  %v336_v37 = vadd.f32 %v333_v44, %v329_v26  ;;  %v352_v34 = vadd.f32 %v349_v21, %v345_v39  ;;  %v368_v5 = vadd.f32 %v365_v3, %v361_v63  ;;  %v2797_v63 = vld [vmem:[#allocation8_spill] sm:$0xff] }
  0xb2   :  { %v334_v8 = vadd.f32 %v331_v41, %v327_v51  ;;  %v335_v58 = vadd.f32 %v332_v19, %v328_v16  ;;  %v350_v35 = vadd.f32 %v347_v0, %v343_v33  ;;  %v351_v4 = vadd.f32 %v348_v11, %v344_v38  ;;  %v2799_v16 = vld [vmem:[#allocation31_spill] sm:$0xff] }
  0xb3   :  { %v364_v17 = vmul.f32 %v2796_v36, %v318_v40  ;;  %v366_v52 = vadd.f32 %v363_v12, %v359_v54  ;;  %1068 = vrot.lane.b32.xlu0 %v2068_v15, %s1468_s1  ;;  %v2178_v24 = vmul.f32 %v1014_v14, %v1553_v18  ;;  %v2181_v49 = vmul.f32 %v1015_v55, %v1553_v18  ;;  %v2801_v19 = vld [vmem:[#allocation7_spill] sm:$0xff] }
  0xb4   :  { %v396_v2 = vstv %s2115_s17  ;;  %1070 = vrot.lane.b32.xlu1 %v2137_v61, %s1468_s1  ;;  %v412_v30 = vstv %s2120_s18  ;;  %v2190_v60 = vstv %s2127_s19  ;;  %s2370_s17 = sld [smem:[#allocation2 + $0x3f]] }
  0xb5   :  { %v367_v59 = vadd.f32 %v364_v17, %v360_v10  ;;  %v449_v7 = vstv %s2139_s20  ;;  %v370_v26 = vpop.permute.xlu0 %369  ;;  %v372_v39 = vpop.permute.xlu1 %371  ;;  %v465_v13 = vstv %s2146_s21  ;;  %v481_v6 = vstv %s2149_s22  ;;  %v2800_v10 = vld [vmem:[#allocation32_spill] sm:$0xff]  ;;  %s2372_s18 = sld [smem:[#allocation2 + $0x57]] }
  0xb6   :  { %v2196_v43 = vmul.f32 %v449_v7, %v2797_v63  ;;  %v2201_v31 = vmul.f32 %v449_v7, %v2798_v27  ;;  %v377_v1 = vsel %vm188_vm4, %v2070_v20, %v370_v26  ;;  %v375_v50 = vsel %vm188_vm4, %v372_v39, %v2070_v20  ;;  %s2375_s19 = sld [smem:[#allocation2 + $0x42]] }
  0xb7   :  { %v376_v9 = vsel %vm188_vm4, %v370_v26, %v372_v39  ;;  %v468_v29 = vmul.f32 %v465_v13, %v2797_v63  ;;  %v392_v38 = vmul.f32 %v2799_v16, %v377_v1  ;;  %v408_v51 = vmul.f32 %v2800_v10, %v377_v1  ;;  %v2802_v39 = vld [vmem:[#allocation11_spill] sm:$0xff]  ;;  %s2379_s20 = sld [smem:[#allocation2 + $0x45]] }
  0xb8   :  { %v424_v33 = vmul.f32 %v2144_v23, %v377_v1  ;;  %v390_v54 = vmul.f32 %v2799_v16, %v376_v9  ;;  %v391_v56 = vmul.f32 %v2799_v16, %v375_v50  ;;  %v406_v45 = vmul.f32 %v2800_v10, %v376_v9  ;;  %s2399_s21 = sld [smem:[#allocation2 + $0x5a]] }
  0xb9   :  { %v407_v14 = vmul.f32 %v2800_v10, %v375_v50  ;;  %v422_v20 = vmul.f32 %v2144_v23, %v376_v9  ;;  %v395_v22 = vadd.f32 %v392_v38, %v336_v37  ;;  %v411_v40 = vadd.f32 %v408_v51, %v352_v34  ;;  %s2411_s22 = sld [smem:[#allocation2 + $0x60]] }
  0xba   :  { %v427_v47 = vadd.f32 %v424_v33, %v368_v5  ;;  %v393_v55 = vadd.f32 %v390_v54, %v334_v8  ;;  %v394_v57 = vadd.f32 %v391_v56, %v335_v58  ;;  %v409_v44 = vadd.f32 %v406_v45, %v350_v35  ;;  %v2233_v5 = vpop.permute.xlu2 %508 }
  0xbb   :  { %v410_v21 = vadd.f32 %v407_v14, %v351_v4  ;;  %v423_v36 = vmul.f32 %v2144_v23, %v375_v50  ;;  %v425_v3 = vadd.f32 %v422_v20, %v366_v52  ;;  %1077 = vrot.lane.b32.xlu0 %v2178_v24, %s1468_s1  ;;  %v484_v41 = vmul.f32 %v481_v6, %v2797_v63 }
  0xbc   :  { %v451_v0 = vmul.f32 %v449_v7, %v2801_v19  ;;  %v466_v11 = vmul.f32 %v465_v13, %v2798_v27  ;;  %1079 = vrot.lane.b32.xlu1 %v2181_v49, %s1468_s1  ;;  %v467_v37 = vmul.f32 %v465_v13, %v2801_v19  ;;  %v482_v23 = vmul.f32 %v481_v6, %v2798_v27 }
  0xbd   :  { %v426_v12 = vadd.f32 %v423_v36, %v367_v59  ;;  %v483_v34 = vmul.f32 %v481_v6, %v2801_v19  ;;  %v379_v8 = vpop.permute.xlu0 %378  ;;  %v381_v58 = vpop.permute.xlu1 %380  ;;  %v456_v35 = vstv %s2173_s23  ;;  %v472_v4 = vstv %s2184_s0  ;;  %s2421_s23 = sld [smem:[#allocation2 + $0x48]] }
  0xbe   :  { %v488_v17 = vstv %s2193_s24  ;;  %v2239_v52 = vstv %s2203_s25  ;;  %v386_v59 = vsel %vm188_vm4, %v2113_v53, %v379_v8  ;;  %v384_v7 = vsel %vm188_vm4, %v381_v58, %v2113_v53  ;;  %s2426_s0 = sld [smem:[#allocation2 + $0x4b]] }
  0xbf   :  { %v385_v26 = vsel %vm188_vm4, %v379_v8, %v381_v58  ;;  %v459_v63 = vmul.f32 %v456_v35, %v2802_v39  ;;  %v399_v13 = vmul.f32 %v396_v2, %v386_v59  ;;  %v415_v6 = vmul.f32 %v412_v30, %v386_v59  ;;  %s2428_s24 = sld [smem:[#allocation2 + $0x4e]] }
  0xc0   :  { %v431_v27 = vmul.f32 %v2190_v60, %v386_v59  ;;  %v397_v1 = vmul.f32 %v396_v2, %v385_v26  ;;  %v398_v50 = vmul.f32 %v396_v2, %v384_v7  ;;  %v413_v9 = vmul.f32 %v412_v30, %v385_v26  ;;  %s2440_s25 = sld [smem:[#allocation2 + $0x63]] }
  0xc1   :  { %v414_v16 = vmul.f32 %v412_v30, %v384_v7  ;;  %v429_v38 = vmul.f32 %v2190_v60, %v385_v26  ;;  %v402_v10 = vadd.f32 %v399_v13, %v395_v22  ;;  %v418_v51 = vadd.f32 %v415_v6, %v411_v40 }
  0xc2   :  { %v434_v53 = vadd.f32 %v431_v27, %v427_v47  ;;  %v400_v33 = vadd.f32 %v397_v1, %v393_v55  ;;  %v401_v54 = vadd.f32 %v398_v50, %v394_v57  ;;  %v416_v56 = vadd.f32 %v413_v9, %v409_v44 }
  0xc3   :  { %v417_v45 = vadd.f32 %v414_v16, %v410_v21  ;;  %v430_v14 = vmul.f32 %v2190_v60, %v384_v7  ;;  %v455_v20 = vadd.f32 %v2196_v43, %v402_v10  ;;  %v471_v36 = vadd.f32 %v468_v29, %v418_v51  ;;  %1134 = vrot.lane.b32.xlu0 %v2068_v15, %s1469_s27  ;;  %v2804_v7 = vld [vmem:[#allocation10_spill] sm:$0xff] }
  0xc4   :  { %v487_v19 = vadd.f32 %v484_v41, %v434_v53  ;;  %v432_v2 = vadd.f32 %v429_v38, %v425_v3  ;;  %v453_v22 = vadd.f32 %v2201_v31, %v400_v33  ;;  %v454_v40 = vadd.f32 %v451_v0, %v401_v54  ;;  %1136 = vrot.lane.b32.xlu1 %v2137_v61, %s1469_s27  ;;  %v2269_v31 = vpop.permute.xlu2 %565 }
  0xc5   :  { %v433_v30 = vadd.f32 %v430_v14, %v426_v12  ;;  %v469_v47 = vadd.f32 %v466_v11, %v416_v56  ;;  %v470_v55 = vadd.f32 %v467_v37, %v417_v45  ;;  %v475_v43 = vmul.f32 %v472_v4, %v2802_v39  ;;  %v496_v57 = vpop.permute.xlu0 %495  ;;  %v498_v44 = vpop.permute.xlu1 %497  ;;  %v2803_v37 = vld [vmem:[#allocation9_spill] sm:$0xff] }
  0xc6   :  { %v485_v60 = vadd.f32 %v482_v23, %v432_v2  ;;  %v491_v29 = vmul.f32 %v488_v17, %v2802_v39  ;;  %v531_v3 = vstv %s2241_s26  ;;  %v547_v41 = vstv %s2252_s28  ;;  %s2444_s26 = sld [smem:[#allocation2 + $0x66]] }
  0xc7   :  { %v486_v21 = vadd.f32 %v483_v34, %v433_v30  ;;  %v462_v8 = vadd.f32 %v459_v63, %v455_v20  ;;  %v478_v0 = vadd.f32 %v475_v43, %v471_v36  ;;  %v503_v12 = vsel %vm121_vm3, %v2171_v48, %v496_v57  ;;  %s2446_s28 = sld [smem:[#allocation2 + $0x69]] }
  0xc8   :  { %v494_v11 = vadd.f32 %v491_v29, %v487_v19  ;;  %v457_v23 = vmul.f32 %v456_v35, %v2803_v37  ;;  %v518_v58 = vmul.f32 %v2239_v52, %v503_v12  ;;  %v534_v34 = vmul.f32 %v531_v3, %v503_v12 }
  0xc9   :  { %v550_v59 = vmul.f32 %v547_v41, %v503_v12  ;;  %v458_v26 = vmul.f32 %v456_v35, %v2804_v7  ;;  %v473_v39 = vmul.f32 %v472_v4, %v2803_v37  ;;  %v474_v63 = vmul.f32 %v472_v4, %v2804_v7 }
  0xca   :  { %v489_v13 = vmul.f32 %v488_v17, %v2803_v37  ;;  %v490_v6 = vmul.f32 %v488_v17, %v2804_v7  ;;  %v521_v27 = vadd.f32 %v518_v58, %v462_v8  ;;  %v537_v1 = vadd.f32 %v534_v34, %v478_v0 }
  0xcb   :  { %v553_v50 = vadd.f32 %v550_v59, %v494_v11  ;;  %v461_v9 = vadd.f32 %v458_v26, %v454_v40  ;;  %v477_v16 = vadd.f32 %v474_v63, %v470_v55  ;;  %v460_v10 = vadd.f32 %v457_v23, %v453_v22  ;;  %1143 = vrot.lane.b32.xlu0 %v2178_v24, %s1469_s27 }
  0xcc   :  { %v493_v38 = vadd.f32 %v490_v6, %v486_v21  ;;  %v476_v51 = vadd.f32 %v473_v39, %v469_v47  ;;  %v492_v35 = vadd.f32 %v489_v13, %v485_v60  ;;  %v501_v4 = vsel %vm121_vm3, %v498_v44, %v2171_v48  ;;  %1145 = vrot.lane.b32.xlu1 %v2181_v49, %s1469_s27  ;;  %v2311_v43 = vpop.permute.xlu2 %574 }
  0xcd   :  { %v502_v17 = vsel %vm121_vm3, %v496_v57, %v498_v44  ;;  %v1010_v53 = vrot.slane %v1677_v46, 1  ;;  %v517_v54 = vmul.f32 %v2239_v52, %v501_v4  ;;  %v533_v45 = vmul.f32 %v531_v3, %v501_v4  ;;  %v505_v14 = vpop.permute.xlu0 %504  ;;  %v507_v20 = vpop.permute.xlu1 %506 }
  0xce   :  { %v516_v33 = vmul.f32 %v2239_v52, %v502_v17  ;;  %v532_v56 = vmul.f32 %v531_v3, %v502_v17  ;;  %v548_v48 = vmul.f32 %v547_v41, %v502_v17  ;;  %v549_v36 = vmul.f32 %v547_v41, %v501_v4 }
  0xcf   :  { %v2300_v19 = vmul.f32 %v1584_v25, %v1010_v53  ;;  %v522_v46 = vstv %s2267_s29  ;;  %v520_v30 = vadd.f32 %v517_v54, %v461_v9  ;;  %v536_v52 = vadd.f32 %v533_v45, %v477_v16  ;;  %s2451_s29 = sld [smem:[#allocation2 + $0x37]] }
  0xd0   :  { %v519_v2 = vadd.f32 %v516_v33, %v460_v10  ;;  %v535_v22 = vadd.f32 %v532_v56, %v476_v51  ;;  %v551_v40 = vadd.f32 %v548_v48, %v492_v35  ;;  %v552_v47 = vadd.f32 %v549_v36, %v493_v38 }
  0xd1   :  { %1072 = vrot.lane.b32.xlu2 %v2300_v19, %s1468_s1  ;;  %v538_v55 = vstv %s2275_s30  ;;  %v554_v60 = vstv %s2279_s6  ;;  %v512_v25 = vsel %vm121_vm3, %v2233_v5, %v505_v14  ;;  %v510_v29 = vsel %vm121_vm3, %v507_v20, %v2233_v5  ;;  %s2453_s30 = sld [smem:[#allocation2 + $0x3a]] }
  0xd2   :  { %v511_v57 = vsel %vm121_vm3, %v505_v14, %v507_v20  ;;  %v1016_v44 = vrot.slane %v2300_v19, 4  ;;  %v525_v21 = vmul.f32 %v522_v46, %v512_v25  ;;  %v541_v3 = vmul.f32 %v538_v55, %v512_v25  ;;  %s2462_s6 = sld [smem:[#allocation2 + $0x3d]] }
  0xd3   :  { %v557_v41 = vmul.f32 %v554_v60, %v512_v25  ;;  %v523_v8 = vmul.f32 %v522_v46, %v511_v57  ;;  %v524_v0 = vmul.f32 %v522_v46, %v510_v29  ;;  %v539_v11 = vmul.f32 %v538_v55, %v511_v57 }
  0xd4   :  { %v540_v12 = vmul.f32 %v538_v55, %v510_v29  ;;  %v555_v37 = vmul.f32 %v554_v60, %v511_v57  ;;  %v528_v23 = vadd.f32 %v525_v21, %v521_v27  ;;  %v544_v58 = vadd.f32 %v541_v3, %v537_v1  ;;  %v2346_v20 = vpop.permute.xlu2 %694 }
  0xd5   :  { %v560_v34 = vadd.f32 %v557_v41, %v553_v50  ;;  %v526_v5 = vadd.f32 %v523_v8, %v519_v2  ;;  %v527_v59 = vadd.f32 %v524_v0, %v520_v30  ;;  %v542_v7 = vadd.f32 %v539_v11, %v535_v22  ;;  %v562_v63 = vpop.permute.xlu0 %561  ;;  %v564_v13 = vpop.permute.xlu1 %563 }
  0xd6   :  { %v543_v26 = vadd.f32 %v540_v12, %v536_v52  ;;  %v556_v39 = vmul.f32 %v554_v60, %v510_v29  ;;  %v558_v6 = vadd.f32 %v555_v37, %v551_v40  ;;  %v2327_v9 = vmul.f32 %v1016_v44, %v1553_v18 }
  0xd7   :  { %v581_v16 = vstv %s2297_s7  ;;  %v597_v27 = vstv %s2303_s8  ;;  %v613_v50 = vstv %s2305_s9  ;;  %v569_v38 = vsel %vm188_vm4, %v2269_v31, %v562_v63  ;;  %s2466_s7 = sld [smem:[#allocation2 + $0x52]] }
  0xd8   :  { %v559_v1 = vadd.f32 %v556_v39, %v552_v47  ;;  %v567_v10 = vsel %vm188_vm4, %v564_v13, %v2269_v31  ;;  %v584_v18 = vmul.f32 %v581_v16, %v569_v38  ;;  %v600_v51 = vmul.f32 %v597_v27, %v569_v38  ;;  %s2473_s8 = sld [smem:[#allocation2 + $0x55]] }
  0xd9   :  { %1081 = vrot.lane.b32.xlu2 %v2327_v9, %s1468_s1  ;;  %v616_v35 = vmul.f32 %v613_v50, %v569_v38  ;;  %v568_v4 = vsel %vm188_vm4, %v562_v63, %v564_v13  ;;  %v583_v53 = vmul.f32 %v581_v16, %v567_v10  ;;  %v599_v54 = vmul.f32 %v597_v27, %v567_v10  ;;  %s2355_s1 = sld [smem:[#allocation2 + $0x51]]  ;;  %v2807_v38 = vld [vmem:[#allocation13_spill] sm:$0xff] }
  0xda   :  { %v582_v17 = vmul.f32 %v581_v16, %v568_v4  ;;  %v598_v33 = vmul.f32 %v597_v27, %v568_v4  ;;  %v587_v31 = vadd.f32 %v584_v18, %v528_v23  ;;  %v603_v56 = vadd.f32 %v600_v51, %v544_v58  ;;  %v2805_v23 = vld [vmem:[#allocation14_spill] sm:$0xff]  ;;  %s2478_s9 = sld [smem:[#allocation2 + $0x40]] }
  0xdb   :  { %v619_v45 = vadd.f32 %v616_v35, %v560_v34  ;;  %v614_v14 = vmul.f32 %v613_v50, %v568_v4  ;;  %v586_v36 = vadd.f32 %v583_v53, %v527_v59  ;;  %v602_v2 = vadd.f32 %v599_v54, %v543_v26 }
  0xdc   :  { %v585_v48 = vadd.f32 %v582_v17, %v526_v5  ;;  %v601_v46 = vadd.f32 %v598_v33, %v542_v7  ;;  %v615_v30 = vmul.f32 %v613_v50, %v567_v10  ;;  %v588_v52 = vstv %s2322_s10  ;;  %v2381_v26 = vpop.permute.xlu2 %703  ;;  %s2484_s10 = sld [smem:[#allocation2 + $0x58]] }
  0xdd   :  { %v2348_v22 = vadd.f32 %v614_v14, %v558_v6  ;;  %v604_v40 = vstv %s2324_s11  ;;  %v571_v47 = vpop.permute.xlu0 %570  ;;  %v573_v55 = vpop.permute.xlu1 %572  ;;  %v620_v25 = vstv %s2331_s12  ;;  %v644_v57 = vstv %s2340_s13  ;;  %s2493_s13 = sld [smem:[#allocation2 + $0x43]] }
  0xde   :  { %v2352_v60 = vadd.f32 %v615_v30, %v559_v1  ;;  %v578_v29 = vsel %vm188_vm4, %v2311_v43, %v571_v47  ;;  %v660_v44 = vstv %s1387_s14  ;;  %v676_v41 = vstv %s1389_s15  ;;  %v2806_v1 = vld [vmem:[#allocation12_spill] sm:$0xff]  ;;  %s2495_s14 = sld [smem:[#allocation2 + $0x46]] }
  0xdf   :  { %v591_v21 = vmul.f32 %v588_v52, %v578_v29  ;;  %v607_v3 = vmul.f32 %v604_v40, %v578_v29  ;;  %v623_v8 = vmul.f32 %v620_v25, %v578_v29  ;;  %v576_v0 = vsel %vm188_vm4, %v573_v55, %v2311_v43  ;;  %s2638_s11 = sld [smem:[#allocation2 + $0x4a]] }
  0xe0   :  { %v577_v11 = vsel %vm188_vm4, %v571_v47, %v573_v55  ;;  %v647_v58 = vmul.f32 %v644_v57, %v2805_v23  ;;  %v590_v34 = vmul.f32 %v588_v52, %v576_v0  ;;  %v663_v5 = vmul.f32 %v660_v44, %v2805_v23  ;;  %s2642_s12 = sld [smem:[#allocation2 + $0x62]] }
  0xe1   :  { %1138 = vrot.lane.b32.xlu2 %v2300_v19, %s1469_s27  ;;  %v594_v12 = vadd.f32 %v591_v21, %v587_v31  ;;  %v589_v37 = vmul.f32 %v588_v52, %v577_v11  ;;  %v679_v59 = vmul.f32 %v676_v41, %v2805_v23  ;;  %v610_v43 = vadd.f32 %v607_v3, %v603_v56  ;;  %v2808_v31 = vld [vmem:[#allocation17_spill] sm:$0xff]  ;;  %s2661_s15 = sld [smem:[#allocation2 + $0x68]] }
  0xe2   :  { %v626_v39 = vadd.f32 %v623_v8, %v619_v45  ;;  %v593_v63 = vadd.f32 %v590_v34, %v586_v36  ;;  %v605_v13 = vmul.f32 %v604_v40, %v577_v11  ;;  %v606_v6 = vmul.f32 %v604_v40, %v576_v0 }
  0xe3   :  { %v592_v7 = vadd.f32 %v589_v37, %v585_v48  ;;  %v645_v50 = vmul.f32 %v644_v57, %v2806_v1  ;;  %v646_v10 = vmul.f32 %v644_v57, %v2807_v38  ;;  %v651_v18 = vstv %s2355_s1  ;;  %s2675_s1 = sld [smem:[#allocation2 + $0x50]] }
  0xe4   :  { %v650_v51 = vadd.f32 %v647_v58, %v594_v12  ;;  %v661_v35 = vmul.f32 %v660_v44, %v2806_v1  ;;  %v662_v4 = vmul.f32 %v660_v44, %v2807_v38  ;;  %v677_v17 = vmul.f32 %v676_v41, %v2806_v1 }
  0xe5   :  { %v691_v16 = vpop.permute.xlu0 %690  ;;  %v693_v27 = vpop.permute.xlu1 %692  ;;  %v666_v53 = vadd.f32 %v663_v5, %v610_v43  ;;  %v678_v33 = vmul.f32 %v676_v41, %v2807_v38  ;;  %v621_v54 = vmul.f32 %v620_v25, %v577_v11  ;;  %v654_v56 = vmul.f32 %v651_v18, %v2808_v31  ;;  %v2809_v41 = vld [vmem:[#allocation15_spill] sm:$0xff] }
  0xe6   :  { %v682_v45 = vadd.f32 %v679_v59, %v626_v39  ;;  %v608_v14 = vadd.f32 %v605_v13, %v601_v46  ;;  %v609_v48 = vadd.f32 %v606_v6, %v602_v2  ;;  %v710_v36 = vstv %s2370_s17  ;;  %v2810_v46 = vld [vmem:[#allocation16_spill] sm:$0xff]  ;;  %v2413_v43 = vpop.permute.xlu2 %760  ;;  %s1471_s17 = smov 127  }
  0xe7   :  { %v622_v30 = vmul.f32 %v620_v25, %v576_v0  ;;  %v667_v52 = vstv %s2363_s16  ;;  %v683_v40 = vstv %s2372_s18  ;;  %v698_v47 = vsel %vm121_vm3, %v2346_v20, %v691_v16  ;;  %s2520_s18 = sld [smem:[#allocation2 + $0x5e]] }
  0xe8   :  { %v648_v55 = vadd.f32 %v645_v50, %v592_v7  ;;  %v726_v29 = vstv %s2375_s19  ;;  %v657_v57 = vadd.f32 %v654_v56, %v650_v51  ;;  %v713_v44 = vmul.f32 %v710_v36, %v698_v47  ;;  %s2530_s19 = sld [smem:[#allocation2 + $0x61]] }
  0xe9   :  { %1147 = vrot.lane.b32.xlu2 %v2327_v9, %s1469_s27  ;;  %v649_v21 = vadd.f32 %v646_v10, %v593_v63  ;;  %v742_v3 = vstv %s2379_s20  ;;  %v652_v8 = vmul.f32 %v651_v18, %v2809_v41  ;;  %v653_v2 = vmul.f32 %v651_v18, %v2810_v46  ;;  %s2408_s27 = sld [smem:[#allocation2 + $0x5d]] }
  0xea   :  { %v624_v25 = vadd.f32 %v621_v54, %v2348_v22  ;;  %v670_v0 = vmul.f32 %v667_v52, %v2808_v31  ;;  %v686_v11 = vmul.f32 %v683_v40, %v2808_v31  ;;  %v716_v12 = vadd.f32 %v713_v44, %v657_v57  ;;  %s2532_s20 = sld [smem:[#allocation2 + $0x49]] }
  0xeb   :  { %v625_v58 = vadd.f32 %v622_v30, %v2352_v60  ;;  %v664_v34 = vadd.f32 %v661_v35, %v608_v14  ;;  %v665_v5 = vadd.f32 %v662_v4, %v609_v48  ;;  %v729_v59 = vmul.f32 %v726_v29, %v698_v47  ;;  %s2683_s16 = sld [smem:[#allocation2 + $0x6b]] }
  0xec   :  { %v745_v7 = vmul.f32 %v742_v3, %v698_v47  ;;  %v669_v22 = vmul.f32 %v667_v52, %v2810_v46  ;;  %v696_v39 = vsel %vm121_vm3, %v693_v27, %v2346_v20  ;;  %v697_v63 = vsel %vm121_vm3, %v691_v16, %v693_v27 }
  0xed   :  { %v700_v37 = vpop.permute.xlu0 %699  ;;  %v702_v23 = vpop.permute.xlu1 %701  ;;  %v656_v60 = vadd.f32 %v653_v2, %v649_v21  ;;  %v655_v13 = vadd.f32 %v652_v8, %v648_v55  ;;  %v711_v6 = vmul.f32 %v710_v36, %v697_v63  ;;  %v712_v1 = vmul.f32 %v710_v36, %v696_v39 }
  0xee   :  { %v680_v50 = vadd.f32 %v677_v17, %v624_v25  ;;  %v673_v38 = vadd.f32 %v670_v0, %v666_v53  ;;  %v689_v10 = vadd.f32 %v686_v11, %v682_v45  ;;  %v668_v18 = vmul.f32 %v667_v52, %v2809_v41  ;;  %v770_v25 = vpop.permute.xlu2 %769 }
  0xef   :  { %v684_v51 = vmul.f32 %v683_v40, %v2809_v41  ;;  %v714_v35 = vadd.f32 %v711_v6, %v655_v13  ;;  %v715_v4 = vadd.f32 %v712_v1, %v656_v60  ;;  %v717_v54 = vstv %s2399_s21  ;;  %s2537_s21 = sld [smem:[#allocation2 + $0x4c]] }
  0xf0   :  { %v681_v20 = vadd.f32 %v678_v33, %v625_v58  ;;  %v732_v16 = vadd.f32 %v729_v59, %v673_v38  ;;  %v748_v27 = vadd.f32 %v745_v7, %v689_v10  ;;  %v672_v31 = vadd.f32 %v669_v22, %v665_v5 }
  0xf1   :  { %v685_v17 = vmul.f32 %v683_v40, %v2810_v46  ;;  %v707_v53 = vsel %vm121_vm3, %v2381_v26, %v700_v37  ;;  %v705_v56 = vsel %vm121_vm3, %v702_v23, %v2381_v26  ;;  %v706_v33 = vsel %vm121_vm3, %v700_v37, %v702_v23 }
  0xf2   :  { %v727_v45 = vmul.f32 %v726_v29, %v697_v63  ;;  %v728_v14 = vmul.f32 %v726_v29, %v696_v39  ;;  %v720_v48 = vmul.f32 %v717_v54, %v707_v53  ;;  %v718_v36 = vmul.f32 %v717_v54, %v706_v33 }
  0xf3   :  { %v671_v47 = vadd.f32 %v668_v18, %v664_v34  ;;  %v687_v40 = vadd.f32 %v684_v51, %v680_v50  ;;  %v733_v55 = vstv %s2408_s27  ;;  %v719_v57 = vmul.f32 %v717_v54, %v705_v56  ;;  %s2541_s27 = sld [smem:[#allocation2 + $0x4f]] }
  0xf4   :  { %v749_v44 = vstv %s2411_s22  ;;  %v723_v21 = vadd.f32 %v720_v48, %v716_v12  ;;  %v721_v41 = vadd.f32 %v718_v36, %v714_v35  ;;  %v776_v26 = vstv %s2421_s23  ;;  %s2551_s22 = sld [smem:[#allocation2 + $0x64]] }
  0xf5   :  { %v757_v30 = vpop.permute.xlu0 %756  ;;  %v759_v52 = vpop.permute.xlu1 %758  ;;  %v688_v8 = vadd.f32 %v685_v17, %v681_v20  ;;  %v743_v46 = vmul.f32 %v742_v3, %v697_v63  ;;  %v744_v29 = vmul.f32 %v742_v3, %v696_v39  ;;  %v722_v2 = vadd.f32 %v719_v57, %v715_v4  ;;  %s2554_s23 = sld [smem:[#allocation2 + $0x67]] }
  0xf6   :  { %v730_v0 = vadd.f32 %v727_v45, %v671_v47  ;;  %v731_v11 = vadd.f32 %v728_v14, %v672_v31  ;;  %v736_v37 = vmul.f32 %v733_v55, %v707_v53  ;;  %v764_v12 = vsel %vm188_vm4, %v2413_v43, %v757_v30 }
  0xf7   :  { %v752_v23 = vmul.f32 %v749_v44, %v707_v53  ;;  %v734_v58 = vmul.f32 %v733_v55, %v706_v33  ;;  %v735_v34 = vmul.f32 %v733_v55, %v705_v56  ;;  %v779_v5 = vmul.f32 %v776_v26, %v764_v12 }
  0xf8   :  { %v792_v3 = vstv %s2426_s0  ;;  %v808_v59 = vstv %s2428_s24  ;;  %v762_v7 = vsel %vm188_vm4, %v759_v52, %v2413_v43  ;;  %v763_v22 = vsel %vm188_vm4, %v757_v30, %v759_v52  ;;  %s2562_s0 = sld [smem:[#allocation2 + $0x6a]] }
  0xf9   :  { %v746_v39 = vadd.f32 %v743_v46, %v687_v40  ;;  %v750_v63 = vmul.f32 %v749_v44, %v706_v33  ;;  %v782_v60 = vadd.f32 %v779_v5, %v723_v21  ;;  %v777_v13 = vmul.f32 %v776_v26, %v763_v22  ;;  %v2471_v40 = vpop.permute.xlu2 %880  ;;  %s2566_s24 = sld [smem:[#allocation2 + $0x38]] }
  0xfa   :  { %v747_v6 = vadd.f32 %v744_v29, %v688_v8  ;;  %v739_v1 = vadd.f32 %v736_v37, %v732_v16  ;;  %v751_v50 = vmul.f32 %v749_v44, %v705_v56  ;;  %v778_v38 = vmul.f32 %v776_v26, %v762_v7 }
  0xfb   :  { %v755_v51 = vadd.f32 %v752_v23, %v748_v27  ;;  %v795_v35 = vmul.f32 %v792_v3, %v764_v12  ;;  %v811_v43 = vmul.f32 %v808_v59, %v764_v12  ;;  %v780_v4 = vadd.f32 %v777_v13, %v721_v41  ;;  %v1449_v23 = vld [vmem:[%s2719_s2 + $0x10] sm:$0xff] }
  0xfc   :  { %v737_v54 = vadd.f32 %v734_v58, %v730_v0  ;;  %v738_v20 = vadd.f32 %v735_v34, %v731_v11  ;;  %v781_v31 = vadd.f32 %v778_v38, %v722_v2  ;;  %v783_v17 = vstv %s2440_s25  ;;  %s2568_s25 = sld [smem:[#allocation2 + $0x3b]] }
  0xfd   :  { %v766_v10 = vpop.permute.xlu0 %765  ;;  %v768_v18 = vpop.permute.xlu1 %767  ;;  %v753_v53 = vadd.f32 %v750_v63, %v746_v39  ;;  %v793_v33 = vmul.f32 %v792_v3, %v763_v22  ;;  %v794_v16 = vmul.f32 %v792_v3, %v762_v7  ;;  %v799_v45 = vstv %s2444_s26  ;;  %s2570_s26 = sld [smem:[#allocation2 + $0x3e]] }
  0xfe   :  { %v754_v56 = vadd.f32 %v751_v50, %v747_v6  ;;  %v809_v14 = vmul.f32 %v808_v59, %v763_v22  ;;  %v810_v27 = vmul.f32 %v808_v59, %v762_v7  ;;  %v773_v48 = vsel %vm188_vm4, %v770_v25, %v766_v10  ;;  %v1450_v6 = vld [vmem:[%s2719_s2] sm:$0xff]  ;;  %v1451_v50 = vld [vmem:[%s2719_s2 + $0x8] sm:$0xff]  ;;  %s2507_s2 = sld [smem:[#allocation2 + $0x5b]] }
  0xff   :  { %v798_v36 = vadd.f32 %v795_v35, %v739_v1  ;;  %v814_v30 = vadd.f32 %v811_v43, %v755_v51  ;;  %v815_v52 = vstv %s2446_s28  ;;  %v786_v47 = vmul.f32 %v783_v17, %v773_v48  ;;  %s2574_s28 = sld [smem:[#allocation2 + $0x53]] }
 0x100   :  { %v830_v55 = vstv %s2451_s29  ;;  %v846_v57 = vstv %s2453_s30  ;;  %v862_v44 = vstv %s2462_s6  ;;  %v802_v21 = vmul.f32 %v799_v45, %v773_v48  ;;  %s2586_s29 = sld [smem:[#allocation2 + $0x41]] }
 0x101   :  { %v796_v41 = vadd.f32 %v793_v33, %v737_v54  ;;  %v797_v26 = vadd.f32 %v794_v16, %v738_v20  ;;  %v789_v8 = vadd.f32 %v786_v47, %v782_v60  ;;  %v771_v46 = vsel %vm188_vm4, %v768_v18, %v770_v25  ;;  %s2592_s30 = sld [smem:[#allocation2 + $0x56]] }
 0x102   :  { %v812_v29 = vadd.f32 %v809_v14, %v753_v53  ;;  %v813_v2 = vadd.f32 %v810_v27, %v754_v56  ;;  %v772_v0 = vsel %vm188_vm4, %v766_v10, %v768_v18  ;;  %v785_v11 = vmul.f32 %v783_v17, %v771_v46  ;;  %v890_v56 = vpop.permute.xlu2 %889  ;;  %s2595_s6 = sld [smem:[#allocation2 + $0x59]] }
 0x103   :  { %v833_v58 = vmul.f32 %v1449_v23, %v830_v55  ;;  %v849_v34 = vmul.f32 %v1449_v23, %v846_v57  ;;  %v865_v25 = vmul.f32 %v1449_v23, %v862_v44  ;;  %v784_v5 = vmul.f32 %v783_v17, %v772_v0 }
 0x104   :  { %v805_v3 = vadd.f32 %v802_v21, %v798_v36  ;;  %v818_v59 = vmul.f32 %v815_v52, %v773_v48  ;;  %v788_v7 = vadd.f32 %v785_v11, %v781_v31  ;;  %v801_v22 = vmul.f32 %v799_v45, %v771_v46 }
 0x105   :  { %v2486_v37 = vpop.permute.xlu0 %876  ;;  %v2488_v12 = vpop.permute.xlu1 %878  ;;  %v787_v39 = vadd.f32 %v784_v5, %v780_v4  ;;  %v800_v63 = vmul.f32 %v799_v45, %v772_v0  ;;  %v817_v60 = vmul.f32 %v815_v52, %v771_v46  ;;  %v837_v13 = vstv %s2466_s7  ;;  %s2597_s7 = sld [smem:[#allocation2 + $0x44]] }
 0x106   :  { %v831_v1 = vmul.f32 %v1450_v6, %v830_v55  ;;  %v832_v38 = vmul.f32 %v1451_v50, %v830_v55  ;;  %v847_v10 = vmul.f32 %v1450_v6, %v846_v57  ;;  %v816_v18 = vmul.f32 %v815_v52, %v772_v0 }
 0x107   :  { %v836_v51 = vadd.f32 %v833_v58, %v789_v8  ;;  %v848_v35 = vmul.f32 %v1451_v50, %v846_v57  ;;  %v840_v43 = vmul.f32 %v837_v13, %v2055_v42  ;;  %v853_v4 = vstv %s2473_s8  ;;  %s2603_s8 = sld [smem:[#allocation2 + $0x47]] }
 0x108   :  { %v821_v54 = vadd.f32 %v818_v59, %v814_v30  ;;  %v863_v20 = vmul.f32 %v1450_v6, %v862_v44  ;;  %v864_v31 = vmul.f32 %v1451_v50, %v862_v44  ;;  %v896_v17 = vstv %s2478_s9  ;;  %s2616_s9 = sld [smem:[#allocation2 + $0x5c]] }
 0x109   :  { %v852_v53 = vadd.f32 %v849_v34, %v805_v3  ;;  %v803_v33 = vadd.f32 %v800_v63, %v796_v41  ;;  %v804_v16 = vadd.f32 %v801_v22, %v797_v26  ;;  %v820_v45 = vadd.f32 %v817_v60, %v813_v2 }
 0x10a   :  { %v819_v14 = vadd.f32 %v816_v18, %v812_v29  ;;  %v856_v27 = vmul.f32 %v853_v4, %v2055_v42  ;;  %v869_v48 = vstv %s2484_s10  ;;  %v884_v36 = vsel %vm121_vm3, %v2471_v40, %v2486_v37  ;;  %s2626_s10 = sld [smem:[#allocation2 + $0x5f]] }
 0x10b   :  { %v834_v52 = vadd.f32 %v831_v1, %v787_v39  ;;  %v835_v47 = vadd.f32 %v832_v38, %v788_v7  ;;  %v843_v55 = vadd.f32 %v840_v43, %v836_v51  ;;  %v899_v57 = vmul.f32 %v896_v17, %v884_v36  ;;  %v947_v51 = vpop.permute.xlu2 %946 }
 0x10c   :  { %v912_v21 = vstv %s2493_s13  ;;  %v928_v41 = vstv %s2495_s14  ;;  %v838_v26 = vmul.f32 %v837_v13, %v1854_v28  ;;  %v839_v8 = vmul.f32 %v837_v13, %v1857_v32  ;;  %s2646_s13 = sld [smem:[#allocation2 + $0x4d]] }
 0x10d   :  { %v886_v30 = vpop.permute.xlu0 %885  ;;  %v868_v46 = vadd.f32 %v865_v25, %v821_v54  ;;  %v851_v29 = vadd.f32 %v848_v35, %v804_v16  ;;  %v872_v2 = vmul.f32 %v869_v48, %v2055_v42  ;;  %v902_v0 = vadd.f32 %v899_v57, %v843_v55  ;;  %s2650_s14 = sld [smem:[#allocation2 + $0x65]] }
 0x10e   :  { %v888_v44 = vpop.permute.xlu1 %887  ;;  %v850_v11 = vadd.f32 %v847_v10, %v803_v33  ;;  %v866_v23 = vadd.f32 %v863_v20, %v819_v14  ;;  %v867_v58 = vadd.f32 %v864_v31, %v820_v45  ;;  %v859_v34 = vadd.f32 %v856_v27, %v852_v53 }
 0x10f   :  { %v915_v5 = vmul.f32 %v912_v21, %v884_v36  ;;  %v931_v3 = vmul.f32 %v928_v41, %v884_v36  ;;  %v882_v59 = vsel %vm121_vm3, %v2488_v12, %v2471_v40  ;;  %v883_v42 = vsel %vm121_vm3, %v2486_v37, %v2488_v12 }
 0x110   :  { %v842_v25 = vadd.f32 %v839_v8, %v835_v47  ;;  %v841_v7 = vadd.f32 %v838_v26, %v834_v52  ;;  %v897_v22 = vmul.f32 %v896_v17, %v883_v42  ;;  %v898_v39 = vmul.f32 %v896_v17, %v882_v59 }
 0x111   :  { %v875_v63 = vadd.f32 %v872_v2, %v868_v46  ;;  %v854_v60 = vmul.f32 %v853_v4, %v1854_v28  ;;  %v855_v13 = vmul.f32 %v853_v4, %v1857_v32  ;;  %v903_v6 = vstv %s2507_s2  ;;  %s1472_s2 = smov 126  }
 0x112   :  { %v870_v40 = vmul.f32 %v869_v48, %v1854_v28  ;;  %v871_v37 = vmul.f32 %v869_v48, %v1857_v32  ;;  %v900_v12 = vadd.f32 %v897_v22, %v841_v7  ;;  %v901_v1 = vadd.f32 %v898_v39, %v842_v25 }
 0x113   :  { %v918_v38 = vadd.f32 %v915_v5, %v859_v34  ;;  %v893_v10 = vsel %vm121_vm3, %v890_v56, %v886_v30  ;;  %v891_v18 = vsel %vm121_vm3, %v888_v44, %v890_v56  ;;  %v934_v43 = vadd.f32 %v931_v3, %v875_v63  ;;  %v956_v39 = vpop.permute.xlu2 %955 }
 0x114   :  { %v913_v28 = vmul.f32 %v912_v21, %v883_v42  ;;  %v906_v4 = vmul.f32 %v903_v6, %v893_v10  ;;  %v892_v32 = vsel %vm121_vm3, %v886_v30, %v888_v44  ;;  %v858_v54 = vadd.f32 %v855_v13, %v851_v29 }
 0x115   :  { %v943_v50 = vpop.permute.xlu0 %942  ;;  %v857_v20 = vadd.f32 %v854_v60, %v850_v11  ;;  %v904_v31 = vmul.f32 %v903_v6, %v892_v32  ;;  %v905_v17 = vmul.f32 %v903_v6, %v891_v18  ;;  %v874_v53 = vadd.f32 %v871_v37, %v867_v58 }
 0x116   :  { %v945_v35 = vpop.permute.xlu1 %944  ;;  %v873_v33 = vadd.f32 %v870_v40, %v866_v23  ;;  %v919_v16 = vstv %s2520_s18  ;;  %v909_v45 = vadd.f32 %v906_v4, %v902_v0  ;;  %v914_v14 = vmul.f32 %v912_v21, %v882_v59  ;;  %s1473_s18 = smov 19  }
 0x117   :  { %v935_v56 = vstv %s2530_s19  ;;  %v907_v27 = vadd.f32 %v904_v31, %v900_v12  ;;  %v908_v48 = vadd.f32 %v905_v17, %v901_v1  ;;  %v916_v36 = vadd.f32 %v913_v28, %v857_v20  ;;  %s1439_s19 = sld [smem:[#allocation2 + $0x6c]] }
 0x118   :  { %v929_v52 = vmul.f32 %v928_v41, %v883_v42  ;;  %v930_v30 = vmul.f32 %v928_v41, %v882_v59  ;;  %v962_v47 = vstv %s2532_s20  ;;  %v922_v55 = vmul.f32 %v919_v16, %v893_v10  ;;  %s1440_s20 = sld [smem:[#allocation2 + $0x6d]] }
 0x119   :  { %v950_v57 = vsel %vm188_vm4, %v947_v51, %v943_v50  ;;  %v948_v44 = vsel %vm188_vm4, %v945_v35, %v947_v51  ;;  %v949_v21 = vsel %vm188_vm4, %v943_v50, %v945_v35  ;;  %v938_v26 = vmul.f32 %v935_v56, %v893_v10 }
 0x11a   :  { %v978_v8 = vstv %s2537_s21  ;;  %v994_v46 = vstv %s2541_s27  ;;  %v965_v29 = vmul.f32 %v962_v47, %v950_v57  ;;  %v920_v2 = vmul.f32 %v919_v16, %v892_v32 }
 0x11b   :  { %v921_v0 = vmul.f32 %v919_v16, %v891_v18  ;;  %v963_v11 = vmul.f32 %v962_v47, %v949_v21  ;;  %v964_v23 = vmul.f32 %v962_v47, %v948_v44  ;;  %v917_v34 = vadd.f32 %v914_v14, %v858_v54 }
 0x11c   :  { %v936_v5 = vmul.f32 %v935_v56, %v892_v32  ;;  %v937_v3 = vmul.f32 %v935_v56, %v891_v18  ;;  %v968_v59 = vadd.f32 %v965_v29, %v909_v45  ;;  %v981_v42 = vmul.f32 %v978_v8, %v950_v57 }
 0x11d   :  { %v952_v41 = vpop.permute.xlu0 %951  ;;  %v997_v25 = vmul.f32 %v994_v46, %v950_v57  ;;  %v966_v7 = vadd.f32 %v963_v11, %v907_v27  ;;  %v967_v22 = vadd.f32 %v964_v23, %v908_v48  ;;  %v932_v63 = vadd.f32 %v929_v52, %v873_v33 }
 0x11e   :  { %v954_v58 = vpop.permute.xlu1 %953  ;;  %v933_v60 = vadd.f32 %v930_v30, %v874_v53  ;;  %v925_v13 = vadd.f32 %v922_v55, %v918_v38  ;;  %v941_v6 = vadd.f32 %v938_v26, %v934_v43  ;;  %v923_v40 = vadd.f32 %v920_v2, %v916_v36 }
 0x11f   :  { %v924_v37 = vadd.f32 %v921_v0, %v917_v34  ;;  %v969_v12 = vstv %s2551_s22  ;;  %v939_v1 = vadd.f32 %v936_v5, %v932_v63  ;;  %v979_v10 = vmul.f32 %v978_v8, %v949_v21 }
 0x120   :  { %v940_v50 = vadd.f32 %v937_v3, %v933_v60  ;;  %v985_v18 = vstv %s2554_s23  ;;  %v984_v51 = vadd.f32 %v981_v42, %v925_v13  ;;  %v1000_v35 = vadd.f32 %v997_v25, %v941_v6 }
 0x121   :  { %v980_v28 = vmul.f32 %v978_v8, %v948_v44  ;;  %v959_v38 = vsel %vm188_vm4, %v956_v39, %v952_v41  ;;  %v995_v4 = vmul.f32 %v994_v46, %v949_v21  ;;  %v996_v43 = vmul.f32 %v994_v46, %v948_v44 }
 0x122   :  { %v1022_v32 = vstv %s2566_s24  ;;  %v972_v54 = vmul.f32 %v969_v12, %v959_v38  ;;  %v1001_v31 = vstv %s2562_s0  ;;  %v988_v17 = vmul.f32 %v985_v18, %v959_v38 }
 0x123   :  { %v957_v53 = vsel %vm188_vm4, %v954_v58, %v956_v39  ;;  %v958_v33 = vsel %vm188_vm4, %v952_v41, %v954_v58  ;;  %v1038_v45 = vstv %s2568_s25  ;;  %v1054_v14 = vstv %s2570_s26 }
 0x124   :  { %v975_v56 = vadd.f32 %v972_v54, %v968_v59  ;;  %v970_v27 = vmul.f32 %v969_v12, %v958_v33  ;;  %v982_v48 = vadd.f32 %v979_v10, %v923_v40  ;;  %v983_v36 = vadd.f32 %v980_v28, %v924_v37 }
 0x125   :  { %v2579_v20 = vpop.permute.xlu0 %1068  ;;  %v1025_v52 = vmul.f32 %v1022_v32, %v2300_v19  ;;  %v971_v30 = vmul.f32 %v969_v12, %v957_v53  ;;  %v998_v47 = vadd.f32 %v995_v4, %v939_v1  ;;  %v999_v55 = vadd.f32 %v996_v43, %v940_v50 }
 0x126   :  { %v2588_v16 = vpop.permute.xlu1 %1070  ;;  %v1004_v57 = vmul.f32 %v1001_v31, %v959_v38  ;;  %v973_v44 = vadd.f32 %v970_v27, %v966_v7  ;;  %v1041_v21 = vmul.f32 %v1038_v45, %v2300_v19  ;;  %v1057_v26 = vmul.f32 %v1054_v14, %v2300_v19 }
 0x127   :  { %v991_v8 = vadd.f32 %v988_v17, %v984_v51  ;;  %v974_v46 = vadd.f32 %v971_v30, %v967_v22  ;;  %v1023_v41 = vmul.f32 %v1022_v32, %v2068_v15  ;;  %v986_v2 = vmul.f32 %v985_v18, %v958_v33 }
 0x128   :  { %v987_v0 = vmul.f32 %v985_v18, %v957_v53  ;;  %v1029_v11 = vstv %s2574_s28  ;;  %v1028_v23 = vadd.f32 %v1025_v52, %v975_v56  ;;  %v1024_v58 = vmul.f32 %v1022_v32, %v2137_v61 }
 0x129   :  { %v1039_v34 = vmul.f32 %v1038_v45, %v2068_v15  ;;  %v1040_v5 = vmul.f32 %v1038_v45, %v2137_v61  ;;  %v1007_v19 = vadd.f32 %v1004_v57, %v1000_v35  ;;  %v1055_v3 = vmul.f32 %v1054_v14, %v2068_v15 }
 0x12a   :  { %v1056_v59 = vmul.f32 %v1054_v14, %v2137_v61  ;;  %v1032_v42 = vmul.f32 %v1029_v11, %v2327_v9  ;;  %v1044_v7 = vadd.f32 %v1041_v21, %v991_v8  ;;  %v1002_v22 = vmul.f32 %v1001_v31, %v958_v33 }
 0x12b   :  { %v1073_v29 = vpop.permute.xlu2 %1072  ;;  %v1003_v39 = vmul.f32 %v1001_v31, %v957_v53  ;;  %v1088_v63 = vstv %s2586_s29  ;;  %v989_v13 = vadd.f32 %v986_v2, %v982_v48  ;;  %v990_v6 = vadd.f32 %v987_v0, %v983_v36 }
 0x12c   :  { %v1045_v40 = vstv %s2592_s30  ;;  %v1076_v37 = vsel %vm121_vm3, %v1073_v29, %v2579_v20  ;;  %v1026_v15 = vadd.f32 %v1023_v41, %v973_v44  ;;  %v1027_v61 = vadd.f32 %v1024_v58, %v974_v46 }
 0x12d   :  { %v1078_v25 = vpop.permute.xlu0 %1077  ;;  %v1035_v12 = vadd.f32 %v1032_v42, %v1028_v23  ;;  %v1091_v1 = vmul.f32 %v1088_v63, %v1076_v37  ;;  %v1061_v50 = vstv %s2595_s6  ;;  %v1104_v10 = vstv %s2597_s7 }
 0x12e   :  { %v1080_v60 = vpop.permute.xlu1 %1079  ;;  %v1030_v18 = vmul.f32 %v1029_v11, %v2178_v24  ;;  %v1031_v51 = vmul.f32 %v1029_v11, %v2181_v49  ;;  %v1005_v35 = vadd.f32 %v1002_v22, %v998_v47  ;;  %v1006_v28 = vadd.f32 %v1003_v39, %v999_v55 }
 0x12f   :  { %v1048_v38 = vmul.f32 %v1045_v40, %v2327_v9  ;;  %v1094_v4 = vadd.f32 %v1091_v1, %v1035_v12  ;;  %v1060_v32 = vadd.f32 %v1057_v26, %v1007_v19  ;;  %v1042_v54 = vadd.f32 %v1039_v34, %v989_v13 }
 0x130   :  { %v1043_v31 = vadd.f32 %v1040_v5, %v990_v6  ;;  %v2624_v17 = vstv %s2603_s8  ;;  %v1064_v53 = vmul.f32 %v1061_v50, %v2327_v9  ;;  %v1107_v33 = vmul.f32 %v1104_v10, %v1076_v37 }
 0x131   :  { %v1074_v45 = vsel %vm121_vm3, %v2588_v16, %v1073_v29  ;;  %v2636_v14 = vsel %vm121_vm3, %v2579_v20, %v2588_v16  ;;  %v1034_v56 = vadd.f32 %v1031_v51, %v1027_v61  ;;  %v1033_v27 = vadd.f32 %v1030_v18, %v1026_v15 }
 0x132   :  { %v1089_v48 = vmul.f32 %v1088_v63, %v2636_v14  ;;  %v1090_v36 = vmul.f32 %v1088_v63, %v1074_v45  ;;  %v1058_v9 = vadd.f32 %v1055_v3, %v1005_v35  ;;  %v1059_v52 = vadd.f32 %v1056_v59, %v1006_v28 }
 0x133   :  { %v1082_v43 = vpop.permute.xlu2 %1081  ;;  %v1051_v30 = vadd.f32 %v1048_v38, %v1044_v7  ;;  %v1123_v47 = vmul.f32 %v2624_v17, %v1076_v37  ;;  %v1047_v20 = vmul.f32 %v1045_v40, %v2181_v49  ;;  %v1095_v21 = vstv %s2616_s9 }
 0x134   :  { %v1092_v16 = vadd.f32 %v1089_v48, %v1033_v27  ;;  %v1093_v44 = vadd.f32 %v1090_v36, %v1034_v56  ;;  %v1067_v26 = vadd.f32 %v1064_v53, %v1060_v32  ;;  %v1046_v46 = vmul.f32 %v1045_v40, %v2178_v24 }
 0x135   :  { %v1135_v55 = vpop.permute.xlu0 %1134  ;;  %v1110_v8 = vadd.f32 %v1107_v33, %v1051_v30  ;;  %v1062_v29 = vmul.f32 %v1061_v50, %v2178_v24  ;;  %v1063_v41 = vmul.f32 %v1061_v50, %v2181_v49  ;;  %v1085_v2 = vsel %vm121_vm3, %v1082_v43, %v1078_v25 }
 0x136   :  { %v1137_v57 = vpop.permute.xlu1 %1136  ;;  %v1083_v0 = vsel %vm121_vm3, %v1080_v60, %v1082_v43  ;;  %v2659_v11 = vsel %vm121_vm3, %v1078_v25, %v1080_v60  ;;  %v1105_v23 = vmul.f32 %v1104_v10, %v2636_v14  ;;  %v1106_v24 = vmul.f32 %v1104_v10, %v1074_v45 }
 0x137   :  { %v1098_v58 = vmul.f32 %v1095_v21, %v1085_v2  ;;  %v1096_v34 = vmul.f32 %v1095_v21, %v2659_v11  ;;  %v2665_v5 = vadd.f32 %v1123_v47, %v1067_v26  ;;  %v1050_v19 = vadd.f32 %v1047_v20, %v1043_v31 }
 0x138   :  { %v1111_v3 = vstv %s2626_s10  ;;  %v1097_v59 = vmul.f32 %v1095_v21, %v1083_v0  ;;  %v1049_v42 = vadd.f32 %v1046_v46, %v1042_v54  ;;  %v1154_v22 = vstv %s2638_s11 }
 0x139   :  { %v1101_v7 = vadd.f32 %v1098_v58, %v1094_v4  ;;  %v1099_v25 = vadd.f32 %v1096_v34, %v1092_v16  ;;  %v1066_v39 = vadd.f32 %v1063_v41, %v1059_v52  ;;  %v1065_v63 = vadd.f32 %v1062_v29, %v1058_v9 }
 0x13a   :  { %v1122_v60 = vmul.f32 %v2624_v17, %v1074_v45  ;;  %v1100_v13 = vadd.f32 %v1097_v59, %v1093_v44  ;;  %v1108_v6 = vadd.f32 %v1105_v23, %v1049_v42  ;;  %v1109_v40 = vadd.f32 %v1106_v24, %v1050_v19 }
 0x13b   :  { %v1139_v49 = vpop.permute.xlu2 %1138  ;;  %v1114_v37 = vmul.f32 %v1111_v3, %v1085_v2  ;;  %v1127_v61 = vstv %s2642_s12  ;;  %v1112_v12 = vmul.f32 %v1111_v3, %v2659_v11  ;;  %v1170_v1 = vstv %s2646_s13 }
 0x13c   :  { %v1142_v15 = vsel %vm188_vm4, %v1139_v49, %v1135_v55  ;;  %v1113_v10 = vmul.f32 %v1111_v3, %v1083_v0  ;;  %v1140_v18 = vsel %vm188_vm4, %v1137_v57, %v1139_v49  ;;  %v1141_v51 = vsel %vm188_vm4, %v1135_v55, %v1137_v57 }
 0x13d   :  { %v1157_v50 = vmul.f32 %v1154_v22, %v1142_v15  ;;  %v1161_v35 = vstv %s2650_s14  ;;  %v1144_v28 = vpop.permute.xlu0 %1143  ;;  %v1155_v43 = vmul.f32 %v1154_v22, %v1141_v51  ;;  %v1156_v32 = vmul.f32 %v1154_v22, %v1140_v18 }
 0x13e   :  { %v1146_v38 = vpop.permute.xlu1 %1145  ;;  %v1177_v54 = vstv %s2661_s15  ;;  %v1117_v31 = vadd.f32 %v1114_v37, %v1110_v8  ;;  %v1173_v53 = vmul.f32 %v1170_v1, %v1142_v15  ;;  %v1171_v33 = vmul.f32 %v1170_v1, %v1141_v51 }
 0x13f   :  { %v1160_v4 = vadd.f32 %v1157_v50, %v1101_v7  ;;  %v1172_v45 = vmul.f32 %v1170_v1, %v1140_v18  ;;  %v1158_v27 = vadd.f32 %v1155_v43, %v1099_v25  ;;  %v1159_v48 = vadd.f32 %v1156_v32, %v1100_v13 }
 0x140   :  { %v1116_v52 = vadd.f32 %v1113_v10, %v1109_v40  ;;  %v1150_v55 = vsel %vm188_vm4, %v1144_v28, %v1146_v38  ;;  %v1115_v57 = vadd.f32 %v1112_v12, %v1108_v6  ;;  %v1121_v21 = vmul.f32 %v2624_v17, %v2636_v14 }
 0x141   :  { %v1178_v16 = vmul.f32 %v1177_v54, %v1150_v55  ;;  %v1162_v26 = vmul.f32 %v1161_v35, %v1150_v55  ;;  %v1176_v8 = vadd.f32 %v1173_v53, %v1117_v31  ;;  %v1130_v29 = vmul.f32 %v1127_v61, %v1085_v2 }
 0x142   :  { %v1175_v46 = vadd.f32 %v1172_v45, %v1116_v52  ;;  %v1129_v41 = vmul.f32 %v1127_v61, %v1083_v0  ;;  %v1186_v23 = vstv %s2675_s1  ;;  %v1174_v24 = vadd.f32 %v1171_v33, %v1115_v57 }
 0x143   :  { %v1148_v56 = vpop.permute.xlu2 %1147  ;;  %v1125_v3 = vadd.f32 %v1122_v60, %v1066_v39  ;;  %v1128_v59 = vmul.f32 %v1127_v61, %v2659_v11  ;;  %v1193_v42 = vstv %s2683_s16  ;;  %v1189_v25 = vmul.f32 %v1186_v23, %v1142_v15 }
 0x144   :  { %v1151_v36 = vsel %vm188_vm4, %v1148_v56, %v1144_v28  ;;  %v1149_v9 = vsel %vm188_vm4, %v1146_v38, %v1148_v56  ;;  %v1181_v7 = vadd.f32 %v1178_v16, %v1174_v24  ;;  %v1188_v22 = vmul.f32 %v1186_v23, %v1140_v18 }
 0x145   :  { %v1164_v30 = vmul.f32 %v1161_v35, %v1151_v36  ;;  %v1180_v47 = vmul.f32 %v1177_v54, %v1151_v36  ;;  %v1163_v20 = vmul.f32 %v1161_v35, %v1149_v9  ;;  %v1179_v44 = vmul.f32 %v1177_v54, %v1149_v9 }
 0x146   :  { %v1165_v17 = vadd.f32 %v1162_v26, %v1158_v27  ;;  %v1124_v14 = vadd.f32 %v1121_v21, %v1065_v63  ;;  %v1187_v2 = vmul.f32 %v1186_v23, %v1141_v51  ;;  %1200 = vrot.lane.b32.xlu0 %v1181_v7, %s1471_s17  ;;  %v1133_v0 = vadd.f32 %v1130_v29, %v2665_v5 }
 0x147   :  { %v1183_v58 = vadd.f32 %v1180_v47, %v1176_v8  ;;  %v1182_v34 = vadd.f32 %v1179_v44, %v1175_v46  ;;  %v1166_v49 = vadd.f32 %v1163_v20, %v1159_v48  ;;  %v1167_v19 = vadd.f32 %v1164_v30, %v1160_v4 }
 0x148   :  { %v1132_v13 = vadd.f32 %v1129_v41, %v1125_v3  ;;  %v1196_v6 = vmul.f32 %v1193_v42, %v1151_v36  ;;  %v1195_v40 = vmul.f32 %v1193_v42, %v1149_v9  ;;  %v1131_v37 = vadd.f32 %v1128_v59, %v1124_v14  ;;  %v1244_v36 = vld [vmem:[%s2720_s3] sm:$0x7] }
 0x149   :  { %1204 = vrot.lane.b32.xlu2 %v1183_v58, %s1471_s17  ;;  %1202 = vrot.lane.b32.xlu1 %v1182_v34, %s1471_s17  ;;  %v1194_v39 = vmul.f32 %v1193_v42, %v1150_v55  ;;  %v1192_v60 = vadd.f32 %v1189_v25, %v1133_v0  ;;  %v1228_v27 = vstv %s1439_s19  ;;  %v1229_v48 = vstv %s1440_s20 }
 0x14a   :  { %v1191_v11 = vadd.f32 %v1188_v22, %v1132_v13  ;;  %v1190_v61 = vadd.f32 %v1187_v2, %v1131_v37  ;;  %v1230_v52 = vsel %vm34_vm0, %v1228_v27, %v1229_v48  ;;  %v1247_v55 = vperm.slane %v1244_v36, 1 }
 0x14b   :  { %v1199_v12 = vadd.f32 %v1196_v6, %v1192_v60  ;;  %v1246_v16 = vperm.slane %v1244_v36, 0  ;;  %v1248_v44 = vperm.slane %v1244_v36, 2 }
 0x14c   :  { %v1198_v15 = vadd.f32 %v1195_v40, %v1191_v11  ;;  %v1197_v1 = vadd.f32 %v1194_v39, %v1190_v61 }
 0x14e   :  { %1213 = vrot.lane.b32.xlu0 %v1197_v1, %s1472_s2 }
 0x151   :  { %1217 = vrot.lane.b32.xlu2 %v1199_v12, %s1472_s2  ;;  %1215 = vrot.lane.b32.xlu1 %v1198_v15, %s1472_s2 }
 0x1a3   :  { %v1205_v63 = vpop.permute.xlu2 %1204 }
 0x1ab   :  { %v1218_v35 = vpop.permute.xlu2 %1217 }
 0x1b8   :  { %v1201_v10 = vpop.permute.xlu0 %1200 }
 0x1b9   :  { %v1209_v51 = vsel %vm1206_vm5, %v1205_v63, %v1201_v10 }
 0x1ba   :  { %v1212_v43 = vadd.f32 %v1209_v51, %v1167_v19 }
 0x1bb   :  { %v1203_v50 = vpop.permute.xlu1 %1202 }
 0x1bc   :  { %v1207_v5 = vsel %vm1206_vm5, %v1203_v50, %v1205_v63  ;;  %v1208_v18 = vsel %vm1206_vm5, %v1201_v10, %v1203_v50 }
 0x1bd   :  { %v1211_v28 = vadd.f32 %v1207_v5, %v1166_v49  ;;  %v1210_v4 = vadd.f32 %v1208_v18, %v1165_v17 }
 0x1c0   :  { %v1214_v54 = vpop.permute.xlu0 %1213 }
 0x1c1   :  { %v1222_v33 = vsel %vm1219_vm6, %v1218_v35, %v1214_v54 }
 0x1c2   :  { %v1225_v56 = vadd.f32 %v1222_v33, %v1212_v43 }
 0x1c3   :  { %v1216_v38 = vpop.permute.xlu1 %1215 }
 0x1c4   :  { %v1220_v32 = vsel %vm1219_vm6, %v1216_v38, %v1218_v35  ;;  %v1221_v53 = vsel %vm1219_vm6, %v1214_v54, %v1216_v38  ;;  %1235 = vrot.lane.b32.xlu1 %v1225_v56, %s1473_s18 }
 0x1c5   :  { %v1224_v31 = vadd.f32 %v1220_v32, %v1211_v28  ;;  %v1223_v45 = vadd.f32 %v1221_v53, %v1210_v4 }
 0x1c7   :  { %1233 = vrot.lane.b32.xlu0 %v1224_v31, %s1473_s18  ;;  %1231 = vrot.lane.b32.xlu2 %v1223_v45, %s1473_s18 }
 0x221   :  { %v1232_v30 = vpop.permute.xlu2 %1231 }
 0x236   :  { %v1236_v57 = vpop.permute.xlu1 %1235 }
 0x237   :  { %v1240_v21 = vsel %vm1237_vm7, %v1236_v57, %v1232_v30 }
 0x238   :  { %v1241_v46 = vadd.f32 %v1240_v21, %v1230_v52 }
 0x239   :  { %v1234_v47 = vpop.permute.xlu0 %1233 }
 0x23a   :  { %v1239_v20 = vsel %vm1237_vm7, %v1232_v30, %v1234_v47  ;;  %v1238_v26 = vsel %vm1237_vm7, %v1234_v47, %v1236_v57  ;;  %v1252_v23 = vmul.f32 %v1246_v16, %v1241_v46 }
 0x23b   :  { %v1242_v8 = vadd.f32 %v1239_v20, %v1230_v52  ;;  %v1243_v29 = vadd.f32 %v1238_v26, %v1230_v52 }
 0x23c   :  { %1255 = vst [vmem:[%s2721_s4] sm:$0xff] %v1252_v23  ;;  %1273 = vmatpush.xpose.msra.mxu0 %v1252_v23 }
 0x23d   :  { %v1253_v41 = vmul.f32 %v1247_v55, %v1242_v8  ;;  %v1254_v24 = vmul.f32 %v1248_v44, %v1243_v29 }
 0x23f   :  { %1256 = vst [vmem:[%s2721_s4 + $0x8] sm:$0xff] %v1253_v41  ;;  %1293 = vmatpush.xpose.msra.mxu1 %v1253_v41  ;;  %1313 = vmatpush.xpose.msra.mxu2 %v1254_v24 }
 0x240   :  { %1257 = vst [vmem:[%s2721_s4 + $0x10] sm:$0xff] %v1254_v24  ;;  %1274 = vmatmul.f32.vlgmr.msra.gmra.mxu0 %v1252_v23 }
 0x242   :  { %1294 = vmatmul.f32.vlgmr.msra.gmra.mxu1 %v1253_v41  ;;  %1314 = vmatmul.f32.vlgmr.msra.gmra.mxu2 %v1254_v24 }
 0x2bd   :  { %v1275_v62 = vpop.f32.mrf.mxu0 }
 0x2bf   :  { %v1295_v58 = vpop.f32.mrf.mxu1 }
 0x2c0   :  { %v1296_v34 = vadd.f32 %v1295_v58, %v1275_v62 }
 0x2c5   :  { %v1315_v49 = vpop.f32.mrf.mxu2 }
 0x2c6   :  { %v1316_v19 = vadd.f32 %v1315_v49, %v1296_v34 }
 0x2c8   :  { %1319 = vst.msk [vmem:[%s2722_s5] sm:$0xff] %vm1318_vm8, %v1316_v19 }
 0x2c9   :  { %1328 = vsyncpa [#allocation3], 1 }

</bundles_post_ra>
